<compile_context>
chip_gen: v6e
topology: v6e:2x2x1
jax: 0.10.0
libtpu: 0.0.40
codegen_flags: <defaults>
</compile_context>

<pallas_src>
import jax
import jax.numpy as jnp
from jax import lax
from jax.experimental import pallas as pl
from jax.experimental.pallas import tpu as pltpu


_PAD_COL = 8  # sublane-aligned column offset of the interior in the padded scratch


def _resblock_band_kernel(x_ref, xt2_ref, xt1_ref, xb1_ref, xb2_ref,
                          w1_ref, b1_ref, w2_ref, b2_ref,
                          out_ref, pad_ref):
    # Per grid step (n, b):
    #   x_ref          : (1, BAND, W, C) input rows of this band (also identity)
    #   xt2/xt1_ref    : (1, 1, W, C)    input rows band_start-2 / band_start-1
    #   xb1/xb2_ref    : (1, 1, W, C)    input rows band_start+BAND / +BAND+1
    #   w1_ref, w2_ref : (9*C, C)        conv weights, row index (dy*3+dx)*C + cin
    #   b1_ref, b2_ref : (1, C)
    #   out_ref        : (1, BAND, W, C)
    #   pad_ref        : VMEM scratch (BAND+4, W+16, C) f32 — padded input slab,
    #                    then reused (rows 1..BAND+2) for relu(conv1(x)).
    _, BAND, W, C = x_ref.shape
    L = _PAD_COL
    b = pl.program_id(1)
    nb = pl.num_programs(1)
    f32 = jnp.float32

    # Column halo (only columns L-1 and L+W are ever read outside the interior).
    zcol = jnp.zeros((BAND + 4, 1, C), f32)
    pad_ref[:, L - 1:L, :] = zcol
    pad_ref[:, L + W:L + W + 1, :] = zcol

    # Row halos: two rows above / below the band from the neighbouring bands;
    # zeros only at the true image border.
    @pl.when(b == 0)
    def _():
        pad_ref[0:2, L:L + W, :] = jnp.zeros((2, W, C), f32)

    @pl.when(b > 0)
    def _():
        pad_ref[0:1, L:L + W, :] = xt2_ref[0].astype(f32)
        pad_ref[1:2, L:L + W, :] = xt1_ref[0].astype(f32)

    @pl.when(b == nb - 1)
    def _():
        pad_ref[BAND + 2:BAND + 4, L:L + W, :] = jnp.zeros((2, W, C), f32)

    @pl.when(b < nb - 1)
    def _():
        pad_ref[BAND + 2:BAND + 3, L:L + W, :] = xb1_ref[0].astype(f32)
        pad_ref[BAND + 3:BAND + 4, L:L + W, :] = xb2_ref[0].astype(f32)

    # Band interior (sublane-aligned store; x is NOT kept live across the convs).
    pad_ref[2:BAND + 2, L:L + W, :] = x_ref[0].astype(f32)

    def conv3x3(row0, rows, w_ref, b_ref):
        # 3x3 "same" conv as 9 accumulated K=C MXU dots over shifted views of
        # the padded scratch (no im2col concatenate / lane repacking).
        acc = None
        for k in range(9):
            dy, dx = divmod(k, 3)
            patch = pad_ref[row0 + dy:row0 + dy + rows,
                            L - 1 + dx:L - 1 + dx + W, :].reshape(rows * W, C)
            d = jnp.dot(patch, w_ref[k * C:(k + 1) * C, :],
                        preferred_element_type=f32)
            acc = d if acc is None else acc + d
        return acc + b_ref[...]

    # conv1 + ReLU on BAND+2 rows (band plus a 1-row mid halo on each side),
    # written back in place shifted down one row (all conv1 reads precede the
    # store in program order, so reusing the same scratch is safe).
    mid = jnp.maximum(conv3x3(0, BAND + 2, w1_ref, b1_ref), 0.0)
    pad_ref[1:BAND + 3, L:L + W, :] = mid.reshape(BAND + 2, W, C)

    # conv2's zero row-padding at the image border: mid rows just outside the
    # image must be zero, not relu(conv1(zero-padded halo)).
    @pl.when(b == 0)
    def _():
        pad_ref[1:2, L:L + W, :] = jnp.zeros((1, W, C), f32)

    @pl.when(b == nb - 1)
    def _():
        pad_ref[BAND + 2:BAND + 3, L:L + W, :] = jnp.zeros((1, W, C), f32)

    # conv2 + residual (identity re-read from the VMEM input block).
    y = conv3x3(1, BAND, w2_ref, b2_ref).reshape(BAND, W, C)
    out_ref[0] = (x_ref[0].astype(f32) + y).astype(out_ref.dtype)


def _vmem_capacity_bytes():
    try:
        cap = getattr(pltpu.get_tpu_info(), "vmem_capacity_bytes", None)
        if cap:
            return int(cap)
    except Exception:
        pass
    return 64 * 1024 * 1024  # conservative default (v7x per-TensorCore)


def _pick_band_rows(h, max_rows=32):
    """Largest divisor of h that is <= max_rows, preferring multiples of 8."""
    best = None
    for cand in range(min(h, max_rows), 0, -1):
        if h % cand:
            continue
        if cand % 8 == 0:
            return cand
        if best is None:
            best = cand
    return best if best is not None else h


def residual_block_nobn(x_nchw, w1, b1, w2, b2, band_rows=None):
    """Pallas implementation of ResidualBlock_noBN.forward.

    x_nchw : (N, C, H, W) float32
    w1, w2 : (C, C, 3, 3) float32  (PyTorch OIHW conv weights)
    b1, b2 : (C,) float32
    returns: (N, C, H, W) float32
    """
    N, C, H, W = x_nchw.shape
    BAND = _pick_band_rows(H) if band_rows is None else band_rows
    assert H % BAND == 0, f"band_rows={BAND} must divide H={H}"
    nb = H // BAND

    # NCHW -> NHWC (channels on the 128-lane axis); no HBM padding copy.
    x_nhwc = jnp.transpose(x_nchw, (0, 2, 3, 1))

    # OIHW -> (9*Cin, Cout), row index = (dy*3 + dx)*C + cin, matching the
    # in-kernel shifted-read ordering (PyTorch cross-correlation convention).
    w1_mat = jnp.transpose(w1, (2, 3, 1, 0)).reshape(9 * C, C)
    w2_mat = jnp.transpose(w2, (2, 3, 1, 0)).reshape(9 * C, C)
    b1_r = b1.reshape(1, C)
    b2_r = b2.reshape(1, C)

    # Generation-aware VMEM budget from the real per-step footprint.
    band_blk = BAND * W * C * 4            # x / out band block
    halo_blk = W * C * 4                   # each 1-row halo block
    weights = 2 * (9 * C * C + C) * 4      # both convs' weights + biases
    pad_scr = (BAND + 4) * (W + 16) * C * 4
    mid_tmp = (BAND + 2) * W * C * 4       # staged relu(conv1) value / accumulators
    est = (2 * 2 * band_blk                # x + out, double buffered
           + 2 * 4 * halo_blk              # four halo streams, double buffered
           + 2 * weights                   # default double buffering of constants
           + pad_scr + 2 * mid_tmp
           + (4 << 20))                    # slack for spills / compiler scratch
    cap = _vmem_capacity_bytes()
    vmem_limit = int(min(max(est, 16 << 20), int(0.7 * cap)))

    hmax = H - 1

    out_nhwc = pl.pallas_call(
        _resblock_band_kernel,
        out_shape=jax.ShapeDtypeStruct((N, H, W, C), x_nchw.dtype),
        grid=(N, nb),
        in_specs=[
            pl.BlockSpec((1, BAND, W, C), lambda n, b: (n, b, 0, 0)),
            pl.BlockSpec((1, 1, W, C),
                         lambda n, b: (n, jnp.maximum(b * BAND - 2, 0), 0, 0)),
            pl.BlockSpec((1, 1, W, C),
                         lambda n, b: (n, jnp.maximum(b * BAND - 1, 0), 0, 0)),
            pl.BlockSpec((1, 1, W, C),
                         lambda n, b: (n, jnp.minimum((b + 1) * BAND, hmax), 0, 0)),
            pl.BlockSpec((1, 1, W, C),
                         lambda n, b: (n, jnp.minimum((b + 1) * BAND + 1, hmax), 0, 0)),
            pl.BlockSpec((9 * C, C), lambda n, b: (0, 0)),
            pl.BlockSpec((1, C), lambda n, b: (0, 0)),
            pl.BlockSpec((9 * C, C), lambda n, b: (0, 0)),
            pl.BlockSpec((1, C), lambda n, b: (0, 0)),
        ],
        out_specs=pl.BlockSpec((1, BAND, W, C), lambda n, b: (n, b, 0, 0)),
        scratch_shapes=[pltpu.VMEM((BAND + 4, W + 16, C), jnp.float32)],
        compiler_params=pltpu.CompilerParams(
            dimension_semantics=("parallel", "parallel"),
            vmem_limit_bytes=vmem_limit),
    )(x_nhwc, x_nhwc, x_nhwc, x_nhwc, x_nhwc, w1_mat, b1_r, w2_mat, b2_r)

    return jnp.transpose(out_nhwc, (0, 3, 1, 2))


def _reference_forward(x, w1, b1, w2, b2):
    """Pure-JAX (XLA conv) reference of the PyTorch forward, NCHW."""
    dn = ("NCHW", "OIHW", "NCHW")
    o = lax.conv_general_dilated(x, w1, (1, 1), "SAME", dimension_numbers=dn)
    o = o + b1[None, :, None, None]
    o = jnp.maximum(o, 0.0)
    o = lax.conv_general_dilated(o, w2, (1, 1), "SAME", dimension_numbers=dn)
    o = o + b2[None, :, None, None]
    return x + o


if __name__ == "__main__":
    # Module default nf=64; small spatial/batch for the demo.
    N, C, H, W = 2, 64, 16, 16

    key = jax.random.PRNGKey(0)
    kx, kw1, kb1, kw2, kb2 = jax.random.split(key, 5)

    x = jax.random.normal(kx, (N, C, H, W), dtype=jnp.float32)

    # Deterministic "kaiming-normal * 0.1" style init (shapes of
    # nn.Conv2d(nf, nf, 3, 1, 1, bias=True)).
    fan_in = C * 3 * 3
    std = (2.0 / fan_in) ** 0.5 * 0.1
    w1 = jax.random.normal(kw1, (C, C, 3, 3), dtype=jnp.float32) * std
    w2 = jax.random.normal(kw2, (C, C, 3, 3), dtype=jnp.float32) * std
    b1 = jax.random.normal(kb1, (C,), dtype=jnp.float32) * 0.01
    b2 = jax.random.normal(kb2, (C,), dtype=jnp.float32) * 0.01

    ref = jax.block_until_ready(_reference_forward(x, w1, b1, w2, b2))

    # Multi-band path (band boundary inside the image) and single-band path.
    for band in (8, None):
        out = jax.block_until_ready(
            residual_block_nobn(x, w1, b1, w2, b2, band_rows=band))
        assert out.shape == (N, C, H, W)
        err = jnp.max(jnp.abs(out - ref))
        assert jnp.allclose(out, ref, rtol=1e-4, atol=1e-4), (
            f"band={band}: max abs err {err}")

    print("KERNEL_OK")
</pallas_src>

<mosaic_0001>
module attributes {stable_mosaic.version = 11 : i64} {
  func.func @_resblock_band_kernel(%arg0: i32, %arg1: i32, %arg2: memref<1x8x16x64xf32, #tpu.memory_space<vmem>>, %arg3: memref<1x1x16x64xf32, #tpu.memory_space<vmem>>, %arg4: memref<1x1x16x64xf32, #tpu.memory_space<vmem>>, %arg5: memref<1x1x16x64xf32, #tpu.memory_space<vmem>>, %arg6: memref<1x1x16x64xf32, #tpu.memory_space<vmem>>, %arg7: memref<576x64xf32, #tpu.memory_space<vmem>>, %arg8: memref<1x64xf32, #tpu.memory_space<vmem>>, %arg9: memref<576x64xf32, #tpu.memory_space<vmem>>, %arg10: memref<1x64xf32, #tpu.memory_space<vmem>>, %arg11: memref<1x8x16x64xf32, #tpu.memory_space<vmem>>, %arg12: memref<12x32x64xf32, #tpu.memory_space<vmem>>) attributes {dimension_semantics = [#tpu.dimension_semantics<parallel>, #tpu.dimension_semantics<parallel>], iteration_bounds = array<i64: 2, 2>, scalar_prefetch = 0 : i64, scratch_operands = 1 : i64, tpu.core_type = #tpu.core_type<tc>, window_params = [{transform_indices = @transform_0, window_bounds = array<i64: 1, 8, 16, 64>}, {transform_indices = @transform_1, window_bounds = array<i64: 1, 1, 16, 64>}, {transform_indices = @transform_2, window_bounds = array<i64: 1, 1, 16, 64>}, {transform_indices = @transform_3, window_bounds = array<i64: 1, 1, 16, 64>}, {transform_indices = @transform_4, window_bounds = array<i64: 1, 1, 16, 64>}, {pipeline_mode = #tpu.pipeline_mode<synchronous>, transform_indices = @transform_5, window_bounds = array<i64: 576, 64>}, {pipeline_mode = #tpu.pipeline_mode<synchronous>, transform_indices = @transform_6, window_bounds = array<i64: 1, 64>}, {pipeline_mode = #tpu.pipeline_mode<synchronous>, transform_indices = @transform_7, window_bounds = array<i64: 576, 64>}, {pipeline_mode = #tpu.pipeline_mode<synchronous>, transform_indices = @transform_8, window_bounds = array<i64: 1, 64>}, {transform_indices = @transform_9, window_bounds = array<i64: 1, 8, 16, 64>}]} {
    %cst = arith.constant 0.000000e+00 : f32
    %0 = vector.broadcast %cst : f32 to vector<12x1x64xf32>
    %c0 = arith.constant 0 : index
    %c7 = arith.constant 7 : index
    %c0_0 = arith.constant 0 : index
    %1 = vector.load %arg12[%c0, %c7, %c0_0] : memref<12x32x64xf32, #tpu.memory_space<vmem>>, vector<12x1x64xf32>
    tpu.vector_store %arg12[%c0, %c7, %c0_0], %0 {strides = array<i32>} : memref<12x32x64xf32, #tpu.memory_space<vmem>>, vector<12x1x64xf32>,
    %c0_1 = arith.constant 0 : index
    %c24 = arith.constant 24 : index
    %c0_2 = arith.constant 0 : index
    %2 = vector.load %arg12[%c0_1, %c24, %c0_2] : memref<12x32x64xf32, #tpu.memory_space<vmem>>, vector<12x1x64xf32>
    tpu.vector_store %arg12[%c0_1, %c24, %c0_2], %0 {strides = array<i32>} : memref<12x32x64xf32, #tpu.memory_space<vmem>>, vector<12x1x64xf32>,
    %c0_i32 = arith.constant 0 : i32
    %3 = arith.cmpi eq, %arg1, %c0_i32 : i32
    %4 = arith.extui %3 : i1 to i32
    %c0_i32_3 = arith.constant 0 : i32
    %5 = arith.cmpi ne, %4, %c0_i32_3 : i32
    scf.if %5 {
      %cst_131 = arith.constant 0.000000e+00 : f32
      %129 = vector.broadcast %cst_131 : f32 to vector<2x16x64xf32>
      %c0_132 = arith.constant 0 : index
      %c8_133 = arith.constant 8 : index
      %c0_134 = arith.constant 0 : index
      %130 = vector.load %arg12[%c0_132, %c8_133, %c0_134] : memref<12x32x64xf32, #tpu.memory_space<vmem>>, vector<2x16x64xf32>
      tpu.vector_store %arg12[%c0_132, %c8_133, %c0_134], %129 {strides = array<i32>} : memref<12x32x64xf32, #tpu.memory_space<vmem>>, vector<2x16x64xf32>,
    } else {
    }
    %c0_i32_4 = arith.constant 0 : i32
    %6 = arith.cmpi sgt, %arg1, %c0_i32_4 : i32
    %7 = arith.extui %6 : i1 to i32
    %c0_i32_5 = arith.constant 0 : i32
    %8 = arith.cmpi ne, %7, %c0_i32_5 : i32
    scf.if %8 {
      %c0_131 = arith.constant 0 : index
      %c0_132 = arith.constant 0 : index
      %c0_133 = arith.constant 0 : index
      %c0_134 = arith.constant 0 : index
      %129 = vector.load %arg3[%c0_131, %c0_132, %c0_133, %c0_134] : memref<1x1x16x64xf32, #tpu.memory_space<vmem>>, vector<1x1x16x64xf32>
      %130 = vector.shape_cast %129 : vector<1x1x16x64xf32> to vector<1x16x64xf32>
      %c0_135 = arith.constant 0 : index
      %c8_136 = arith.constant 8 : index
      %c0_137 = arith.constant 0 : index
      %131 = vector.load %arg12[%c0_135, %c8_136, %c0_137] : memref<12x32x64xf32, #tpu.memory_space<vmem>>, vector<1x16x64xf32>
      tpu.vector_store %arg12[%c0_135, %c8_136, %c0_137], %130 {strides = array<i32>} : memref<12x32x64xf32, #tpu.memory_space<vmem>>, vector<1x16x64xf32>,
      %c0_138 = arith.constant 0 : index
      %c0_139 = arith.constant 0 : index
      %c0_140 = arith.constant 0 : index
      %c0_141 = arith.constant 0 : index
      %132 = vector.load %arg4[%c0_138, %c0_139, %c0_140, %c0_141] : memref<1x1x16x64xf32, #tpu.memory_space<vmem>>, vector<1x1x16x64xf32>
      %133 = vector.shape_cast %132 : vector<1x1x16x64xf32> to vector<1x16x64xf32>
      %c1_142 = arith.constant 1 : index
      %c8_143 = arith.constant 8 : index
      %c0_144 = arith.constant 0 : index
      %134 = vector.load %arg12[%c1_142, %c8_143, %c0_144] : memref<12x32x64xf32, #tpu.memory_space<vmem>>, vector<1x16x64xf32>
      tpu.vector_store %arg12[%c1_142, %c8_143, %c0_144], %133 {strides = array<i32>} : memref<12x32x64xf32, #tpu.memory_space<vmem>>, vector<1x16x64xf32>,
    } else {
    }
    %c1_i32 = arith.constant 1 : i32
    %9 = arith.cmpi eq, %arg1, %c1_i32 : i32
    %10 = arith.extui %9 : i1 to i32
    %c0_i32_6 = arith.constant 0 : i32
    %11 = arith.cmpi ne, %10, %c0_i32_6 : i32
    scf.if %11 {
      %cst_131 = arith.constant 0.000000e+00 : f32
      %129 = vector.broadcast %cst_131 : f32 to vector<2x16x64xf32>
      %c10 = arith.constant 10 : index
      %c8_132 = arith.constant 8 : index
      %c0_133 = arith.constant 0 : index
      %130 = vector.load %arg12[%c10, %c8_132, %c0_133] : memref<12x32x64xf32, #tpu.memory_space<vmem>>, vector<2x16x64xf32>
      tpu.vector_store %arg12[%c10, %c8_132, %c0_133], %129 {strides = array<i32>} : memref<12x32x64xf32, #tpu.memory_space<vmem>>, vector<2x16x64xf32>,
    } else {
    }
    %c1_i32_7 = arith.constant 1 : i32
    %12 = arith.cmpi slt, %arg1, %c1_i32_7 : i32
    %13 = arith.extui %12 : i1 to i32
    %c0_i32_8 = arith.constant 0 : i32
    %14 = arith.cmpi ne, %13, %c0_i32_8 : i32
    scf.if %14 {
      %c0_131 = arith.constant 0 : index
      %c0_132 = arith.constant 0 : index
      %c0_133 = arith.constant 0 : index
      %c0_134 = arith.constant 0 : index
      %129 = vector.load %arg5[%c0_131, %c0_132, %c0_133, %c0_134] : memref<1x1x16x64xf32, #tpu.memory_space<vmem>>, vector<1x1x16x64xf32>
      %130 = vector.shape_cast %129 : vector<1x1x16x64xf32> to vector<1x16x64xf32>
      %c10 = arith.constant 10 : index
      %c8_135 = arith.constant 8 : index
      %c0_136 = arith.constant 0 : index
      %131 = vector.load %arg12[%c10, %c8_135, %c0_136] : memref<12x32x64xf32, #tpu.memory_space<vmem>>, vector<1x16x64xf32>
      tpu.vector_store %arg12[%c10, %c8_135, %c0_136], %130 {strides = array<i32>} : memref<12x32x64xf32, #tpu.memory_space<vmem>>, vector<1x16x64xf32>,
      %c0_137 = arith.constant 0 : index
      %c0_138 = arith.constant 0 : index
      %c0_139 = arith.constant 0 : index
      %c0_140 = arith.constant 0 : index
      %132 = vector.load %arg6[%c0_137, %c0_138, %c0_139, %c0_140] : memref<1x1x16x64xf32, #tpu.memory_space<vmem>>, vector<1x1x16x64xf32>
      %133 = vector.shape_cast %132 : vector<1x1x16x64xf32> to vector<1x16x64xf32>
      %c11 = arith.constant 11 : index
      %c8_141 = arith.constant 8 : index
      %c0_142 = arith.constant 0 : index
      %134 = vector.load %arg12[%c11, %c8_141, %c0_142] : memref<12x32x64xf32, #tpu.memory_space<vmem>>, vector<1x16x64xf32>
      tpu.vector_store %arg12[%c11, %c8_141, %c0_142], %133 {strides = array<i32>} : memref<12x32x64xf32, #tpu.memory_space<vmem>>, vector<1x16x64xf32>,
    } else {
    }
    %c0_9 = arith.constant 0 : index
    %c0_10 = arith.constant 0 : index
    %c0_11 = arith.constant 0 : index
    %c0_12 = arith.constant 0 : index
    %15 = vector.load %arg2[%c0_9, %c0_10, %c0_11, %c0_12] : memref<1x8x16x64xf32, #tpu.memory_space<vmem>>, vector<1x8x16x64xf32>
    %16 = vector.shape_cast %15 : vector<1x8x16x64xf32> to vector<8x16x64xf32>
    %c2 = arith.constant 2 : index
    %c8 = arith.constant 8 : index
    %c0_13 = arith.constant 0 : index
    %17 = vector.load %arg12[%c2, %c8, %c0_13] : memref<12x32x64xf32, #tpu.memory_space<vmem>>, vector<8x16x64xf32>
    tpu.vector_store %arg12[%c2, %c8, %c0_13], %16 {strides = array<i32>} : memref<12x32x64xf32, #tpu.memory_space<vmem>>, vector<8x16x64xf32>,
    %c0_14 = arith.constant 0 : index
    %c7_15 = arith.constant 7 : index
    %c0_16 = arith.constant 0 : index
    %18 = vector.load %arg12[%c0_14, %c7_15, %c0_16] : memref<12x32x64xf32, #tpu.memory_space<vmem>>, vector<10x16x64xf32>
    %19 = vector.shape_cast %18 : vector<10x16x64xf32> to vector<160x64xf32>
    %c0_17 = arith.constant 0 : index
    %c0_18 = arith.constant 0 : index
    %20 = vector.load %arg7[%c0_17, %c0_18] : memref<576x64xf32, #tpu.memory_space<vmem>>, vector<64x64xf32>
    %cst_19 = arith.constant dense<0.000000e+00> : vector<160x64xf32>
    %21 = tpu.matmul %19, %20, %cst_19 {dimension_numbers = #tpu.dot_dimension_numbers<[1], [0], [0], [1], [0, 0, 1, 1], [], []>} : vector<160x64xf32>, vector<64x64xf32>, vector<160x64xf32> -> vector<160x64xf32>
    %c0_20 = arith.constant 0 : index
    %c8_21 = arith.constant 8 : index
    %c0_22 = arith.constant 0 : index
    %22 = vector.load %arg12[%c0_20, %c8_21, %c0_22] : memref<12x32x64xf32, #tpu.memory_space<vmem>>, vector<10x16x64xf32>
    %23 = vector.shape_cast %22 : vector<10x16x64xf32> to vector<160x64xf32>
    %c64 = arith.constant 64 : index
    %c0_23 = arith.constant 0 : index
    %24 = vector.load %arg7[%c64, %c0_23] : memref<576x64xf32, #tpu.memory_space<vmem>>, vector<64x64xf32>
    %cst_24 = arith.constant dense<0.000000e+00> : vector<160x64xf32>
    %25 = tpu.matmul %23, %24, %cst_24 {dimension_numbers = #tpu.dot_dimension_numbers<[1], [0], [0], [1], [0, 0, 1, 1], [], []>} : vector<160x64xf32>, vector<64x64xf32>, vector<160x64xf32> -> vector<160x64xf32>
    %26 = arith.addf %21, %25 : vector<160x64xf32>
    %c0_25 = arith.constant 0 : index
    %c9 = arith.constant 9 : index
    %c0_26 = arith.constant 0 : index
    %27 = vector.load %arg12[%c0_25, %c9, %c0_26] : memref<12x32x64xf32, #tpu.memory_space<vmem>>, vector<10x16x64xf32>
    %28 = vector.shape_cast %27 : vector<10x16x64xf32> to vector<160x64xf32>
    %c128 = arith.constant 128 : index
    %c0_27 = arith.constant 0 : index
    %29 = vector.load %arg7[%c128, %c0_27] : memref<576x64xf32, #tpu.memory_space<vmem>>, vector<64x64xf32>
    %cst_28 = arith.constant dense<0.000000e+00> : vector<160x64xf32>
    %30 = tpu.matmul %28, %29, %cst_28 {dimension_numbers = #tpu.dot_dimension_numbers<[1], [0], [0], [1], [0, 0, 1, 1], [], []>} : vector<160x64xf32>, vector<64x64xf32>, vector<160x64xf32> -> vector<160x64xf32>
    %31 = arith.addf %26, %30 : vector<160x64xf32>
    %c1 = arith.constant 1 : index
    %c7_29 = arith.constant 7 : index
    %c0_30 = arith.constant 0 : index
    %32 = vector.load %arg12[%c1, %c7_29, %c0_30] : memref<12x32x64xf32, #tpu.memory_space<vmem>>, vector<10x16x64xf32>
    %33 = vector.shape_cast %32 : vector<10x16x64xf32> to vector<160x64xf32>
    %c192 = arith.constant 192 : index
    %c0_31 = arith.constant 0 : index
    %34 = vector.load %arg7[%c192, %c0_31] : memref<576x64xf32, #tpu.memory_space<vmem>>, vector<64x64xf32>
    %cst_32 = arith.constant dense<0.000000e+00> : vector<160x64xf32>
    %35 = tpu.matmul %33, %34, %cst_32 {dimension_numbers = #tpu.dot_dimension_numbers<[1], [0], [0], [1], [0, 0, 1, 1], [], []>} : vector<160x64xf32>, vector<64x64xf32>, vector<160x64xf32> -> vector<160x64xf32>
    %36 = arith.addf %31, %35 : vector<160x64xf32>
    %c1_33 = arith.constant 1 : index
    %c8_34 = arith.constant 8 : index
    %c0_35 = arith.constant 0 : index
    %37 = vector.load %arg12[%c1_33, %c8_34, %c0_35] : memref<12x32x64xf32, #tpu.memory_space<vmem>>, vector<10x16x64xf32>
    %38 = vector.shape_cast %37 : vector<10x16x64xf32> to vector<160x64xf32>
    %c256 = arith.constant 256 : index
    %c0_36 = arith.constant 0 : index
    %39 = vector.load %arg7[%c256, %c0_36] : memref<576x64xf32, #tpu.memory_space<vmem>>, vector<64x64xf32>
    %cst_37 = arith.constant dense<0.000000e+00> : vector<160x64xf32>
    %40 = tpu.matmul %38, %39, %cst_37 {dimension_numbers = #tpu.dot_dimension_numbers<[1], [0], [0], [1], [0, 0, 1, 1], [], []>} : vector<160x64xf32>, vector<64x64xf32>, vector<160x64xf32> -> vector<160x64xf32>
    %41 = arith.addf %36, %40 : vector<160x64xf32>
    %c1_38 = arith.constant 1 : index
    %c9_39 = arith.constant 9 : index
    %c0_40 = arith.constant 0 : index
    %42 = vector.load %arg12[%c1_38, %c9_39, %c0_40] : memref<12x32x64xf32, #tpu.memory_space<vmem>>, vector<10x16x64xf32>
    %43 = vector.shape_cast %42 : vector<10x16x64xf32> to vector<160x64xf32>
    %c320 = arith.constant 320 : index
    %c0_41 = arith.constant 0 : index
    %44 = vector.load %arg7[%c320, %c0_41] : memref<576x64xf32, #tpu.memory_space<vmem>>, vector<64x64xf32>
    %cst_42 = arith.constant dense<0.000000e+00> : vector<160x64xf32>
    %45 = tpu.matmul %43, %44, %cst_42 {dimension_numbers = #tpu.dot_dimension_numbers<[1], [0], [0], [1], [0, 0, 1, 1], [], []>} : vector<160x64xf32>, vector<64x64xf32>, vector<160x64xf32> -> vector<160x64xf32>
    %46 = arith.addf %41, %45 : vector<160x64xf32>
    %c2_43 = arith.constant 2 : index
    %c7_44 = arith.constant 7 : index
    %c0_45 = arith.constant 0 : index
    %47 = vector.load %arg12[%c2_43, %c7_44, %c0_45] : memref<12x32x64xf32, #tpu.memory_space<vmem>>, vector<10x16x64xf32>
    %48 = vector.shape_cast %47 : vector<10x16x64xf32> to vector<160x64xf32>
    %c384 = arith.constant 384 : index
    %c0_46 = arith.constant 0 : index
    %49 = vector.load %arg7[%c384, %c0_46] : memref<576x64xf32, #tpu.memory_space<vmem>>, vector<64x64xf32>
    %cst_47 = arith.constant dense<0.000000e+00> : vector<160x64xf32>
    %50 = tpu.matmul %48, %49, %cst_47 {dimension_numbers = #tpu.dot_dimension_numbers<[1], [0], [0], [1], [0, 0, 1, 1], [], []>} : vector<160x64xf32>, vector<64x64xf32>, vector<160x64xf32> -> vector<160x64xf32>
    %51 = arith.addf %46, %50 : vector<160x64xf32>
    %c2_48 = arith.constant 2 : index
    %c8_49 = arith.constant 8 : index
    %c0_50 = arith.constant 0 : index
    %52 = vector.load %arg12[%c2_48, %c8_49, %c0_50] : memref<12x32x64xf32, #tpu.memory_space<vmem>>, vector<10x16x64xf32>
    %53 = vector.shape_cast %52 : vector<10x16x64xf32> to vector<160x64xf32>
    %c448 = arith.constant 448 : index
    %c0_51 = arith.constant 0 : index
    %54 = vector.load %arg7[%c448, %c0_51] : memref<576x64xf32, #tpu.memory_space<vmem>>, vector<64x64xf32>
    %cst_52 = arith.constant dense<0.000000e+00> : vector<160x64xf32>
    %55 = tpu.matmul %53, %54, %cst_52 {dimension_numbers = #tpu.dot_dimension_numbers<[1], [0], [0], [1], [0, 0, 1, 1], [], []>} : vector<160x64xf32>, vector<64x64xf32>, vector<160x64xf32> -> vector<160x64xf32>
    %56 = arith.addf %51, %55 : vector<160x64xf32>
    %c2_53 = arith.constant 2 : index
    %c9_54 = arith.constant 9 : index
    %c0_55 = arith.constant 0 : index
    %57 = vector.load %arg12[%c2_53, %c9_54, %c0_55] : memref<12x32x64xf32, #tpu.memory_space<vmem>>, vector<10x16x64xf32>
    %58 = vector.shape_cast %57 : vector<10x16x64xf32> to vector<160x64xf32>
    %c512 = arith.constant 512 : index
    %c0_56 = arith.constant 0 : index
    %59 = vector.load %arg7[%c512, %c0_56] : memref<576x64xf32, #tpu.memory_space<vmem>>, vector<64x64xf32>
    %cst_57 = arith.constant dense<0.000000e+00> : vector<160x64xf32>
    %60 = tpu.matmul %58, %59, %cst_57 {dimension_numbers = #tpu.dot_dimension_numbers<[1], [0], [0], [1], [0, 0, 1, 1], [], []>} : vector<160x64xf32>, vector<64x64xf32>, vector<160x64xf32> -> vector<160x64xf32>
    %61 = arith.addf %56, %60 : vector<160x64xf32>
    %c0_58 = arith.constant 0 : index
    %c0_59 = arith.constant 0 : index
    %62 = vector.load %arg8[%c0_58, %c0_59] : memref<1x64xf32, #tpu.memory_space<vmem>>, vector<1x64xf32>
    %63 = vector.broadcast %62 : vector<1x64xf32> to vector<160x64xf32>
    %64 = arith.addf %61, %63 : vector<160x64xf32>
    %cst_60 = arith.constant 0.000000e+00 : f32
    %65 = vector.broadcast %cst_60 : f32 to vector<160x64xf32>
    %66 = arith.maximumf %64, %65 : vector<160x64xf32>
    %67 = vector.shape_cast %66 : vector<160x64xf32> to vector<10x16x64xf32>
    %c1_61 = arith.constant 1 : index
    %c8_62 = arith.constant 8 : index
    %c0_63 = arith.constant 0 : index
    %68 = vector.load %arg12[%c1_61, %c8_62, %c0_63] : memref<12x32x64xf32, #tpu.memory_space<vmem>>, vector<10x16x64xf32>
    tpu.vector_store %arg12[%c1_61, %c8_62, %c0_63], %67 {strides = array<i32>} : memref<12x32x64xf32, #tpu.memory_space<vmem>>, vector<10x16x64xf32>,
    %c0_i32_64 = arith.constant 0 : i32
    %69 = arith.cmpi eq, %arg1, %c0_i32_64 : i32
    %70 = arith.extui %69 : i1 to i32
    %c0_i32_65 = arith.constant 0 : i32
    %71 = arith.cmpi ne, %70, %c0_i32_65 : i32
    scf.if %71 {
      %cst_131 = arith.constant 0.000000e+00 : f32
      %129 = vector.broadcast %cst_131 : f32 to vector<1x16x64xf32>
      %c1_132 = arith.constant 1 : index
      %c8_133 = arith.constant 8 : index
      %c0_134 = arith.constant 0 : index
      %130 = vector.load %arg12[%c1_132, %c8_133, %c0_134] : memref<12x32x64xf32, #tpu.memory_space<vmem>>, vector<1x16x64xf32>
      tpu.vector_store %arg12[%c1_132, %c8_133, %c0_134], %129 {strides = array<i32>} : memref<12x32x64xf32, #tpu.memory_space<vmem>>, vector<1x16x64xf32>,
    } else {
    }
    %c1_i32_66 = arith.constant 1 : i32
    %72 = arith.cmpi eq, %arg1, %c1_i32_66 : i32
    %73 = arith.extui %72 : i1 to i32
    %c0_i32_67 = arith.constant 0 : i32
    %74 = arith.cmpi ne, %73, %c0_i32_67 : i32
    scf.if %74 {
      %cst_131 = arith.constant 0.000000e+00 : f32
      %129 = vector.broadcast %cst_131 : f32 to vector<1x16x64xf32>
      %c10 = arith.constant 10 : index
      %c8_132 = arith.constant 8 : index
      %c0_133 = arith.constant 0 : index
      %130 = vector.load %arg12[%c10, %c8_132, %c0_133] : memref<12x32x64xf32, #tpu.memory_space<vmem>>, vector<1x16x64xf32>
      tpu.vector_store %arg12[%c10, %c8_132, %c0_133], %129 {strides = array<i32>} : memref<12x32x64xf32, #tpu.memory_space<vmem>>, vector<1x16x64xf32>,
    } else {
    }
    %c1_68 = arith.constant 1 : index
    %c7_69 = arith.constant 7 : index
    %c0_70 = arith.constant 0 : index
    %75 = vector.load %arg12[%c1_68, %c7_69, %c0_70] : memref<12x32x64xf32, #tpu.memory_space<vmem>>, vector<8x16x64xf32>
    %76 = vector.shape_cast %75 : vector<8x16x64xf32> to vector<128x64xf32>
    %c0_71 = arith.constant 0 : index
    %c0_72 = arith.constant 0 : index
    %77 = vector.load %arg9[%c0_71, %c0_72] : memref<576x64xf32, #tpu.memory_space<vmem>>, vector<64x64xf32>
    %cst_73 = arith.constant dense<0.000000e+00> : vector<128x64xf32>
    %78 = tpu.matmul %76, %77, %cst_73 {dimension_numbers = #tpu.dot_dimension_numbers<[1], [0], [0], [1], [0, 0, 1, 1], [], []>} : vector<128x64xf32>, vector<64x64xf32>, vector<128x64xf32> -> vector<128x64xf32>
    %c1_74 = arith.constant 1 : index
    %c8_75 = arith.constant 8 : index
    %c0_76 = arith.constant 0 : index
    %79 = vector.load %arg12[%c1_74, %c8_75, %c0_76] : memref<12x32x64xf32, #tpu.memory_space<vmem>>, vector<8x16x64xf32>
    %80 = vector.shape_cast %79 : vector<8x16x64xf32> to vector<128x64xf32>
    %c64_77 = arith.constant 64 : index
    %c0_78 = arith.constant 0 : index
    %81 = vector.load %arg9[%c64_77, %c0_78] : memref<576x64xf32, #tpu.memory_space<vmem>>, vector<64x64xf32>
    %cst_79 = arith.constant dense<0.000000e+00> : vector<128x64xf32>
    %82 = tpu.matmul %80, %81, %cst_79 {dimension_numbers = #tpu.dot_dimension_numbers<[1], [0], [0], [1], [0, 0, 1, 1], [], []>} : vector<128x64xf32>, vector<64x64xf32>, vector<128x64xf32> -> vector<128x64xf32>
    %83 = arith.addf %78, %82 : vector<128x64xf32>
    %c1_80 = arith.constant 1 : index
    %c9_81 = arith.constant 9 : index
    %c0_82 = arith.constant 0 : index
    %84 = vector.load %arg12[%c1_80, %c9_81, %c0_82] : memref<12x32x64xf32, #tpu.memory_space<vmem>>, vector<8x16x64xf32>
    %85 = vector.shape_cast %84 : vector<8x16x64xf32> to vector<128x64xf32>
    %c128_83 = arith.constant 128 : index
    %c0_84 = arith.constant 0 : index
    %86 = vector.load %arg9[%c128_83, %c0_84] : memref<576x64xf32, #tpu.memory_space<vmem>>, vector<64x64xf32>
    %cst_85 = arith.constant dense<0.000000e+00> : vector<128x64xf32>
    %87 = tpu.matmul %85, %86, %cst_85 {dimension_numbers = #tpu.dot_dimension_numbers<[1], [0], [0], [1], [0, 0, 1, 1], [], []>} : vector<128x64xf32>, vector<64x64xf32>, vector<128x64xf32> -> vector<128x64xf32>
    %88 = arith.addf %83, %87 : vector<128x64xf32>
    %c2_86 = arith.constant 2 : index
    %c7_87 = arith.constant 7 : index
    %c0_88 = arith.constant 0 : index
    %89 = vector.load %arg12[%c2_86, %c7_87, %c0_88] : memref<12x32x64xf32, #tpu.memory_space<vmem>>, vector<8x16x64xf32>
    %90 = vector.shape_cast %89 : vector<8x16x64xf32> to vector<128x64xf32>
    %c192_89 = arith.constant 192 : index
    %c0_90 = arith.constant 0 : index
    %91 = vector.load %arg9[%c192_89, %c0_90] : memref<576x64xf32, #tpu.memory_space<vmem>>, vector<64x64xf32>
    %cst_91 = arith.constant dense<0.000000e+00> : vector<128x64xf32>
    %92 = tpu.matmul %90, %91, %cst_91 {dimension_numbers = #tpu.dot_dimension_numbers<[1], [0], [0], [1], [0, 0, 1, 1], [], []>} : vector<128x64xf32>, vector<64x64xf32>, vector<128x64xf32> -> vector<128x64xf32>
    %93 = arith.addf %88, %92 : vector<128x64xf32>
    %c2_92 = arith.constant 2 : index
    %c8_93 = arith.constant 8 : index
    %c0_94 = arith.constant 0 : index
    %94 = vector.load %arg12[%c2_92, %c8_93, %c0_94] : memref<12x32x64xf32, #tpu.memory_space<vmem>>, vector<8x16x64xf32>
    %95 = vector.shape_cast %94 : vector<8x16x64xf32> to vector<128x64xf32>
    %c256_95 = arith.constant 256 : index
    %c0_96 = arith.constant 0 : index
    %96 = vector.load %arg9[%c256_95, %c0_96] : memref<576x64xf32, #tpu.memory_space<vmem>>, vector<64x64xf32>
    %cst_97 = arith.constant dense<0.000000e+00> : vector<128x64xf32>
    %97 = tpu.matmul %95, %96, %cst_97 {dimension_numbers = #tpu.dot_dimension_numbers<[1], [0], [0], [1], [0, 0, 1, 1], [], []>} : vector<128x64xf32>, vector<64x64xf32>, vector<128x64xf32> -> vector<128x64xf32>
    %98 = arith.addf %93, %97 : vector<128x64xf32>
    %c2_98 = arith.constant 2 : index
    %c9_99 = arith.constant 9 : index
    %c0_100 = arith.constant 0 : index
    %99 = vector.load %arg12[%c2_98, %c9_99, %c0_100] : memref<12x32x64xf32, #tpu.memory_space<vmem>>, vector<8x16x64xf32>
    %100 = vector.shape_cast %99 : vector<8x16x64xf32> to vector<128x64xf32>
    %c320_101 = arith.constant 320 : index
    %c0_102 = arith.constant 0 : index
    %101 = vector.load %arg9[%c320_101, %c0_102] : memref<576x64xf32, #tpu.memory_space<vmem>>, vector<64x64xf32>
    %cst_103 = arith.constant dense<0.000000e+00> : vector<128x64xf32>
    %102 = tpu.matmul %100, %101, %cst_103 {dimension_numbers = #tpu.dot_dimension_numbers<[1], [0], [0], [1], [0, 0, 1, 1], [], []>} : vector<128x64xf32>, vector<64x64xf32>, vector<128x64xf32> -> vector<128x64xf32>
    %103 = arith.addf %98, %102 : vector<128x64xf32>
    %c3 = arith.constant 3 : index
    %c7_104 = arith.constant 7 : index
    %c0_105 = arith.constant 0 : index
    %104 = vector.load %arg12[%c3, %c7_104, %c0_105] : memref<12x32x64xf32, #tpu.memory_space<vmem>>, vector<8x16x64xf32>
    %105 = vector.shape_cast %104 : vector<8x16x64xf32> to vector<128x64xf32>
    %c384_106 = arith.constant 384 : index
    %c0_107 = arith.constant 0 : index
    %106 = vector.load %arg9[%c384_106, %c0_107] : memref<576x64xf32, #tpu.memory_space<vmem>>, vector<64x64xf32>
    %cst_108 = arith.constant dense<0.000000e+00> : vector<128x64xf32>
    %107 = tpu.matmul %105, %106, %cst_108 {dimension_numbers = #tpu.dot_dimension_numbers<[1], [0], [0], [1], [0, 0, 1, 1], [], []>} : vector<128x64xf32>, vector<64x64xf32>, vector<128x64xf32> -> vector<128x64xf32>
    %108 = arith.addf %103, %107 : vector<128x64xf32>
    %c3_109 = arith.constant 3 : index
    %c8_110 = arith.constant 8 : index
    %c0_111 = arith.constant 0 : index
    %109 = vector.load %arg12[%c3_109, %c8_110, %c0_111] : memref<12x32x64xf32, #tpu.memory_space<vmem>>, vector<8x16x64xf32>
    %110 = vector.shape_cast %109 : vector<8x16x64xf32> to vector<128x64xf32>
    %c448_112 = arith.constant 448 : index
    %c0_113 = arith.constant 0 : index
    %111 = vector.load %arg9[%c448_112, %c0_113] : memref<576x64xf32, #tpu.memory_space<vmem>>, vector<64x64xf32>
    %cst_114 = arith.constant dense<0.000000e+00> : vector<128x64xf32>
    %112 = tpu.matmul %110, %111, %cst_114 {dimension_numbers = #tpu.dot_dimension_numbers<[1], [0], [0], [1], [0, 0, 1, 1], [], []>} : vector<128x64xf32>, vector<64x64xf32>, vector<128x64xf32> -> vector<128x64xf32>
    %113 = arith.addf %108, %112 : vector<128x64xf32>
    %c3_115 = arith.constant 3 : index
    %c9_116 = arith.constant 9 : index
    %c0_117 = arith.constant 0 : index
    %114 = vector.load %arg12[%c3_115, %c9_116, %c0_117] : memref<12x32x64xf32, #tpu.memory_space<vmem>>, vector<8x16x64xf32>
    %115 = vector.shape_cast %114 : vector<8x16x64xf32> to vector<128x64xf32>
    %c512_118 = arith.constant 512 : index
    %c0_119 = arith.constant 0 : index
    %116 = vector.load %arg9[%c512_118, %c0_119] : memref<576x64xf32, #tpu.memory_space<vmem>>, vector<64x64xf32>
    %cst_120 = arith.constant dense<0.000000e+00> : vector<128x64xf32>
    %117 = tpu.matmul %115, %116, %cst_120 {dimension_numbers = #tpu.dot_dimension_numbers<[1], [0], [0], [1], [0, 0, 1, 1], [], []>} : vector<128x64xf32>, vector<64x64xf32>, vector<128x64xf32> -> vector<128x64xf32>
    %118 = arith.addf %113, %117 : vector<128x64xf32>
    %c0_121 = arith.constant 0 : index
    %c0_122 = arith.constant 0 : index
    %119 = vector.load %arg10[%c0_121, %c0_122] : memref<1x64xf32, #tpu.memory_space<vmem>>, vector<1x64xf32>
    %120 = vector.broadcast %119 : vector<1x64xf32> to vector<128x64xf32>
    %121 = arith.addf %118, %120 : vector<128x64xf32>
    %122 = vector.shape_cast %121 : vector<128x64xf32> to vector<8x16x64xf32>
    %c0_123 = arith.constant 0 : index
    %c0_124 = arith.constant 0 : index
    %c0_125 = arith.constant 0 : index
    %c0_126 = arith.constant 0 : index
    %123 = vector.load %arg2[%c0_123, %c0_124, %c0_125, %c0_126] : memref<1x8x16x64xf32, #tpu.memory_space<vmem>>, vector<1x8x16x64xf32>
    %124 = vector.shape_cast %123 : vector<1x8x16x64xf32> to vector<8x16x64xf32>
    %125 = arith.addf %124, %122 : vector<8x16x64xf32>
    %c0_127 = arith.constant 0 : index
    %c0_128 = arith.constant 0 : index
    %c0_129 = arith.constant 0 : index
    %c0_130 = arith.constant 0 : index
    %126 = vector.load %arg11[%c0_127, %c0_128, %c0_129, %c0_130] : memref<1x8x16x64xf32, #tpu.memory_space<vmem>>, vector<1x8x16x64xf32>
    %127 = vector.shape_cast %126 : vector<1x8x16x64xf32> to vector<8x16x64xf32>
    %128 = vector.shape_cast %125 : vector<8x16x64xf32> to vector<1x8x16x64xf32>
    tpu.vector_store %arg11[%c0_127, %c0_128, %c0_129, %c0_130], %128 {strides = array<i32>} : memref<1x8x16x64xf32, #tpu.memory_space<vmem>>, vector<1x8x16x64xf32>,
    return
  }
  func.func @transform_0(%arg0: i32, %arg1: i32) -> (i32, i32, i32, i32) {
    %c0_i32 = arith.constant 0 : i32
    %c0_i32_0 = arith.constant 0 : i32
    %c0_i32_1 = arith.constant 0 : i32
    return %arg0, %arg1, %c0_i32, %c0_i32_0 : i32, i32, i32, i32
  }
  func.func @transform_1(%arg0: i32, %arg1: i32) -> (i32, i32, i32, i32) {
    %c8_i32 = arith.constant 8 : i32
    %0 = arith.muli %arg1, %c8_i32 : i32
    %c2_i32 = arith.constant 2 : i32
    %1 = arith.subi %0, %c2_i32 : i32
    %c0_i32 = arith.constant 0 : i32
    %2 = arith.maxsi %1, %c0_i32 : i32
    %c0_i32_0 = arith.constant 0 : i32
    %c0_i32_1 = arith.constant 0 : i32
    %c0_i32_2 = arith.constant 0 : i32
    return %arg0, %2, %c0_i32_0, %c0_i32_1 : i32, i32, i32, i32
  }
  func.func @transform_2(%arg0: i32, %arg1: i32) -> (i32, i32, i32, i32) {
    %c8_i32 = arith.constant 8 : i32
    %0 = arith.muli %arg1, %c8_i32 : i32
    %c1_i32 = arith.constant 1 : i32
    %1 = arith.subi %0, %c1_i32 : i32
    %c0_i32 = arith.constant 0 : i32
    %2 = arith.maxsi %1, %c0_i32 : i32
    %c0_i32_0 = arith.constant 0 : i32
    %c0_i32_1 = arith.constant 0 : i32
    %c0_i32_2 = arith.constant 0 : i32
    return %arg0, %2, %c0_i32_0, %c0_i32_1 : i32, i32, i32, i32
  }
  func.func @transform_3(%arg0: i32, %arg1: i32) -> (i32, i32, i32, i32) {
    %c1_i32 = arith.constant 1 : i32
    %0 = arith.addi %arg1, %c1_i32 : i32
    %c8_i32 = arith.constant 8 : i32
    %1 = arith.muli %0, %c8_i32 : i32
    %c15_i32 = arith.constant 15 : i32
    %2 = arith.minsi %1, %c15_i32 : i32
    %c0_i32 = arith.constant 0 : i32
    %c0_i32_0 = arith.constant 0 : i32
    %c0_i32_1 = arith.constant 0 : i32
    return %arg0, %2, %c0_i32, %c0_i32_0 : i32, i32, i32, i32
  }
  func.func @transform_4(%arg0: i32, %arg1: i32) -> (i32, i32, i32, i32) {
    %c1_i32 = arith.constant 1 : i32
    %0 = arith.addi %arg1, %c1_i32 : i32
    %c8_i32 = arith.constant 8 : i32
    %1 = arith.muli %0, %c8_i32 : i32
    %c1_i32_0 = arith.constant 1 : i32
    %2 = arith.addi %1, %c1_i32_0 : i32
    %c15_i32 = arith.constant 15 : i32
    %3 = arith.minsi %2, %c15_i32 : i32
    %c0_i32 = arith.constant 0 : i32
    %c0_i32_1 = arith.constant 0 : i32
    %c0_i32_2 = arith.constant 0 : i32
    return %arg0, %3, %c0_i32, %c0_i32_1 : i32, i32, i32, i32
  }
  func.func @transform_5(%arg0: i32, %arg1: i32) -> (i32, i32) {
    %c0_i32 = arith.constant 0 : i32
    %c0_i32_0 = arith.constant 0 : i32
    %c0_i32_1 = arith.constant 0 : i32
    return %c0_i32, %c0_i32_0 : i32, i32
  }
  func.func @transform_6(%arg0: i32, %arg1: i32) -> (i32, i32) {
    %c0_i32 = arith.constant 0 : i32
    %c0_i32_0 = arith.constant 0 : i32
    %c0_i32_1 = arith.constant 0 : i32
    return %c0_i32, %c0_i32_0 : i32, i32
  }
  func.func @transform_7(%arg0: i32, %arg1: i32) -> (i32, i32) {
    %c0_i32 = arith.constant 0 : i32
    %c0_i32_0 = arith.constant 0 : i32
    %c0_i32_1 = arith.constant 0 : i32
    return %c0_i32, %c0_i32_0 : i32, i32
  }
  func.func @transform_8(%arg0: i32, %arg1: i32) -> (i32, i32) {
    %c0_i32 = arith.constant 0 : i32
    %c0_i32_0 = arith.constant 0 : i32
    %c0_i32_1 = arith.constant 0 : i32
    return %c0_i32, %c0_i32_0 : i32, i32
  }
  func.func @transform_9(%arg0: i32, %arg1: i32) -> (i32, i32, i32, i32) {
    %c0_i32 = arith.constant 0 : i32
    %c0_i32_0 = arith.constant 0 : i32
    %c0_i32_1 = arith.constant 0 : i32
    return %arg0, %arg1, %c0_i32, %c0_i32_0 : i32, i32, i32, i32
  }
}

</mosaic_0001>

<bundles_post_ra>
// kernel: tpu_custom_call.1
= control target key start
LH: loop header
LB: loop body
LE: loop exit
PB: predicated region body
PF: predicated region fallthrough
CT: control target
= control target key end

     0   :  { %s9914_s0 = inlined_call_operand.vmem [shape: f32[2,16,16,64], index: 0, kind: input, shape index: {}]   ;;  %s9915_s1 = inlined_call_operand.vmem [shape: f32[2,16,16,64], index: 1, kind: input, shape index: {}]   ;;  %s9916_s2 = inlined_call_operand.vmem [shape: f32[2,16,16,64], index: 2, kind: input, shape index: {}]   ;;  %s9917_s3 = inlined_call_operand.hbm [shape: f32[2,16,16,64], index: 3, kind: input, shape index: {}]   ;;  %s9918_s4 = inlined_call_operand.hbm [shape: f32[2,16,16,64], index: 4, kind: input, shape index: {}]   ;;  %s9919_s5 = inlined_call_operand.vmem [shape: f32[576,64], index: 5, kind: input, shape index: {}]   ;;  %s9920_s6 = inlined_call_operand.vmem [shape: f32[1,64], index: 6, kind: input, shape index: {}]   ;;  %s9921_s7 = inlined_call_operand.vmem [shape: f32[576,64], index: 7, kind: input, shape index: {}]   ;;  %s9922_s8 = inlined_call_operand.vmem [shape: f32[1,64], index: 8, kind: input, shape index: {}]   ;;  %s9923_s9 = inlined_call_operand.hbm [shape: f32[2,16,16,64], index: 9, kind: output, shape index: {}]  }
   0x1   :  { %9939 = sst [smem:[#allocation46_spill]] %s9914_s0 }
   0x2   :  { %9940 = sst [smem:[#allocation47_spill]] %s9915_s1 }
   0x3   :  { %9941 = sst [smem:[#allocation48_spill]] %s9916_s2 }
   0x4   :  { %9942 = sst [smem:[#allocation49_spill]] %s9917_s3 }
   0x5   :  { %9943 = sst [smem:[#allocation50_spill]] %s9918_s4 }
   0x6   :  { %9944 = sst [smem:[#allocation51_spill]] %s9919_s5 }
   0x7   :  { %9945 = sst [smem:[#allocation52_spill]] %s9920_s6 }
   0x8   :  { %9946 = sst [smem:[#allocation53_spill]] %s9921_s7 }
   0x9   :  { %9947 = sst [smem:[#allocation54_spill]] %s9922_s8 }
   0xa   :  { %9948 = sst [smem:[#allocation55_spill]] %s9923_s9 }
   0xb   :  { %14 = vsyncpa [#allocation4], 0 }
   0xc   :  { %16 = vsyncpa [#allocation4 + $0x1], 0 }
   0xd   :  { %17 = vsyncpa [#allocation7], 0 }
   0xe   :  { %19 = vsyncpa [#allocation7 + $0x1], 0 }
   0xf   :  { %20 = vsyncpa [#allocation5], 0 }
  0x10   :  { %22 = vsyncpa [#allocation5 + $0x1], 0  ;;  %s7625_s30 = smov 0   ;;  %s7627_s10 = smov 0  }
  0x11   :  { %s7629_s11 = smov 0   ;;  %s7631_s12 = smov 0  }
  0x12   :  { %s7633_s13 = smov 0   ;;  %s7635_s14 = smov 0  }
  0x13   :  { %s7637_s15 = smov 0   ;;  %s7639_s16 = smov 0  }
  0x14   :  { %s7641_s17 = smov 0   ;;  %s7643_s18 = smov 0  }
  0x15   :  { %s7645_s19 = smov 0   ;;  %s7647_s20 = smov 0  }
  0x16   :  { %s7649_s21 = smov 0   ;;  %s7651_s22 = smov 0  }
  0x17 LB: > { %9949 = sst [smem:[#allocation12_spill]] %s7509_s30  ;;  %s37_s25 = sadd.s32 1, %s7553_s20  ;;  %s7561_s22 = sphi %s7651_s22, %s28_s22   ;;  %s7557_s21 = sphi %s7649_s21, %s10076_s21   ;;  %s7553_s20 = sphi %s7647_s20, %s10075_s20   ;;  %s7549_s19 = sphi %s7645_s19, %s10074_s19   ;;  %s7545_s18 = sphi %s7643_s18, %s10073_s18   ;;  %s7541_s17 = sphi %s7641_s17, %s10072_s17   ;;  %s7537_s16 = sphi %s7639_s16, %s10084_s16   ;;  %s7533_s15 = sphi %s7637_s15, %s10083_s15   ;;  %s7529_s14 = sphi %s7635_s14, %s10082_s14   ;;  %s7525_s13 = sphi %s7633_s13, %s10081_s13   ;;  %s7521_s12 = sphi %s7631_s12, %s10080_s12   ;;  %s7517_s11 = sphi %s7629_s11, %s10070_s11   ;;  %s7513_s10 = sphi %s7627_s10, %s10079_s10   ;;  %s7509_s30 = sphi %s7625_s30, %s10078_s30  }
  0x18   : > { %9950 = sst [smem:[#allocation13_spill]] %s7517_s11  ;;  %s40_s26 = sadd.s32 1, %s7557_s21 }
  0x19   : > { %9951 = sst [smem:[#allocation14_spill]] %s7541_s17  ;;  %p38_p0 = scmp.ge.s32.totalorder %s37_s25, 2 }
  0x1a   : > { %9952 = sst [smem:[#allocation15_spill]] %s7549_s19  ;;  %s5942_s27 = sshll.u32 %s7553_s20, 3 }
  0x1b   : > { %9953 = sst [smem:[#allocation16_spill]] %s7553_s20  ;;  %s7700_s28 = sadd.s32 8, %s5942_s27 }
  0x1c   : > { %9954 = sst [smem:[#allocation17_spill]] %s7557_s21  ;;  %s157_s29 = sadd.s32 1, %s7541_s17 }
  0x1d   : > { %s10086_s25 = smov (%p38_p0, %s37_s25), 0  ;;  %s10088_s26 = smov (!%p38_p0, %s40_s26), %s7557_s21 }
  0x1e   : > { %9955 = sst [smem:[#allocation18_spill]] %s10086_s25  ;;  %p146_p1 = scmp.lt.s32.totalorder %s7700_s28, 15 }
  0x1f   : > { %s5944_s24 = sshll.u32 %s10086_s25, 3  ;;  %p42_p2 = scmp.ge.s32.totalorder %s10088_s26, 2 }
  0x20   : > { %s7708_s23 = sadd.s32 8, %s5944_s24  ;;  %p164_p4 = scmp.ne.s32.totalorder %s7541_s17, %s7537_s16 }
  0x21   : > { %s7711_s27 = scalar_select %p146_p1, %s7700_s28, 15 }
  0x22   : > { %s10090_s26 = smov (%p42_p2, %s10088_s26), 0  ;;  %p150_p3 = scmp.lt.s32.totalorder %s7708_s23, 15 }
  0x23   : > { %9956 = sst [smem:[#allocation19_spill]] %s10090_s26  ;;  %s7720_s9 = ssub.s32 %s7557_s21, %s10090_s26 }
  0x24   : > { %p165_p5 = scmp.eq.s32.totalorder %s7561_s22, 0  ;;  %p170_p7 = scmp.ne.s32.totalorder %s7537_s16, %s7533_s15 }
  0x25   : > { %s151_s24 = scalar_select %p150_p3, %s7708_s23, 15 }
  0x26   : > { %p7726_p6 = por %p165_p5, %p164_p4  ;;  %s9958_s6 = sadd.s32 4294967295, %s7561_s22  }
  0x27   : > { %s153_s7 = ssub.s32 %s7711_s27, %s151_s24  ;;  %p7735_p8 = scmp.eq.s32.totalorder %s9958_s6, 0 }
  0x28   : > { %s154_s5 = sor.u32 %s153_s7, %s7720_s9  ;;  %s303_s2 = ssub.s32 %s7553_s20, %s10086_s25 }
  0x29   : > { %p155_p9 = scmp.eq.s32.totalorder %s154_s5, 0  ;;  %p7744_p10 = por %p7735_p8, %p170_p7 }
  0x2a   : > { %s304_s15 = sor.u32 %s303_s2, %s7720_s9  ;;  %s307_s24 = sadd.s32 1, %s7517_s11 }
  0x2b   : > { %s7751_s0 = scalar_select %p155_p9, %s7541_s17, %s157_s29  }
  0x2c   : > { %p305_p11 = scmp.eq.s32.totalorder %s304_s15, 0  ;;  %p317_p12 = scmp.ne.s32.totalorder %s7517_s11, %s7513_s10 }
  0x2d   : > { %9961 = sst [smem:[#allocation20_spill]] %s7751_s0  ;;  %p318_p13 = scmp.eq.s32.totalorder %s9958_s6, 3 }
  0x2e   : > { %p323_p0 = scmp.ne.s32.totalorder %s7513_s10, %s7509_s30  ;;  %s9964_s25 = sadd.s32 4294967294, %s7561_s22  }
  0x2f   : > { %s7760_s5 = scalar_select %p305_p11, %s7517_s11, %s307_s24  }
  0x30   : > { %p7762_p1 = por %p318_p13, %p317_p12  ;;  %p324_p2 = scmp.eq.s32.totalorder %s9964_s25, 3 }
  0x31   : > { %9962 = sst [smem:[#allocation21_spill]] %s7760_s5  ;;  %p9935_p3 = scmp.lt.s32.totalorder %s7561_s22, 4 }
  0x32   : > { %s9963_s7 = scalar_select %p7762_p1, 1, 0 }
  0x33   : > { %p7769_p4 = por %p324_p2, %p323_p0  ;;  %s410_s29 = sand.u32 1, %s7541_s17  }
  0x34   : > { %s5565_s15 = sshll.u32 %s410_s29, 4  ;;  %s5567_s20 = sshll.u32 %s7711_s27, 1 }
  0x35   : > { %s9965_s2 = scalar_select %p7769_p4, 1, 0 }
  0x36   : > { %s5568_s6 = sshll.u32 %s7557_s21, 5  ;;  %s414_s0 = scalar_lea.vmem [#allocation3], %s5565_s15 }
  0x37   : > { %9966 = sst [smem:[#allocation22_spill]] %s9965_s2  ;;  %s427_s19 = sshll.u32 %s414_s0, 4  ;;  %s428_s19 = int_to_ptr.vmem [resolvable:$true] %s427_s19 }
  0x38   : > { %s424_s24 = sadd.s32 %s5568_s6, %s5567_s20  ;;  %p7782_p7 = pnand %p9935_p3, %p7726_p6 }
  0x39   : > { %s5569_s5 = sshll.u32 %s424_s24, 7  ;;  %s9968_s3 = sld [smem:[#allocation49_spill]] }
  0x3a   : > { %s411_s2 = scalar_lea.sflag [#allocation4], %s410_s29  ;;  %p7359_p9 = pneg %p7782_p7 }
  0x3b   : > { %s7370_s27 = scalar_lea.vmem %s428_s19, 256  ;;  %s7563_s0 = smov [#allocation3]  }
  0x3c   : > { %p7371_p11 = scmp.ne.s32.totalorder %s428_s19, %s7370_s27  ;;  %s7375_s20 = sshll.u32 %s7563_s0, 4  ;;  %s7376_s20 = int_to_ptr.vmem [resolvable:$false] %s7375_s20 }
  0x3d   : > { %s7377_s8 = scalar_lea.vmem %s7376_s20, 512  ;;  %p7378_p6 = scmp.lt.s32.totalorder %s428_s19, %s7376_s20 }
  0x3e   : > { %p7373_p12 = pnand %p7371_p11, %p7359_p9  ;;  %p7379_p0 = scmp.lt.s32.totalorder %s7377_s8, %s7370_s27 }
  0x3f   : > { %s426_s17 = scalar_lea.hbm %s9968_s3, %s5569_s5 }
  0x40   : > { %p7374_p13 = pneg %p7373_p12  ;;  %p7380_p2 = por %p7379_p0, %p7378_p6 }
  0x42   : > { %p7381_p3 = pnand %p7380_p2, %p7374_p13 }
  0x44   : > { %7384 = shalt.err (!%p7381_p3)
}
  0x45   : > { %s7564_s15 = smov 128   ;;  %s7565_s30 = smov 8  }
  0x46   : > { %7226 = dma.hbm_to_vmem [thread:$0]  (!%p7782_p7), %s426_s17, 256, %s428_s19, %s411_s2, %s7564_s15, %s7564_s15, %s7565_s30  }
  0x47   : > { %p5575_p3 = scmp.ge.s32.totalorder %s7561_s22, 1  ;;  %p463_p9 = scmp.lt.s32.totalorder %s7561_s22, 5 }
  0x48   : > { %s182_s29 = sadd.s32 1, %s7700_s28  ;;  %s187_s24 = sadd.s32 1, %s7708_s23 }
  0x49   : > { %p7798_p11 = pnand %p5575_p3, %p463_p9  ;;  %p183_p12 = scmp.lt.s32.totalorder %s182_s29, 15 }
  0x4a   : > { %p188_p13 = scmp.lt.s32.totalorder %s187_s24, 15  ;;  %s195_s11 = sadd.s32 1, %s7529_s14 }
  0x4b   : > { %s10092_s29 = smov (!%p183_p12, %s182_s29), 15  ;;  %p202_p6 = scmp.ne.s32.totalorder %s7529_s14, %s7525_s13 }
  0x4c   : > { %s10094_s24 = smov (!%p188_p13, %s187_s24), 15  ;;  %p208_p0 = scmp.ne.s32.totalorder %s7525_s13, %s7521_s12 }
  0x4d   : > { %s191_s17 = ssub.s32 %s10092_s29, %s10094_s24  ;;  %s437_s19 = sand.u32 1, %s7529_s14  }
  0x4e   : > { %s192_s2 = sor.u32 %s191_s17, %s7720_s9  ;;  %p204_p7 = por %p202_p6, %p165_p5 }
  0x4f   : > { %p193_p2 = scmp.eq.s32.totalorder %s192_s2, 0  ;;  %p7815_p3 = por %p208_p0, %p7735_p8 }
  0x50   : > { %s5570_s23 = sshll.u32 %s437_s19, 4  ;;  %s5572_s27 = sshll.u32 %s10092_s29, 1 }
  0x51   : > { %s7820_s25 = scalar_select %p193_p2, %s7529_s14, %s195_s11  }
  0x52   : > { %s452_s0 = sadd.s32 %s5572_s27, %s5568_s6  ;;  %s441_s20 = scalar_lea.vmem [#allocation6], %s5570_s23 }
  0x53   : > { %s455_s12 = sshll.u32 %s441_s20, 4  ;;  %s5574_s8 = sshll.u32 %s452_s0, 7  ;;  %s456_s12 = int_to_ptr.vmem [resolvable:$true] %s455_s12 }
  0x54   : > { %s9971_s4 = sld [smem:[#allocation50_spill]]  ;;  %p9972_p5 = scmp.lt.s32.totalorder %s7561_s22, 4 }
  0x55   : > { %s438_s2 = scalar_lea.sflag [#allocation7], %s437_s19  ;;  %s7398_s29 = scalar_lea.vmem %s456_s12, 256 }
  0x56   : > { %p7829_p9 = pnand %p9972_p5, %p204_p7  ;;  %p7399_p12 = scmp.ne.s32.totalorder %s456_s12, %s7398_s29 }
  0x57   : > { %s7566_s6 = smov [#allocation6]  }
  0x58   : > { %p7387_p8 = pneg %p7829_p9  ;;  %s7403_s11 = sshll.u32 %s7566_s6, 4  ;;  %s7404_s11 = int_to_ptr.vmem [resolvable:$false] %s7403_s11 }
  0x59   : > { %s7405_s23 = scalar_lea.vmem %s7404_s11, 512  ;;  %p7406_p0 = scmp.lt.s32.totalorder %s456_s12, %s7404_s11 }
  0x5a   : > { %s454_s17 = scalar_lea.hbm %s9971_s4, %s5574_s8  ;;  %p7401_p13 = pnand %p7399_p12, %p7387_p8 }
  0x5b   : > { %p7407_p2 = scmp.lt.s32.totalorder %s7405_s23, %s7398_s29 }
  0x5c   : > { %p7402_p6 = pneg %p7401_p13 }
  0x5d   : > { %p7408_p4 = por %p7407_p2, %p7406_p0 }
  0x5f   : > { %p7409_p1 = pnand %p7408_p4, %p7402_p6 }
  0x61   : > { %7412 = shalt.err (!%p7409_p1)
}
  0x62   : > { %7229 = dma.hbm_to_vmem [thread:$0]  (!%p7829_p9), %s454_s17, 256, %s456_s12, %s438_s2, %s7564_s15, %s7564_s15, %s7565_s30  }
  0x63   : > { %467 = sbr.rel (%p7798_p11) target bundleno = 995 (0x3e3), region = 56 }
  0x68   : > { %s469_s19 = sand.u32 1, %s7537_s16  }
  0x69   : > { %s7843_s27 = sshll.u32 %s469_s19, 4  ;;  %s470_s0 = scalar_lea.sflag [#allocation4], %s469_s19 }
  0x6a   : > { %7496 = dma.done.wait (%p7744_p10), %s470_s0, 256  }
  0x6b   : > { %7498 = vsyncadd (%p7744_p10), %s470_s0, 4294967040  ;;  %s478_s8 = sand.u32 1, %s7525_s13  }
  0x6c   : > { %s7851_s15 = sshll.u32 %s478_s8, 4  ;;  %s479_s30 = scalar_lea.sflag [#allocation7], %s478_s8 }
  0x6d   : > { %7500 = dma.done.wait (%p7815_p3), %s479_s30, 256  }
  0x6e   : > { %7502 = vsyncadd (%p7815_p3), %s479_s30, 4294967040  ;;  %s9974_s12 = sld [smem:[#allocation15_spill]]  ;;  %s9937_s24 = sand.u32 1, %s7513_s10   ;;  %vm613_vm0 = vcmask 516096   ;;  %v7567_v0 = vmov 0.0  }
  0x6f   : > { %s7860_s1 = sshll.u32 %s7545_s18, 3  ;;  %s7864_s9 = sshll.u32 %s9937_s24, 7  ;;  %614 = vst.msk [vmem:[#allocation2 + $0x7] sm:$0x1] %vm613_vm0, %v7567_v0  ;;  %615 = vst.msk [vmem:[#allocation2 + $0x27] sm:$0x1] %vm613_vm0, %v7567_v0 }
  0x70   : > { %616 = vst.msk [vmem:[#allocation2 + $0x47] sm:$0x1] %vm613_vm0, %v7567_v0  ;;  %617 = vst.msk [vmem:[#allocation2 + $0x67] sm:$0x1] %vm613_vm0, %v7567_v0  ;;  %p561_p1 = scmp.lt.s32.totalorder %s7860_s1, 15  ;;  %s5584_s26 = sadd.s32 4294967294, %s7860_s1 }
  0x71   : > { %618 = vst.msk [vmem:[#allocation2 + $0x87] sm:$0x1] %vm613_vm0, %v7567_v0  ;;  %619 = vst.msk [vmem:[#allocation2 + $0xa7] sm:$0x1] %vm613_vm0, %v7567_v0  ;;  %p571_p4 = scmp.gt.s32.totalorder %s5584_s26, 0  ;;  %p5585_p11 = scmp.lt.s32.totalorder %s5584_s26, 15 }
  0x72   : > { %620 = vst.msk [vmem:[#allocation2 + $0xc7] sm:$0x1] %vm613_vm0, %v7567_v0  ;;  %621 = vst.msk [vmem:[#allocation2 + $0xe7] sm:$0x1] %vm613_vm0, %v7567_v0  ;;  %s562_s28 = scalar_select %p561_p1, %s7860_s1, 15 }
  0x73   : > { %622 = vst.msk [vmem:[#allocation2 + $0x107] sm:$0x1] %vm613_vm0, %v7567_v0  ;;  %623 = vst.msk [vmem:[#allocation2 + $0x127] sm:$0x1] %vm613_vm0, %v7567_v0  ;;  %s5594_s11 = sadd.s32 4294967295, %s7860_s1  ;;  %s9975_s0 = sld [smem:[#allocation46_spill]] }
  0x74   : > { %p559_p10 = scmp.lt.s32.totalorder %s9974_s12, 1  ;;  %624 = vst.msk [vmem:[#allocation2 + $0x147] sm:$0x1] %vm613_vm0, %v7567_v0  ;;  %625 = vst.msk [vmem:[#allocation2 + $0x167] sm:$0x1] %vm613_vm0, %v7567_v0  ;;  %s5580_s2 = sshll.u32 %s562_s28, 1 }
  0x75   : > { %626 = vst.msk [vmem:[#allocation2 + $0x18] sm:$0x1] %vm613_vm0, %v7567_v0  ;;  %627 = vst.msk [vmem:[#allocation2 + $0x38] sm:$0x1] %vm613_vm0, %v7567_v0  ;;  %p588_p7 = scmp.gt.s32.totalorder %s5594_s11, 0  ;;  %s10098_s26 = smov (!%p571_p4, %s5584_s26), 0 }
  0x76   : > { %628 = vst.msk [vmem:[#allocation2 + $0x58] sm:$0x1] %vm613_vm0, %v7567_v0  ;;  %629 = vst.msk [vmem:[#allocation2 + $0x78] sm:$0x1] %vm613_vm0, %v7567_v0  ;;  %s10096_s12 = smov (!%p559_p10, %s9974_s12), 1  ;;  %s10100_s26 = smov (!%p5585_p11, %s10098_s26), 15 }
  0x77   : > { %630 = vst.msk [vmem:[#allocation2 + $0x98] sm:$0x1] %vm613_vm0, %v7567_v0  ;;  %631 = vst.msk [vmem:[#allocation2 + $0xb8] sm:$0x1] %vm613_vm0, %v7567_v0  ;;  %s5581_s17 = sshll.u32 %s10096_s12, 5  ;;  %s5590_s24 = sshll.u32 %s10100_s26, 1 }
  0x78   : > { %632 = vst.msk [vmem:[#allocation2 + $0xd8] sm:$0x1] %vm613_vm0, %v7567_v0  ;;  %633 = vst.msk [vmem:[#allocation2 + $0xf8] sm:$0x1] %vm613_vm0, %v7567_v0  ;;  %s565_s29 = sadd.s32 %s5581_s17, %s5580_s2  ;;  %p5595_p3 = scmp.lt.s32.totalorder %s5594_s11, 15 }
  0x79   : > { %634 = vst.msk [vmem:[#allocation2 + $0x118] sm:$0x1] %vm613_vm0, %v7567_v0  ;;  %635 = vst.msk [vmem:[#allocation2 + $0x138] sm:$0x1] %vm613_vm0, %v7567_v0  ;;  %s5582_s6 = sshll.u32 %s565_s29, 3  ;;  %s579_s12 = sadd.s32 %s5590_s24, %s5581_s17 }
  0x7a   : > { %636 = vst.msk [vmem:[#allocation2 + $0x158] sm:$0x1] %vm613_vm0, %v7567_v0  ;;  %637 = vst.msk [vmem:[#allocation2 + $0x178] sm:$0x1] %vm613_vm0, %v7567_v0  ;;  %s7901_s8 = scalar_lea.vmem %s9975_s0, %s5582_s6  ;;  %s5592_s5 = sshll.u32 %s579_s12, 3 }
  0x7b   : > { %s589_s30 = scalar_select %p588_p7, %s5594_s11, 0 }
  0x7c   : > { %s9976_s2 = sld [smem:[#allocation47_spill]]  ;;  %s7910_s21 = scalar_lea.vmem [#allocation8], %s7864_s9 }
  0x7d   : > { %s10102_s30 = smov (!%p5595_p3, %s589_s30), 15  ;;  %s9977_s6 = sld [smem:[#allocation48_spill]] }
  0x7e   : > { %s5600_s1 = sshll.u32 %s10102_s30, 1  ;;  %p5603_p5 = scmp.ne.s32.totalorder %s7545_s18, 0 }
  0x7f   : > { %s596_s29 = sadd.s32 %s5600_s1, %s5581_s17 }
  0x80   : > { %s5602_s4 = sshll.u32 %s596_s29, 3  ;;  %641 = sbr.rel (%p5603_p5) target bundleno = 136 (0x88), region = 68 }
  0x82   : > { %s581_s3 = scalar_lea.vmem %s9976_s2, %s5592_s5 }
  0x83   : > { %s598_s0 = scalar_lea.vmem %s9977_s6, %s5602_s4 }
  0x85   : > { %vm642_vm1 = vcmask 523264   ;;  %v7568_v1 = vmov 0.0  }
  0x86   : > { %643 = vst.msk [vmem:[#allocation2 + $0x8] sm:$0xff] %vm642_vm1, %v7568_v1  ;;  %644 = vst.msk [vmem:[#allocation2 + $0x10] sm:$0xff] %vm642_vm1, %v7568_v1 }
  0x87   : > { %645 = vst.msk [vmem:[#allocation2 + $0x28] sm:$0xff] %vm642_vm1, %v7568_v1  ;;  %646 = vst.msk [vmem:[#allocation2 + $0x30] sm:$0xff] %vm642_vm1, %v7568_v1 }
  0x88 PF: > { %p5604_p9 = scmp.le.s32.totalorder %s7545_s18, 0 }
  0x8a   : > { %650 = sbr.rel (%p5604_p9) target bundleno = 146 (0x92), region = 72 }
  0x8f   : > { %v651_v2 = vld [vmem:[%s581_s3] sm:$0xff]  ;;  %vm653_vm2 = vcmask 523264   ;;  %v652_v3 = vld [vmem:[%s581_s3 + $0x8] sm:$0xff] }
  0x90   : > { %v656_v4 = vld [vmem:[%s598_s0] sm:$0xff]  ;;  %654 = vst.msk [vmem:[#allocation2 + $0x8] sm:$0xff] %vm653_vm2, %v651_v2  ;;  %655 = vst.msk [vmem:[#allocation2 + $0x10] sm:$0xff] %vm653_vm2, %v652_v3  ;;  %v657_v5 = vld [vmem:[%s598_s0 + $0x8] sm:$0xff] }
  0x91   : > { %659 = vst.msk [vmem:[#allocation2 + $0x28] sm:$0xff] %vm653_vm2, %v656_v4  ;;  %660 = vst.msk [vmem:[#allocation2 + $0x30] sm:$0xff] %vm653_vm2, %v657_v5 }
  0x92 PF: > { %p5605_p8 = scmp.ne.s32.totalorder %s7545_s18, 1 }
  0x94   : > { %664 = sbr.rel (%p5605_p8) target bundleno = 156 (0x9c), region = 76 }
  0x99   : > { %vm666_vm3 = vcmask 523264   ;;  %v7569_v6 = vmov 0.0  }
  0x9a   : > { %667 = vst.msk [vmem:[#allocation2 + $0x148] sm:$0xff] %vm666_vm3, %v7569_v6  ;;  %668 = vst.msk [vmem:[#allocation2 + $0x150] sm:$0xff] %vm666_vm3, %v7569_v6 }
  0x9b   : > { %669 = vst.msk [vmem:[#allocation2 + $0x168] sm:$0xff] %vm666_vm3, %v7569_v6  ;;  %670 = vst.msk [vmem:[#allocation2 + $0x170] sm:$0xff] %vm666_vm3, %v7569_v6 }
  0x9c PF: > { %p5606_p12 = scmp.ge.s32.totalorder %s7545_s18, 1 }
  0x9d   : > { %s9978_s3 = scalar_lea.vmem (!%p5606_p12), [#allocation3], %s7843_s27  ;;  %s9980_s20 = scalar_lea.vmem (!%p5606_p12), [#allocation6], %s7851_s15 }
  0x9e   : > { %674 = sbr.rel (%p5606_p12) target bundleno = 166 (0xa6), region = 80  ;;  %s9979_s4 = smov (!%p5606_p12), %s9978_s3 }
  0x9f   : > { %s9981_s5 = smov (!%p5606_p12), %s9980_s20 }
  0xa3   : > { %v675_v7 = vld [vmem:[%s9978_s3] sm:$0xff]  ;;  %vm678_vm4 = vcmask 523264   ;;  %v676_v8 = vld [vmem:[%s9979_s4 + $0x8] sm:$0xff] }
  0xa4   : > { %v681_v9 = vld [vmem:[%s9980_s20] sm:$0xff]  ;;  %679 = vst.msk [vmem:[#allocation2 + $0x148] sm:$0xff] %vm678_vm4, %v675_v7  ;;  %680 = vst.msk [vmem:[#allocation2 + $0x150] sm:$0xff] %vm678_vm4, %v676_v8  ;;  %v682_v10 = vld [vmem:[%s9981_s5 + $0x8] sm:$0xff] }
  0xa5   : > { %684 = vst.msk [vmem:[#allocation2 + $0x168] sm:$0xff] %vm678_vm4, %v681_v9  ;;  %685 = vst.msk [vmem:[#allocation2 + $0x170] sm:$0xff] %vm678_vm4, %v682_v10 }
  0xa6 PF: > { %s9982_s17 = sld [smem:[#allocation51_spill]]  ;;  %vm703_vm5 = vcmask 523264   ;;  %v686_v24 = vld [vmem:[%s7901_s8] sm:$0xff]  ;;  %v687_v26 = vld [vmem:[%s7901_s8 + $0x8] sm:$0xff]  ;;  %v688_v27 = vld [vmem:[%s7901_s8 + $0x10] sm:$0xff] }
  0xa7   : > { %704 = vst.msk [vmem:[#allocation2 + $0x48] sm:$0xff] %vm703_vm5, %v686_v24  ;;  %705 = vst.msk [vmem:[#allocation2 + $0x50] sm:$0xff] %vm703_vm5, %v687_v26  ;;  %v689_v29 = vld [vmem:[%s7901_s8 + $0x18] sm:$0xff]  ;;  %v690_v30 = vld [vmem:[%s7901_s8 + $0x20] sm:$0xff]  ;;  %s9998_s28 = sld [smem:[#allocation52_spill]] }
  0xa8   : > { %706 = vst.msk [vmem:[#allocation2 + $0x68] sm:$0xff] %vm703_vm5, %v688_v27  ;;  %707 = vst.msk [vmem:[#allocation2 + $0x70] sm:$0xff] %vm703_vm5, %v689_v29  ;;  %v691_v31 = vld [vmem:[%s7901_s8 + $0x28] sm:$0xff]  ;;  %v692_v32 = vld [vmem:[%s7901_s8 + $0x30] sm:$0xff] }
  0xa9   : > { %708 = vst.msk [vmem:[#allocation2 + $0x88] sm:$0xff] %vm703_vm5, %v690_v30  ;;  %v693_v33 = vld [vmem:[%s7901_s8 + $0x38] sm:$0xff]  ;;  %709 = vst.msk [vmem:[#allocation2 + $0x90] sm:$0xff] %vm703_vm5, %v691_v31  ;;  %v694_v35 = vld [vmem:[%s7901_s8 + $0x40] sm:$0xff] }
  0xaa   : > { %710 = vst.msk [vmem:[#allocation2 + $0xa8] sm:$0xff] %vm703_vm5, %v692_v32  ;;  %711 = vst.msk [vmem:[#allocation2 + $0xb0] sm:$0xff] %vm703_vm5, %v693_v33  ;;  %v695_v36 = vld [vmem:[%s7901_s8 + $0x48] sm:$0xff]  ;;  %v696_v38 = vld [vmem:[%s7901_s8 + $0x50] sm:$0xff] }
  0xab   : > { %v748_v37 = vld [vmem:[#allocation2 + $0x8] sm:$0xff]  ;;  %712 = vst.msk [vmem:[#allocation2 + $0xc8] sm:$0xff] %vm703_vm5, %v694_v35  ;;  %713 = vst.msk [vmem:[#allocation2 + $0xd0] sm:$0xff] %vm703_vm5, %v695_v36  ;;  %v749_v40 = vld [vmem:[#allocation2 + $0x10] sm:$0xff] }
  0xac   : > { %s9983_s26 = smov %s9982_s17  ;;  %v775_v11 = vld [vmem:[%s9982_s17 + $0x78] sm:$0xff]  ;;  %v720_v39 = vld [vmem:[#allocation2 + $0x7] sm:$0xff]  ;;  %714 = vst.msk [vmem:[#allocation2 + $0xe8] sm:$0xff] %vm703_vm5, %v696_v38  ;;  %v721_v42 = vld [vmem:[#allocation2 + $0xf] sm:$0xff]  ;;  %6443 = vmatprep.mubr.msk.f32.mxu0 %vm703_vm5, %v748_v37 }
  0xad   : > { %v747_v12 = vld [vmem:[%s9983_s26 + $0x38] sm:$0xff]  ;;  %v774_v13 = vld [vmem:[%s9983_s26 + $0x70] sm:$0xff]  ;;  %6427 = vmatprep.subr.mxu0 %v775_v11  ;;  %v773_v15 = vld [vmem:[%s9983_s26 + $0x68] sm:$0xff]  ;;  %6489 = vmatprep.mubr.msk.f32.mxu1 %vm703_vm5, %v720_v39 }
  0xae   : > { %6473 = vmatprep.subr.mxu1 %v747_v12  ;;  %v746_v14 = vld [vmem:[%s9983_s26 + $0x30] sm:$0xff]  ;;  %6428 = vmatpush3.msra.mxu0 %v775_v11  ;;  %v745_v16 = vld [vmem:[%s9983_s26 + $0x28] sm:$0xff]  ;;  %v772_v17 = vld [vmem:[%s9983_s26 + $0x60] sm:$0xff] }
  0xaf   : > { %6474 = vmatpush3.msra.mxu1 %v747_v12  ;;  %6429 = vmatprep.subr.mxu0 %v774_v13  ;;  %v744_v18 = vld [vmem:[%s9983_s26 + $0x20] sm:$0xff]  ;;  %v771_v19 = vld [vmem:[%s9983_s26 + $0x58] sm:$0xff]  ;;  %v770_v21 = vld [vmem:[%s9983_s26 + $0x50] sm:$0xff] }
  0xb0   : > { %6475 = vmatprep.subr.mxu1 %v746_v14  ;;  %6430 = vmatpush3.msra.mxu0 %v774_v13  ;;  %v743_v20 = vld [vmem:[%s9983_s26 + $0x18] sm:$0xff]  ;;  %v742_v22 = vld [vmem:[%s9983_s26 + $0x10] sm:$0xff]  ;;  %v769_v23 = vld [vmem:[%s9983_s26 + $0x48] sm:$0xff] }
  0xb1   : > { %6476 = vmatpush3.msra.mxu1 %v746_v14  ;;  %6431 = vmatprep.subr.mxu0 %v773_v15  ;;  %v741_v25 = vld [vmem:[%s9983_s26 + $0x8] sm:$0xff]  ;;  %v768_v28 = vld [vmem:[%s9983_s26 + $0x40] sm:$0xff]  ;;  %v697_v41 = vld [vmem:[%s7901_s8 + $0x58] sm:$0xff] }
  0xb2   : > { %6477 = vmatprep.subr.mxu1 %v745_v16  ;;  %6432 = vmatpush3.msra.mxu0 %v773_v15  ;;  %v740_v34 = vld [vmem:[%s9983_s26] sm:$0xff]  ;;  %715 = vst.msk [vmem:[#allocation2 + $0xf0] sm:$0xff] %vm703_vm5, %v697_v41  ;;  %v699_v44 = vld [vmem:[%s7901_s8 + $0x68] sm:$0xff]  ;;  %v1253_v45 = vld [vmem:[%s9983_s26 + $0xb8] sm:$0xff] }
  0xb3   : > { %6478 = vmatpush3.msra.mxu1 %v745_v16  ;;  %6433 = vmatprep.subr.mxu0 %v772_v17  ;;  %v698_v43 = vld [vmem:[%s7901_s8 + $0x60] sm:$0xff]  ;;  %v8006_v46 = vld [vmem:[#allocation2 + $0x28] sm:$0xff]  ;;  %717 = vst.msk [vmem:[#allocation2 + $0x110] sm:$0xff] %vm703_vm5, %v699_v44  ;;  %v1252_v48 = vld [vmem:[%s9983_s26 + $0xb0] sm:$0xff] }
  0xb4   : > { %6479 = vmatprep.subr.mxu1 %v744_v18  ;;  %6434 = vmatpush3.msra.mxu0 %v772_v17  ;;  %716 = vst.msk [vmem:[#allocation2 + $0x108] sm:$0xff] %vm703_vm5, %v698_v43  ;;  %v8011_v47 = vld [vmem:[#allocation2 + $0x27] sm:$0xff]  ;;  %v1527_v49 = vld [vmem:[%s9983_s26 + $0xf8] sm:$0xff]  ;;  %v8023_v50 = vld [vmem:[#allocation2 + $0x30] sm:$0xff] }
  0xb5   : > { %6480 = vmatpush3.msra.mxu1 %v744_v18  ;;  %6435 = vmatprep.subr.mxu0 %v771_v19  ;;  %v8025_v51 = vld [vmem:[#allocation2 + $0x2f] sm:$0xff]  ;;  %v8031_v53 = vld [vmem:[#allocation2 + $0x47] sm:$0xff]  ;;  %v701_v62 = vld [vmem:[%s7901_s8 + $0x78] sm:$0xff] }
  0xb6   : > { %6481 = vmatprep.subr.mxu1 %v743_v20  ;;  %6436 = vmatpush3.msra.mxu0 %v771_v19  ;;  %v8029_v52 = vld [vmem:[#allocation2 + $0x48] sm:$0xff]  ;;  %v8042_v55 = vld [vmem:[#allocation2 + $0x50] sm:$0xff]  ;;  %v1250_v59 = vld [vmem:[%s9983_s26 + $0xa0] sm:$0xff]  ;;  %719 = vst.msk [vmem:[#allocation2 + $0x130] sm:$0xff] %vm703_vm5, %v701_v62 }
  0xb7   : > { %6482 = vmatpush3.msra.mxu1 %v743_v20  ;;  %6437 = vmatprep.subr.mxu0 %v770_v21  ;;  %v1251_v54 = vld [vmem:[%s9983_s26 + $0xa8] sm:$0xff]  ;;  %v1526_v60 = vld [vmem:[%s9983_s26 + $0xf0] sm:$0xff]  ;;  %v1249_v3 = vld [vmem:[%s9983_s26 + $0x98] sm:$0xff] }
  0xb8   : > { %6483 = vmatprep.subr.mxu1 %v742_v22  ;;  %6438 = vmatpush3.msra.mxu0 %v770_v21  ;;  %v8044_v56 = vld [vmem:[#allocation2 + $0x4f] sm:$0xff]  ;;  %v8050_v58 = vld [vmem:[#allocation2 + $0x67] sm:$0xff]  ;;  %v1523_v16 = vld [vmem:[%s9983_s26 + $0xd8] sm:$0xff] }
  0xb9   : > { %6484 = vmatpush3.msra.mxu1 %v742_v22  ;;  %6439 = vmatprep.subr.mxu0 %v769_v23  ;;  %v8048_v57 = vld [vmem:[#allocation2 + $0x68] sm:$0xff]  ;;  %v700_v61 = vld [vmem:[%s7901_s8 + $0x70] sm:$0xff]  ;;  %v1524_v10 = vld [vmem:[%s9983_s26 + $0xe0] sm:$0xff] }
  0xba   : > { %6485 = vmatprep.subr.mxu1 %v741_v25  ;;  %6440 = vmatpush3.msra.mxu0 %v769_v23  ;;  %v8068_v63 = vld [vmem:[#allocation2 + $0x70] sm:$0xff]  ;;  %718 = vst.msk [vmem:[#allocation2 + $0x128] sm:$0xff] %vm703_vm5, %v700_v61  ;;  %v8074_v1 = vld [vmem:[#allocation2 + $0x88] sm:$0xff]  ;;  %v1246_v21 = vld [vmem:[%s9983_s26 + $0x80] sm:$0xff] }
  0xbb   : > { %6486 = vmatpush3.msra.mxu1 %v741_v25  ;;  %6441 = vmatprep.subr.mxu0 %v768_v28  ;;  %v8070_v0 = vld [vmem:[#allocation2 + $0x6f] sm:$0xff]  ;;  %v8076_v2 = vld [vmem:[#allocation2 + $0x87] sm:$0xff]  ;;  %v2073_v37 = vld [vmem:[%s9983_s26 + $0x178] sm:$0xff] }
  0xbc   : > { %6487 = vmatprep.subr.mxu1 %v740_v34  ;;  %6442 = vmatpush3.msra.mxu0 %v768_v28  ;;  %v1525_v4 = vld [vmem:[%s9983_s26 + $0xe8] sm:$0xff]  ;;  %v8092_v5 = vld [vmem:[#allocation2 + $0x90] sm:$0xff]  ;;  %v1800_v28 = vld [vmem:[%s9983_s26 + $0x138] sm:$0xff] }
  0xbd   : > { %6488 = vmatpush3.msra.mxu1 %v740_v34  ;;  %6444 = vmatmul.mubr.msk.f32.vlgmr.msra.gmra.mxu0 %vm703_vm5, %v749_v40  ;;  %v8094_v6 = vld [vmem:[#allocation2 + $0x8f] sm:$0xff]  ;;  %v8098_v8 = vld [vmem:[#allocation2 + $0xa7] sm:$0xff] }
  0xbe   : > { %6490 = vmatmul.mubr.msk.f32.vlgmr.msra.gmra.mxu1 %vm703_vm5, %v721_v42  ;;  %6519 = vmatprep.subr.mxu0 %v1253_v45  ;;  %v8096_v7 = vld [vmem:[#allocation2 + $0xa8] sm:$0xff]  ;;  %v1248_v9 = vld [vmem:[%s9983_s26 + $0x90] sm:$0xff]  ;;  %v1520_v33 = vld [vmem:[%s9983_s26 + $0xc0] sm:$0xff] }
  0xbf   : > { %6446 = vmatprep.mubr.msk.f32.mxu0 %vm703_vm5, %v8006_v46  ;;  %6520 = vmatpush3.msra.mxu0 %v1253_v45  ;;  %v8114_v11 = vld [vmem:[#allocation2 + $0xb0] sm:$0xff]  ;;  %v8118_v13 = vld [vmem:[#allocation2 + $0xc8] sm:$0xff] }
  0xc0   : > { %6492 = vmatprep.mubr.msk.f32.mxu1 %vm703_vm5, %v8011_v47  ;;  %6521 = vmatprep.subr.mxu0 %v1252_v48  ;;  %v8116_v12 = vld [vmem:[#allocation2 + $0xaf] sm:$0xff]  ;;  %v8120_v14 = vld [vmem:[#allocation2 + $0xc7] sm:$0xff] }
  0xc1   : > { %6565 = vmatprep.subr.mxu1 %v1527_v49  ;;  %6447 = vmatmul.mubr.msk.f32.gmra.mxu0 %vm703_vm5, %v8023_v50  ;;  %v1247_v15 = vld [vmem:[%s9983_s26 + $0x88] sm:$0xff]  ;;  %v8136_v17 = vld [vmem:[#allocation2 + $0xd0] sm:$0xff] }
  0xc2   : > { %6493 = vmatmul.mubr.msk.f32.gmra.mxu1 %vm703_vm5, %v8025_v51  ;;  %6522 = vmatpush3.msra.mxu0 %v1252_v48  ;;  %v8138_v18 = vld [vmem:[#allocation2 + $0xcf] sm:$0xff]  ;;  %v8142_v20 = vld [vmem:[#allocation2 + $0xe7] sm:$0xff] }
  0xc3   : > { %6449 = vmatprep.mubr.msk.f32.mxu0 %vm703_vm5, %v8029_v52  ;;  %6495 = vmatprep.mubr.msk.f32.mxu1 %vm703_vm5, %v8031_v53  ;;  %v8140_v19 = vld [vmem:[#allocation2 + $0xe8] sm:$0xff]  ;;  %v1522_v22 = vld [vmem:[%s9983_s26 + $0xd0] sm:$0xff]  ;;  %v1797_v48 = vld [vmem:[%s9983_s26 + $0x120] sm:$0xff] }
  0xc4   : > { %6523 = vmatprep.subr.mxu0 %v1251_v54  ;;  %6566 = vmatpush3.msra.mxu1 %v1527_v49  ;;  %v8158_v23 = vld [vmem:[#allocation2 + $0xf0] sm:$0xff]  ;;  %v8162_v25 = vld [vmem:[#allocation2 + $0x108] sm:$0xff] }
  0xc5   : > { %6524 = vmatpush3.msra.mxu0 %v1251_v54  ;;  %6567 = vmatprep.subr.mxu1 %v1526_v60  ;;  %v8160_v24 = vld [vmem:[#allocation2 + $0xef] sm:$0xff]  ;;  %v8164_v26 = vld [vmem:[#allocation2 + $0x107] sm:$0xff] }
  0xc6   : > { %6450 = vmatmul.mubr.msk.f32.gmra.mxu0 %vm703_vm5, %v8042_v55  ;;  %6496 = vmatmul.mubr.msk.f32.gmra.mxu1 %vm703_vm5, %v8044_v56  ;;  %v1521_v27 = vld [vmem:[%s9983_s26 + $0xc8] sm:$0xff]  ;;  %v8180_v29 = vld [vmem:[#allocation2 + $0x110] sm:$0xff] }
  0xc7   : > { %6452 = vmatprep.mubr.msk.f32.mxu0 %vm703_vm5, %v8048_v57  ;;  %6498 = vmatprep.mubr.msk.f32.mxu1 %vm703_vm5, %v8050_v58  ;;  %v8182_v30 = vld [vmem:[#allocation2 + $0x10f] sm:$0xff]  ;;  %v8186_v32 = vld [vmem:[#allocation2 + $0x127] sm:$0xff] }
  0xc8   : > { %6525 = vmatprep.subr.mxu0 %v1250_v59  ;;  %6568 = vmatpush3.msra.mxu1 %v1526_v60  ;;  %v8184_v31 = vld [vmem:[#allocation2 + $0x128] sm:$0xff]  ;;  %v8199_v34 = vld [vmem:[#allocation2 + $0x130] sm:$0xff]  ;;  %v2070_v60 = vld [vmem:[%s9983_s26 + $0x160] sm:$0xff] }
  0xc9   : > { %6526 = vmatpush3.msra.mxu0 %v1250_v59  ;;  %6569 = vmatprep.subr.mxu1 %v1525_v4  ;;  %v8201_v35 = vld [vmem:[#allocation2 + $0x12f] sm:$0xff]  ;;  %v1796_v59 = vld [vmem:[%s9983_s26 + $0x118] sm:$0xff] }
  0xca   : > { %6453 = vmatmul.mubr.msk.f32.gmra.mxu0 %vm703_vm5, %v8068_v63  ;;  %6499 = vmatmul.mubr.msk.f32.gmra.mxu1 %vm703_vm5, %v8070_v0  ;;  %v1226_v36 = vld [vmem:[#allocation2 + $0x9] sm:$0xff]  ;;  %v1227_v38 = vld [vmem:[#allocation2 + $0x11] sm:$0xff] }
  0xcb   : > { %6455 = vmatprep.mubr.msk.f32.mxu0 %vm703_vm5, %v8074_v1  ;;  %6501 = vmatprep.mubr.msk.f32.mxu1 %vm703_vm5, %v8076_v2  ;;  %v8213_v39 = vld [vmem:[#allocation2 + $0x29] sm:$0xff]  ;;  %v8223_v41 = vld [vmem:[#allocation2 + $0x31] sm:$0xff] }
  0xcc   : > { %6527 = vmatprep.subr.mxu0 %v1249_v3  ;;  %6570 = vmatpush3.msra.mxu1 %v1525_v4  ;;  %v1799_v40 = vld [vmem:[%s9983_s26 + $0x130] sm:$0xff]  ;;  %v1798_v43 = vld [vmem:[%s9983_s26 + $0x128] sm:$0xff]  ;;  %v2069_v4 = vld [vmem:[%s9983_s26 + $0x158] sm:$0xff] }
  0xcd   : > { %6528 = vmatpush3.msra.mxu0 %v1249_v3  ;;  %6571 = vmatprep.subr.mxu1 %v1524_v10  ;;  %v8227_v42 = vld [vmem:[#allocation2 + $0x49] sm:$0xff]  ;;  %v8241_v45 = vld [vmem:[#allocation2 + $0x51] sm:$0xff] }
  0xce   : > { %6456 = vmatmul.mubr.msk.f32.gmra.mxu0 %vm703_vm5, %v8092_v5  ;;  %6502 = vmatmul.mubr.msk.f32.gmra.mxu1 %vm703_vm5, %v8094_v6  ;;  %v2072_v44 = vld [vmem:[%s9983_s26 + $0x170] sm:$0xff]  ;;  %v2071_v49 = vld [vmem:[%s9983_s26 + $0x168] sm:$0xff] }
  0xcf   : > { %6458 = vmatprep.mubr.msk.f32.mxu0 %vm703_vm5, %v8096_v7  ;;  %6504 = vmatprep.mubr.msk.f32.mxu1 %vm703_vm5, %v8098_v8  ;;  %v8263_v54 = vld [vmem:[#allocation2 + $0x89] sm:$0xff]  ;;  %v8277_v61 = vld [vmem:[#allocation2 + $0x91] sm:$0xff] }
  0xd0   : > { %6529 = vmatprep.subr.mxu0 %v1248_v9  ;;  %6572 = vmatpush3.msra.mxu1 %v1524_v10  ;;  %v8281_v62 = vld [vmem:[#allocation2 + $0xa9] sm:$0xff] }
  0xd1   : > { %6530 = vmatpush3.msra.mxu0 %v1248_v9  ;;  %6573 = vmatprep.subr.mxu1 %v1523_v16  ;;  %v1795_v3 = vld [vmem:[%s9983_s26 + $0x110] sm:$0xff] }
  0xd2   : > { %6459 = vmatmul.mubr.msk.f32.gmra.mxu0 %vm703_vm5, %v8114_v11  ;;  %6505 = vmatmul.mubr.msk.f32.gmra.mxu1 %vm703_vm5, %v8116_v12  ;;  %v8295_v9 = vld [vmem:[#allocation2 + $0xb1] sm:$0xff]  ;;  %v8299_v10 = vld [vmem:[#allocation2 + $0xc9] sm:$0xff] }
  0xd3   : > { %6461 = vmatprep.mubr.msk.f32.mxu0 %vm703_vm5, %v8118_v13  ;;  %6507 = vmatprep.mubr.msk.f32.mxu1 %vm703_vm5, %v8120_v14 }
  0xd4   : > { %6531 = vmatprep.subr.mxu0 %v1247_v15  ;;  %6574 = vmatpush3.msra.mxu1 %v1523_v16  ;;  %v2068_v16 = vld [vmem:[%s9983_s26 + $0x150] sm:$0xff] }
  0xd5   : > { %6532 = vmatpush3.msra.mxu0 %v1247_v15  ;;  %6575 = vmatprep.subr.mxu1 %v1522_v22  ;;  %v1794_v15 = vld [vmem:[%s9983_s26 + $0x108] sm:$0xff] }
  0xd6   : > { %6462 = vmatmul.mubr.msk.f32.gmra.mxu0 %vm703_vm5, %v8136_v17  ;;  %6508 = vmatmul.mubr.msk.f32.gmra.mxu1 %vm703_vm5, %v8138_v18 }
  0xd7   : > { %6464 = vmatprep.mubr.msk.f32.mxu0 %vm703_vm5, %v8140_v19  ;;  %6510 = vmatprep.mubr.msk.f32.mxu1 %vm703_vm5, %v8142_v20 }
  0xd8   : > { %6533 = vmatprep.subr.mxu0 %v1246_v21  ;;  %6576 = vmatpush3.msra.mxu1 %v1522_v22  ;;  %v8317_v22 = vld [vmem:[#allocation2 + $0xe9] sm:$0xff] }
  0xd9   : > { %6534 = vmatpush3.msra.mxu0 %v1246_v21  ;;  %6577 = vmatprep.subr.mxu1 %v1521_v27  ;;  %v8313_v21 = vld [vmem:[#allocation2 + $0xd1] sm:$0xff] }
  0xda   : > { %6465 = vmatmul.mubr.msk.f32.gmra.mxu0 %vm703_vm5, %v8158_v23  ;;  %6511 = vmatmul.mubr.msk.f32.gmra.mxu1 %vm703_vm5, %v8160_v24 }
  0xdb   : > { %6467 = vmatprep.mubr.msk.f32.mxu0 %vm703_vm5, %v8162_v25  ;;  %6513 = vmatprep.mubr.msk.f32.mxu1 %vm703_vm5, %v8164_v26 }
  0xdc   : > { %6611 = vmatprep.subr.mxu0 %v1800_v28  ;;  %6578 = vmatpush3.msra.mxu1 %v1521_v27  ;;  %v1793_v27 = vld [vmem:[%s9983_s26 + $0x100] sm:$0xff] }
  0xdd   : > { %6579 = vmatprep.subr.mxu1 %v1520_v33 }
  0xde   : > { %6468 = vmatmul.mubr.msk.f32.gmra.mxu0 %vm703_vm5, %v8180_v29  ;;  %6514 = vmatmul.mubr.msk.f32.gmra.mxu1 %vm703_vm5, %v8182_v30 }
  0xdf   : > { %6470 = vmatprep.mubr.msk.f32.mxu0 %vm703_vm5, %v8184_v31  ;;  %6516 = vmatprep.mubr.msk.f32.mxu1 %vm703_vm5, %v8186_v32 }
  0xe0   : > { %6580 = vmatpush3.msra.mxu1 %v1520_v33  ;;  %v8331_v33 = vld [vmem:[#allocation2 + $0xf1] sm:$0xff] }
  0xe1   : > { %6657 = vmatprep.subr.mxu1 %v2073_v37 }
  0xe2   : > { %6471 = vmatmul.mubr.msk.f32.gmra.mxu0 %vm703_vm5, %v8199_v34  ;;  %6517 = vmatmul.mubr.msk.f32.gmra.mxu1 %vm703_vm5, %v8201_v35 }
  0xe3   : > { %6535 = vmatprep.mubr.msk.f32.mxu0 %vm703_vm5, %v1226_v36  ;;  %6581 = vmatprep.mubr.msk.f32.mxu1 %vm703_vm5, %v8011_v47  ;;  %v8245_v47 = vld [vmem:[#allocation2 + $0x69] sm:$0xff] }
  0xe4   : > { %v8335_v36 = vld [vmem:[#allocation2 + $0x109] sm:$0xff] }
  0xe6   : > { %6536 = vmatmul.mubr.msk.f32.vlgmr.msra.gmra.mxu0 %vm703_vm5, %v1227_v38  ;;  %6582 = vmatmul.mubr.msk.f32.vlgmr.msra.gmra.mxu1 %vm703_vm5, %v8025_v51  ;;  %v8259_v51 = vld [vmem:[#allocation2 + $0x71] sm:$0xff] }
  0xe7   : > { %6612 = vmatpush3.msra.mxu0 %v1800_v28  ;;  %6538 = vmatprep.mubr.msk.f32.mxu0 %vm703_vm5, %v8213_v39  ;;  %v2067_v28 = vld [vmem:[%s9983_s26 + $0x148] sm:$0xff]  ;;  %v2346_v38 = vld [vmem:[%s9983_s26 + $0x1b8] sm:$0xff] }
  0xe8   : > { %6584 = vmatprep.mubr.msk.f32.mxu1 %vm703_vm5, %v8031_v53  ;;  %6613 = vmatprep.subr.mxu0 %v1799_v40 }
  0xe9   : > { %6614 = vmatpush3.msra.mxu0 %v1799_v40  ;;  %6658 = vmatpush3.msra.mxu1 %v2073_v37  ;;  %v2066_v37 = vld [vmem:[%s9983_s26 + $0x140] sm:$0xff]  ;;  %v8349_v40 = vld [vmem:[#allocation2 + $0x111] sm:$0xff] }
  0xea   : > { %6539 = vmatmul.mubr.msk.f32.gmra.mxu0 %vm703_vm5, %v8223_v41  ;;  %6585 = vmatmul.mubr.msk.f32.gmra.mxu1 %vm703_vm5, %v8044_v56 }
  0xeb   : > { %6541 = vmatprep.mubr.msk.f32.mxu0 %vm703_vm5, %v8227_v42  ;;  %6587 = vmatprep.mubr.msk.f32.mxu1 %vm703_vm5, %v8050_v58 }
  0xec   : > { %6615 = vmatprep.subr.mxu0 %v1798_v43  ;;  %6659 = vmatprep.subr.mxu1 %v2072_v44 }
  0xed   : > { %6616 = vmatpush3.msra.mxu0 %v1798_v43  ;;  %6660 = vmatpush3.msra.mxu1 %v2072_v44  ;;  %v8353_v43 = vld [vmem:[#allocation2 + $0x129] sm:$0xff] }
  0xee   : > { %6542 = vmatmul.mubr.msk.f32.gmra.mxu0 %vm703_vm5, %v8241_v45  ;;  %6588 = vmatmul.mubr.msk.f32.gmra.mxu1 %vm703_vm5, %v8070_v0  ;;  %v8355_v44 = vld [vmem:[#allocation2 + $0x147] sm:$0xff] }
  0xef   : > { %6544 = vmatprep.mubr.msk.f32.mxu0 %vm703_vm5, %v8245_v47  ;;  %6590 = vmatprep.mubr.msk.f32.mxu1 %vm703_vm5, %v8076_v2 }
  0xf0   : > { %6617 = vmatprep.subr.mxu0 %v1797_v48  ;;  %6661 = vmatprep.subr.mxu1 %v2071_v49 }
  0xf1   : > { %6618 = vmatpush3.msra.mxu0 %v1797_v48  ;;  %6662 = vmatpush3.msra.mxu1 %v2071_v49  ;;  %v2619_v48 = vld [vmem:[%s9983_s26 + $0x1f8] sm:$0xff] }
  0xf2   : > { %6545 = vmatmul.mubr.msk.f32.gmra.mxu0 %vm703_vm5, %v8259_v51  ;;  %6591 = vmatmul.mubr.msk.f32.gmra.mxu1 %vm703_vm5, %v8094_v6  ;;  %v8366_v49 = vld [vmem:[#allocation2 + $0x131] sm:$0xff] }
  0xf3   : > { %6547 = vmatprep.mubr.msk.f32.mxu0 %vm703_vm5, %v8263_v54  ;;  %6593 = vmatprep.mubr.msk.f32.mxu1 %vm703_vm5, %v8098_v8 }
  0xf4   : > { %6619 = vmatprep.subr.mxu0 %v1796_v59  ;;  %6663 = vmatprep.subr.mxu1 %v2070_v60 }
  0xf5   : > { %6620 = vmatpush3.msra.mxu0 %v1796_v59  ;;  %6664 = vmatpush3.msra.mxu1 %v2070_v60  ;;  %v8370_v59 = vld [vmem:[#allocation2 + $0x14f] sm:$0xff] }
  0xf6   : > { %6548 = vmatmul.mubr.msk.f32.gmra.mxu0 %vm703_vm5, %v8277_v61  ;;  %6594 = vmatmul.mubr.msk.f32.gmra.mxu1 %vm703_vm5, %v8116_v12  ;;  %v2345_v60 = vld [vmem:[%s9983_s26 + $0x1b0] sm:$0xff] }
  0xf7   : > { %6550 = vmatprep.mubr.msk.f32.mxu0 %vm703_vm5, %v8281_v62  ;;  %6596 = vmatprep.mubr.msk.f32.mxu1 %vm703_vm5, %v8120_v14 }
  0xf8   : > { %6621 = vmatprep.subr.mxu0 %v1795_v3  ;;  %6665 = vmatprep.subr.mxu1 %v2069_v4 }
  0xf9   : > { %6622 = vmatpush3.msra.mxu0 %v1795_v3  ;;  %6666 = vmatpush3.msra.mxu1 %v2069_v4  ;;  %v2342_v3 = vld [vmem:[%s9983_s26 + $0x198] sm:$0xff]  ;;  %v2616_v4 = vld [vmem:[%s9983_s26 + $0x1e0] sm:$0xff] }
  0xfa   : > { %6551 = vmatmul.mubr.msk.f32.gmra.mxu0 %vm703_vm5, %v8295_v9  ;;  %6597 = vmatmul.mubr.msk.f32.gmra.mxu1 %vm703_vm5, %v8138_v18 }
  0xfb   : > { %6553 = vmatprep.mubr.msk.f32.mxu0 %vm703_vm5, %v8299_v10  ;;  %6599 = vmatprep.mubr.msk.f32.mxu1 %vm703_vm5, %v8142_v20 }
  0xfc   : > { %6623 = vmatprep.subr.mxu0 %v1794_v15  ;;  %6667 = vmatprep.subr.mxu1 %v2068_v16 }
  0xfd   : > { %6624 = vmatpush3.msra.mxu0 %v1794_v15  ;;  %6668 = vmatpush3.msra.mxu1 %v2068_v16  ;;  %v2341_v15 = vld [vmem:[%s9983_s26 + $0x190] sm:$0xff]  ;;  %v2615_v16 = vld [vmem:[%s9983_s26 + $0x1d8] sm:$0xff] }
  0xfe   : > { %6554 = vmatmul.mubr.msk.f32.gmra.mxu0 %vm703_vm5, %v8313_v21  ;;  %6600 = vmatmul.mubr.msk.f32.gmra.mxu1 %vm703_vm5, %v8160_v24 }
  0xff   : > { %6556 = vmatprep.mubr.msk.f32.mxu0 %vm703_vm5, %v8317_v22  ;;  %6602 = vmatprep.mubr.msk.f32.mxu1 %vm703_vm5, %v8164_v26 }
 0x100   : > { %6625 = vmatprep.subr.mxu0 %v1793_v27  ;;  %6669 = vmatprep.subr.mxu1 %v2067_v28 }
 0x101   : > { %6626 = vmatpush3.msra.mxu0 %v1793_v27  ;;  %6670 = vmatpush3.msra.mxu1 %v2067_v28  ;;  %v2340_v27 = vld [vmem:[%s9983_s26 + $0x188] sm:$0xff]  ;;  %v2614_v28 = vld [vmem:[%s9983_s26 + $0x1d0] sm:$0xff] }
 0x102   : > { %6557 = vmatmul.mubr.msk.f32.gmra.mxu0 %vm703_vm5, %v8331_v33  ;;  %6603 = vmatmul.mubr.msk.f32.gmra.mxu1 %vm703_vm5, %v8182_v30 }
 0x103   : > { %6559 = vmatprep.mubr.msk.f32.mxu0 %vm703_vm5, %v8335_v36  ;;  %6605 = vmatprep.mubr.msk.f32.mxu1 %vm703_vm5, %v8186_v32 }
 0x104   : > { %6671 = vmatprep.subr.mxu1 %v2066_v37  ;;  %6703 = vmatprep.subr.mxu0 %v2346_v38 }
 0x105   : > { %6672 = vmatpush3.msra.mxu1 %v2066_v37  ;;  %v2339_v37 = vld [vmem:[%s9983_s26 + $0x180] sm:$0xff] }
 0x106   : > { %6560 = vmatmul.mubr.msk.f32.gmra.mxu0 %vm703_vm5, %v8349_v40  ;;  %6606 = vmatmul.mubr.msk.f32.gmra.mxu1 %vm703_vm5, %v8201_v35 }
 0x107   : > { %6562 = vmatprep.mubr.msk.f32.mxu0 %vm703_vm5, %v8353_v43  ;;  %6608 = vmatprep.mubr.msk.f32.mxu1 %vm703_vm5, %v8355_v44 }
 0x108   : > { %6749 = vmatprep.subr.mxu1 %v2619_v48 }
 0x10a   : > { %6563 = vmatmul.mubr.msk.f32.gmra.mxu0 %vm703_vm5, %v8366_v49  ;;  %6609 = vmatmul.mubr.msk.f32.gmra.mxu1 %vm703_vm5, %v8370_v59 }
 0x10b   : > { %6627 = vmatprep.mubr.msk.f32.mxu0 %vm703_vm5, %v8006_v46  ;;  %6673 = vmatprep.mubr.msk.f32.mxu1 %vm703_vm5, %v8213_v39  ;;  %v2344_v46 = vld [vmem:[%s9983_s26 + $0x1a8] sm:$0xff]  ;;  %v2343_v39 = vld [vmem:[%s9983_s26 + $0x1a0] sm:$0xff] }
 0x10e   : > { %6628 = vmatmul.mubr.msk.f32.vlgmr.msra.gmra.mxu0 %vm703_vm5, %v8023_v50  ;;  %6674 = vmatmul.mubr.msk.f32.vlgmr.msra.gmra.mxu1 %vm703_vm5, %v8223_v41  ;;  %v2618_v50 = vld [vmem:[%s9983_s26 + $0x1f0] sm:$0xff]  ;;  %v2617_v41 = vld [vmem:[%s9983_s26 + $0x1e8] sm:$0xff] }
 0x10f   : > { %6704 = vmatpush3.msra.mxu0 %v2346_v38  ;;  %6630 = vmatprep.mubr.msk.f32.mxu0 %vm703_vm5, %v8029_v52  ;;  %v2613_v38 = vld [vmem:[%s9983_s26 + $0x1c8] sm:$0xff] }
 0x110   : > { %6676 = vmatprep.mubr.msk.f32.mxu1 %vm703_vm5, %v8227_v42  ;;  %6705 = vmatprep.subr.mxu0 %v2345_v60 }
 0x111   : > { %6706 = vmatpush3.msra.mxu0 %v2345_v60  ;;  %6750 = vmatpush3.msra.mxu1 %v2619_v48  ;;  %v2612_v48 = vld [vmem:[%s9983_s26 + $0x1c0] sm:$0xff]  ;;  %v2892_v60 = vld [vmem:[%s9983_s26 + $0x238] sm:$0xff] }
 0x112   : > { %6631 = vmatmul.mubr.msk.f32.gmra.mxu0 %vm703_vm5, %v8042_v55  ;;  %6677 = vmatmul.mubr.msk.f32.gmra.mxu1 %vm703_vm5, %v8241_v45 }
 0x113   : > { %6633 = vmatprep.mubr.msk.f32.mxu0 %vm703_vm5, %v8048_v57  ;;  %6679 = vmatprep.mubr.msk.f32.mxu1 %vm703_vm5, %v8245_v47 }
 0x114   : > { %6707 = vmatprep.subr.mxu0 %v2344_v46  ;;  %6751 = vmatprep.subr.mxu1 %v2618_v50 }
 0x115   : > { %6708 = vmatpush3.msra.mxu0 %v2344_v46  ;;  %6752 = vmatpush3.msra.mxu1 %v2618_v50  ;;  %v8489_v46 = vld [vmem:[#allocation2 + $0x148] sm:$0xff] }
 0x116   : > { %6634 = vmatmul.mubr.msk.f32.gmra.mxu0 %vm703_vm5, %v8068_v63  ;;  %6680 = vmatmul.mubr.msk.f32.gmra.mxu1 %vm703_vm5, %v8259_v51  ;;  %v8491_v50 = vld [vmem:[#allocation2 + $0x149] sm:$0xff] }
 0x117   : > { %6636 = vmatprep.mubr.msk.f32.mxu0 %vm703_vm5, %v8074_v1  ;;  %6682 = vmatprep.mubr.msk.f32.mxu1 %vm703_vm5, %v8263_v54 }
 0x118   : > { %6709 = vmatprep.subr.mxu0 %v2343_v39  ;;  %6753 = vmatprep.subr.mxu1 %v2617_v41 }
 0x119   : > { %6710 = vmatpush3.msra.mxu0 %v2343_v39  ;;  %6754 = vmatpush3.msra.mxu1 %v2617_v41  ;;  %v8499_v39 = vld [vmem:[#allocation2 + $0x150] sm:$0xff] }
 0x11a   : > { %6637 = vmatmul.mubr.msk.f32.gmra.mxu0 %vm703_vm5, %v8092_v5  ;;  %6683 = vmatmul.mubr.msk.f32.gmra.mxu1 %vm703_vm5, %v8277_v61  ;;  %v8503_v41 = vld [vmem:[#allocation2 + $0x151] sm:$0xff] }
 0x11b   : > { %6639 = vmatprep.mubr.msk.f32.mxu0 %vm703_vm5, %v8096_v7  ;;  %6685 = vmatprep.mubr.msk.f32.mxu1 %vm703_vm5, %v8281_v62 }
 0x11c   : > { %6711 = vmatprep.subr.mxu0 %v2342_v3  ;;  %6755 = vmatprep.subr.mxu1 %v2616_v4 }
 0x11d   : > { %6712 = vmatpush3.msra.mxu0 %v2342_v3  ;;  %6756 = vmatpush3.msra.mxu1 %v2616_v4  ;;  %v2891_v3 = vld [vmem:[%s9983_s26 + $0x230] sm:$0xff] }
 0x11e   : > { %6640 = vmatmul.mubr.msk.f32.gmra.mxu0 %vm703_vm5, %v8114_v11  ;;  %6686 = vmatmul.mubr.msk.f32.gmra.mxu1 %vm703_vm5, %v8295_v9 }
 0x11f   : > { %6642 = vmatprep.mubr.msk.f32.mxu0 %vm703_vm5, %v8118_v13  ;;  %6688 = vmatprep.mubr.msk.f32.mxu1 %vm703_vm5, %v8299_v10 }
 0x120   : > { %6713 = vmatprep.subr.mxu0 %v2341_v15  ;;  %6757 = vmatprep.subr.mxu1 %v2615_v16 }
 0x121   : > { %6714 = vmatpush3.msra.mxu0 %v2341_v15  ;;  %6758 = vmatpush3.msra.mxu1 %v2615_v16 }
 0x122   : > { %6643 = vmatmul.mubr.msk.f32.gmra.mxu0 %vm703_vm5, %v8136_v17  ;;  %6689 = vmatmul.mubr.msk.f32.gmra.mxu1 %vm703_vm5, %v8313_v21 }
 0x123   : > { %6645 = vmatprep.mubr.msk.f32.mxu0 %vm703_vm5, %v8140_v19  ;;  %6691 = vmatprep.mubr.msk.f32.mxu1 %vm703_vm5, %v8317_v22 }
 0x124   : > { %6715 = vmatprep.subr.mxu0 %v2340_v27  ;;  %6759 = vmatprep.subr.mxu1 %v2614_v28 }
 0x125   : > { %6716 = vmatpush3.msra.mxu0 %v2340_v27  ;;  %6760 = vmatpush3.msra.mxu1 %v2614_v28 }
 0x126   : > { %6646 = vmatmul.mubr.msk.f32.gmra.mxu0 %vm703_vm5, %v8158_v23  ;;  %6692 = vmatmul.mubr.msk.f32.gmra.mxu1 %vm703_vm5, %v8331_v33 }
 0x127   : > { %6648 = vmatprep.mubr.msk.f32.mxu0 %vm703_vm5, %v8162_v25  ;;  %6694 = vmatprep.mubr.msk.f32.mxu1 %vm703_vm5, %v8335_v36 }
 0x128   : > { %6717 = vmatprep.subr.mxu0 %v2339_v37  ;;  %6761 = vmatprep.subr.mxu1 %v2613_v38 }
 0x129   : > { %6718 = vmatpush3.msra.mxu0 %v2339_v37  ;;  %6762 = vmatpush3.msra.mxu1 %v2613_v38 }
 0x12a   : > { %6649 = vmatmul.mubr.msk.f32.gmra.mxu0 %vm703_vm5, %v8180_v29  ;;  %6695 = vmatmul.mubr.msk.f32.gmra.mxu1 %vm703_vm5, %v8349_v40 }
 0x12b   : > { %6651 = vmatprep.mubr.msk.f32.mxu0 %vm703_vm5, %v8184_v31  ;;  %6697 = vmatprep.mubr.msk.f32.mxu1 %vm703_vm5, %v8353_v43 }
 0x12c   : > { %6763 = vmatprep.subr.mxu1 %v2612_v48  ;;  %6795 = vmatprep.subr.mxu0 %v2892_v60 }
 0x12d   : > { %6764 = vmatpush3.msra.mxu1 %v2612_v48 }
 0x12e   : > { %6652 = vmatmul.mubr.msk.f32.gmra.mxu0 %vm703_vm5, %v8199_v34  ;;  %6698 = vmatmul.mubr.msk.f32.gmra.mxu1 %vm703_vm5, %v8366_v49 }
 0x12f   : > { %6654 = vmatprep.mubr.msk.f32.mxu0 %vm703_vm5, %v8489_v46  ;;  %6700 = vmatprep.mubr.msk.f32.mxu1 %vm703_vm5, %v8491_v50 }
 0x132   : > { %6655 = vmatmul.mubr.msk.f32.gmra.mxu0 %vm703_vm5, %v8499_v39  ;;  %6701 = vmatmul.mubr.msk.f32.gmra.mxu1 %vm703_vm5, %v8503_v41 }
 0x133   : > { %6719 = vmatprep.mubr.msk.f32.mxu0 %vm703_vm5, %v8031_v53  ;;  %6765 = vmatprep.mubr.msk.f32.mxu1 %vm703_vm5, %v8029_v52  ;;  %v2890_v52 = vld [vmem:[%s9983_s26 + $0x228] sm:$0xff]  ;;  %v2889_v53 = vld [vmem:[%s9983_s26 + $0x220] sm:$0xff] }
 0x136   : > { %6720 = vmatmul.mubr.msk.f32.vlgmr.msra.gmra.mxu0 %vm703_vm5, %v8044_v56  ;;  %6766 = vmatmul.mubr.msk.f32.vlgmr.msra.gmra.mxu1 %vm703_vm5, %v8042_v55  ;;  %v2888_v55 = vld [vmem:[%s9983_s26 + $0x218] sm:$0xff]  ;;  %v2887_v56 = vld [vmem:[%s9983_s26 + $0x210] sm:$0xff] }
 0x137   : > { %6796 = vmatpush3.msra.mxu0 %v2892_v60  ;;  %6722 = vmatprep.mubr.msk.f32.mxu0 %vm703_vm5, %v8050_v58  ;;  %v2885_v58 = vld [vmem:[%s9983_s26 + $0x200] sm:$0xff] }
 0x138   : > { %6768 = vmatprep.mubr.msk.f32.mxu1 %vm703_vm5, %v8048_v57  ;;  %6797 = vmatprep.subr.mxu0 %v2891_v3  ;;  %v2886_v57 = vld [vmem:[%s9983_s26 + $0x208] sm:$0xff] }
 0x139   : > { %6798 = vmatpush3.msra.mxu0 %v2891_v3 }
 0x13a   : > { %6723 = vmatmul.mubr.msk.f32.gmra.mxu0 %vm703_vm5, %v8070_v0  ;;  %6769 = vmatmul.mubr.msk.f32.gmra.mxu1 %vm703_vm5, %v8068_v63  ;;  %v2337_v63 = vld [vmem:[#allocation2 + $0x167] sm:$0xff] }
 0x13b   : > { %6725 = vmatprep.mubr.msk.f32.mxu0 %vm703_vm5, %v8076_v2  ;;  %6771 = vmatprep.mubr.msk.f32.mxu1 %vm703_vm5, %v8074_v1  ;;  %v2610_v0 = vld [vmem:[#allocation2 + $0x168] sm:$0xff]  ;;  %v2611_v2 = vld [vmem:[#allocation2 + $0x170] sm:$0xff] }
 0x13c   : > { %6799 = vmatprep.subr.mxu0 %v2890_v52  ;;  %v2338_v1 = vld [vmem:[#allocation2 + $0x16f] sm:$0xff] }
 0x13d   : > { %6800 = vmatpush3.msra.mxu0 %v2890_v52 }
 0x13e   : > { %6726 = vmatmul.mubr.msk.f32.gmra.mxu0 %vm703_vm5, %v8094_v6  ;;  %6772 = vmatmul.mubr.msk.f32.gmra.mxu1 %vm703_vm5, %v8092_v5  ;;  %v2883_v5 = vld [vmem:[#allocation2 + $0x169] sm:$0xff] }
 0x13f   : > { %6728 = vmatprep.mubr.msk.f32.mxu0 %vm703_vm5, %v8098_v8  ;;  %6774 = vmatprep.mubr.msk.f32.mxu1 %vm703_vm5, %v8096_v7 }
 0x140   : > { %6801 = vmatprep.subr.mxu0 %v2889_v53 }
 0x141   : > { %6802 = vmatpush3.msra.mxu0 %v2889_v53 }
 0x142   : > { %6729 = vmatmul.mubr.msk.f32.gmra.mxu0 %vm703_vm5, %v8116_v12  ;;  %6775 = vmatmul.mubr.msk.f32.gmra.mxu1 %vm703_vm5, %v8114_v11  ;;  %v2884_v11 = vld [vmem:[#allocation2 + $0x171] sm:$0xff] }
 0x143   : > { %6731 = vmatprep.mubr.msk.f32.mxu0 %vm703_vm5, %v8120_v14  ;;  %6777 = vmatprep.mubr.msk.f32.mxu1 %vm703_vm5, %v8118_v13 }
 0x144   : > { %6803 = vmatprep.subr.mxu0 %v2888_v55 }
 0x145   : > { %6804 = vmatpush3.msra.mxu0 %v2888_v55 }
 0x146   : > { %6732 = vmatmul.mubr.msk.f32.gmra.mxu0 %vm703_vm5, %v8138_v18  ;;  %6778 = vmatmul.mubr.msk.f32.gmra.mxu1 %vm703_vm5, %v8136_v17 }
 0x147   : > { %6734 = vmatprep.mubr.msk.f32.mxu0 %vm703_vm5, %v8142_v20  ;;  %6780 = vmatprep.mubr.msk.f32.mxu1 %vm703_vm5, %v8140_v19 }
 0x148   : > { %6805 = vmatprep.subr.mxu0 %v2887_v56 }
 0x149   : > { %6806 = vmatpush3.msra.mxu0 %v2887_v56 }
 0x14a   : > { %6735 = vmatmul.mubr.msk.f32.gmra.mxu0 %vm703_vm5, %v8160_v24  ;;  %6781 = vmatmul.mubr.msk.f32.gmra.mxu1 %vm703_vm5, %v8158_v23 }
 0x14b   : > { %6737 = vmatprep.mubr.msk.f32.mxu0 %vm703_vm5, %v8164_v26  ;;  %6783 = vmatprep.mubr.msk.f32.mxu1 %vm703_vm5, %v8162_v25 }
 0x14c   : > { %6807 = vmatprep.subr.mxu0 %v2886_v57 }
 0x14d   : > { %6808 = vmatpush3.msra.mxu0 %v2886_v57 }
 0x14e   : > { %6738 = vmatmul.mubr.msk.f32.gmra.mxu0 %vm703_vm5, %v8182_v30  ;;  %6784 = vmatmul.mubr.msk.f32.gmra.mxu1 %vm703_vm5, %v8180_v29 }
 0x14f   : > { %6740 = vmatprep.mubr.msk.f32.mxu0 %vm703_vm5, %v8186_v32  ;;  %6786 = vmatprep.mubr.msk.f32.mxu1 %vm703_vm5, %v8184_v31 }
 0x150   : > { %6809 = vmatprep.subr.mxu0 %v2885_v58 }
 0x151   : > { %6810 = vmatpush3.msra.mxu0 %v2885_v58 }
 0x152   : > { %6741 = vmatmul.mubr.msk.f32.gmra.mxu0 %vm703_vm5, %v8201_v35  ;;  %6787 = vmatmul.mubr.msk.f32.gmra.mxu1 %vm703_vm5, %v8199_v34 }
 0x153   : > { %6743 = vmatprep.mubr.msk.f32.mxu0 %vm703_vm5, %v8355_v44  ;;  %6789 = vmatprep.mubr.msk.f32.mxu1 %vm703_vm5, %v8489_v46 }
 0x156   : > { %6744 = vmatmul.mubr.msk.f32.gmra.mxu0 %vm703_vm5, %v8370_v59  ;;  %6790 = vmatmul.mubr.msk.f32.gmra.mxu1 %vm703_vm5, %v8499_v39 }
 0x157   : > { %6746 = vmatprep.mubr.msk.f32.mxu0 %vm703_vm5, %v2337_v63  ;;  %6792 = vmatprep.mubr.msk.f32.mxu1 %vm703_vm5, %v2610_v0 }
 0x15a   : > { %6747 = vmatmul.mubr.msk.f32.gmra.mxu0 %vm703_vm5, %v2338_v1  ;;  %6793 = vmatmul.mubr.msk.f32.gmra.mxu1 %vm703_vm5, %v2611_v2 }
 0x15b   : > { %6811 = vmatprep.mubr.msk.f32.mxu0 %vm703_vm5, %v8227_v42 }
 0x15e   : > { %6812 = vmatmul.mubr.msk.f32.vlgmr.msra.gmra.mxu0 %vm703_vm5, %v8241_v45 }
 0x15f   : > { %6814 = vmatprep.mubr.msk.f32.mxu0 %vm703_vm5, %v8245_v47 }
 0x162   : > { %6815 = vmatmul.mubr.msk.f32.gmra.mxu0 %vm703_vm5, %v8259_v51 }
 0x163   : > { %6817 = vmatprep.mubr.msk.f32.mxu0 %vm703_vm5, %v8263_v54 }
 0x166   : > { %6818 = vmatmul.mubr.msk.f32.gmra.mxu0 %vm703_vm5, %v8277_v61 }
 0x167   : > { %6820 = vmatprep.mubr.msk.f32.mxu0 %vm703_vm5, %v8281_v62 }
 0x16a   : > { %6821 = vmatmul.mubr.msk.f32.gmra.mxu0 %vm703_vm5, %v8295_v9 }
 0x16b   : > { %6823 = vmatprep.mubr.msk.f32.mxu0 %vm703_vm5, %v8299_v10 }
 0x16e   : > { %6824 = vmatmul.mubr.msk.f32.gmra.mxu0 %vm703_vm5, %v8313_v21 }
 0x16f   : > { %6826 = vmatprep.mubr.msk.f32.mxu0 %vm703_vm5, %v8317_v22 }
 0x172   : > { %6827 = vmatmul.mubr.msk.f32.gmra.mxu0 %vm703_vm5, %v8331_v33 }
 0x173   : > { %6829 = vmatprep.mubr.msk.f32.mxu0 %vm703_vm5, %v8335_v36 }
 0x176   : > { %6830 = vmatmul.mubr.msk.f32.gmra.mxu0 %vm703_vm5, %v8349_v40 }
 0x177   : > { %6832 = vmatprep.mubr.msk.f32.mxu0 %vm703_vm5, %v8353_v43 }
 0x17a   : > { %6833 = vmatmul.mubr.msk.f32.gmra.mxu0 %vm703_vm5, %v8366_v49 }
 0x17b   : > { %6835 = vmatprep.mubr.msk.f32.mxu0 %vm703_vm5, %v8491_v50 }
 0x17d   : > { %v6445_v6 = vpop.f32.mrf.mxu0 }
 0x17e   : > { %v6491_v7 = vpop.f32.mrf.mxu1  ;;  %6836 = vmatmul.mubr.msk.f32.gmra.mxu0 %vm703_vm5, %v8503_v41 }
 0x17f   : > { %v8642_v8 = vadd.f32 %v6491_v7, %v6445_v6  ;;  %6838 = vmatprep.mubr.msk.f32.mxu0 %vm703_vm5, %v2883_v5  ;;  %v902_v12 = vpop.f32.mrf.mxu0 }
 0x180   : > { %v1127_v13 = vpop.f32.mrf.mxu1 }
 0x181   : > { %v1128_v14 = vadd.f32 %v1127_v13, %v902_v12  ;;  %v6448_v17 = vpop.f32.mrf.mxu0 }
 0x182   : > { %v6494_v18 = vpop.f32.mrf.mxu1  ;;  %6839 = vmatmul.mubr.msk.f32.gmra.mxu0 %vm703_vm5, %v2884_v11 }
 0x183   : > { %v1143_v19 = vadd.f32 %v6494_v18, %v6448_v17  ;;  %v912_v20 = vpop.f32.mrf.mxu0 }
 0x184   : > { %v1137_v23 = vpop.f32.mrf.mxu1 }
 0x185   : > { %v1138_v24 = vadd.f32 %v1137_v23, %v912_v20 }
 0x186   : > { %v6451_v25 = vpop.f32.mrf.mxu0  ;;  %v6497_v26 = vpop.f32.mrf.mxu1 }
 0x187   : > { %v8646_v29 = vadd.f32 %v6497_v26, %v6451_v25 }
 0x188   : > { %v922_v30 = vpop.f32.mrf.mxu0  ;;  %v1147_v31 = vpop.f32.mrf.mxu1 }
 0x189   : > { %v8648_v32 = vadd.f32 %v1147_v31, %v922_v30 }
 0x18a   : > { %v6454_v34 = vpop.f32.mrf.mxu0  ;;  %v6500_v35 = vpop.f32.mrf.mxu1 }
 0x18b   : > { %v8650_v42 = vadd.f32 %v6500_v35, %v6454_v34 }
 0x18c   : > { %v932_v45 = vpop.f32.mrf.mxu0  ;;  %v1157_v47 = vpop.f32.mrf.mxu1 }
 0x18d   : > { %v8652_v51 = vadd.f32 %v1157_v47, %v932_v45 }
 0x18e   : > { %v6457_v54 = vpop.f32.mrf.mxu0  ;;  %v6503_v61 = vpop.f32.mrf.mxu1 }
 0x18f   : > { %v8654_v62 = vadd.f32 %v6503_v61, %v6457_v54 }
 0x190   : > { %v942_v9 = vpop.f32.mrf.mxu0  ;;  %v1167_v10 = vpop.f32.mrf.mxu1 }
 0x191   : > { %v8656_v21 = vadd.f32 %v1167_v10, %v942_v9 }
 0x192   : > { %v6460_v22 = vpop.f32.mrf.mxu0  ;;  %v6506_v33 = vpop.f32.mrf.mxu1 }
 0x193   : > { %v8658_v36 = vadd.f32 %v6506_v33, %v6460_v22 }
 0x194   : > { %v952_v40 = vpop.f32.mrf.mxu0  ;;  %v1177_v43 = vpop.f32.mrf.mxu1 }
 0x195   : > { %v8660_v44 = vadd.f32 %v1177_v43, %v952_v40 }
 0x196   : > { %v6463_v49 = vpop.f32.mrf.mxu0  ;;  %v6509_v59 = vpop.f32.mrf.mxu1 }
 0x197   : > { %v8662_v4 = vadd.f32 %v6509_v59, %v6463_v49 }
 0x198   : > { %v962_v15 = vpop.f32.mrf.mxu0  ;;  %v1187_v16 = vpop.f32.mrf.mxu1 }
 0x199   : > { %v8664_v27 = vadd.f32 %v1187_v16, %v962_v15 }
 0x19a   : > { %v6466_v28 = vpop.f32.mrf.mxu0  ;;  %v6512_v37 = vpop.f32.mrf.mxu1 }
 0x19b   : > { %v8666_v38 = vadd.f32 %v6512_v37, %v6466_v28 }
 0x19c   : > { %v972_v48 = vpop.f32.mrf.mxu0  ;;  %v1197_v60 = vpop.f32.mrf.mxu1 }
 0x19d   : > { %v8668_v46 = vadd.f32 %v1197_v60, %v972_v48 }
 0x19e   : > { %v6469_v50 = vpop.f32.mrf.mxu0  ;;  %v6515_v39 = vpop.f32.mrf.mxu1 }
 0x19f   : > { %v8670_v41 = vadd.f32 %v6515_v39, %v6469_v50 }
 0x1a0   : > { %v982_v3 = vpop.f32.mrf.mxu0  ;;  %v1207_v52 = vpop.f32.mrf.mxu1 }
 0x1a1   : > { %v8672_v53 = vadd.f32 %v1207_v52, %v982_v3 }
 0x1a2   : > { %v6472_v55 = vpop.f32.mrf.mxu0  ;;  %v6518_v56 = vpop.f32.mrf.mxu1 }
 0x1a3   : > { %v8674_v57 = vadd.f32 %v6518_v56, %v6472_v55 }
 0x1a4   : > { %v992_v58 = vpop.f32.mrf.mxu0  ;;  %v1217_v63 = vpop.f32.mrf.mxu1 }
 0x1a5   : > { %v8676_v0 = vadd.f32 %v1217_v63, %v992_v58 }
 0x1a6   : > { %v6537_v1 = vpop.f32.mrf.mxu0  ;;  %v6583_v2 = vpop.f32.mrf.mxu1 }
 0x1a7   : > { %v1480_v5 = vadd.f32 %v6537_v1, %v8642_v8 }
 0x1a8   : > { %v1380_v6 = vpop.f32.mrf.mxu0  ;;  %v1654_v7 = vpop.f32.mrf.mxu1 }
 0x1a9   : > { %v1479_v11 = vadd.f32 %v1380_v6, %v1128_v14  ;;  %v8679_v12 = vadd.f32 %v6583_v2, %v1480_v5 }
 0x1aa   : > { %v6540_v13 = vpop.f32.mrf.mxu0  ;;  %v6586_v17 = vpop.f32.mrf.mxu1 }
 0x1ab   : > { %v1482_v18 = vadd.f32 %v6540_v13, %v1143_v19  ;;  %v8681_v20 = vadd.f32 %v1654_v7, %v1479_v11 }
 0x1ac   : > { %v1390_v23 = vpop.f32.mrf.mxu0  ;;  %v1664_v25 = vpop.f32.mrf.mxu1 }
 0x1ad   : > { %v1481_v26 = vadd.f32 %v1390_v23, %v1138_v24  ;;  %v8683_v30 = vadd.f32 %v6586_v17, %v1482_v18 }
 0x1ae   : > { %v6543_v31 = vpop.f32.mrf.mxu0  ;;  %v6589_v34 = vpop.f32.mrf.mxu1 }
 0x1af   : > { %v1484_v35 = vadd.f32 %v6543_v31, %v8646_v29  ;;  %v8686_v8 = vadd.f32 %v1664_v25, %v1481_v26 }
 0x1b0   : > { %v1400_v45 = vpop.f32.mrf.mxu0  ;;  %v1674_v14 = vpop.f32.mrf.mxu1 }
 0x1b1   : > { %v1483_v47 = vadd.f32 %v1400_v45, %v8648_v32  ;;  %v8689_v54 = vadd.f32 %v6589_v34, %v1484_v35 }
 0x1b2   : > { %v6546_v19 = vpop.f32.mrf.mxu0  ;;  %v6592_v61 = vpop.f32.mrf.mxu1 }
 0x1b3   : > { %v1486_v9 = vadd.f32 %v6546_v19, %v8650_v42  ;;  %v8692_v10 = vadd.f32 %v1674_v14, %v1483_v47 }
 0x1b4   : > { %v1410_v24 = vpop.f32.mrf.mxu0  ;;  %v1684_v22 = vpop.f32.mrf.mxu1 }
 0x1b5   : > { %v1485_v33 = vadd.f32 %v1410_v24, %v8652_v51  ;;  %v8695_v40 = vadd.f32 %v6592_v61, %v1486_v9 }
 0x1b6   : > { %v6549_v29 = vpop.f32.mrf.mxu0  ;;  %v6595_v43 = vpop.f32.mrf.mxu1 }
 0x1b7   : > { %v1488_v49 = vadd.f32 %v6549_v29, %v8654_v62  ;;  %v8698_v59 = vadd.f32 %v1684_v22, %v1485_v33 }
 0x1b8   : > { %v1420_v32 = vpop.f32.mrf.mxu0  ;;  %v1694_v15 = vpop.f32.mrf.mxu1 }
 0x1b9   : > { %v1487_v16 = vadd.f32 %v1420_v32, %v8656_v21  ;;  %v8701_v28 = vadd.f32 %v6595_v43, %v1488_v49 }
 0x1ba   : > { %v6552_v42 = vpop.f32.mrf.mxu0  ;;  %v6598_v37 = vpop.f32.mrf.mxu1 }
 0x1bb   : > { %v1490_v48 = vadd.f32 %v6552_v42, %v8658_v36  ;;  %v8704_v60 = vadd.f32 %v1694_v15, %v1487_v16 }
 0x1bc   : > { %v1430_v51 = vpop.f32.mrf.mxu0  ;;  %v1704_v50 = vpop.f32.mrf.mxu1 }
 0x1bd   : > { %v1489_v39 = vadd.f32 %v1430_v51, %v8660_v44  ;;  %v8707_v3 = vadd.f32 %v6598_v37, %v1490_v48 }
 0x1be   : > { %v6555_v62 = vpop.f32.mrf.mxu0  ;;  %v6601_v52 = vpop.f32.mrf.mxu1 }
 0x1bf   : > { %v1492_v55 = vadd.f32 %v6555_v62, %v8662_v4  ;;  %v8710_v56 = vadd.f32 %v1704_v50, %v1489_v39 }
 0x1c0   : > { %v1440_v21 = vpop.f32.mrf.mxu0  ;;  %v1714_v58 = vpop.f32.mrf.mxu1 }
 0x1c1   : > { %v1491_v63 = vadd.f32 %v1440_v21, %v8664_v27  ;;  %v8713_v1 = vadd.f32 %v6601_v52, %v1492_v55 }
 0x1c2   : > { %v6558_v36 = vpop.f32.mrf.mxu0  ;;  %v6604_v2 = vpop.f32.mrf.mxu1 }
 0x1c3   : > { %v1494_v5 = vadd.f32 %v6558_v36, %v8666_v38  ;;  %v8716_v6 = vadd.f32 %v1714_v58, %v1491_v63 }
 0x1c4   : > { %v1450_v44 = vpop.f32.mrf.mxu0  ;;  %v1724_v7 = vpop.f32.mrf.mxu1 }
 0x1c5   : > { %v1493_v11 = vadd.f32 %v1450_v44, %v8668_v46  ;;  %v1768_v13 = vadd.f32 %v6604_v2, %v1494_v5 }
 0x1c6   : > { %v6561_v4 = vpop.f32.mrf.mxu0  ;;  %v6607_v17 = vpop.f32.mrf.mxu1 }
 0x1c7   : > { %v1496_v18 = vadd.f32 %v6561_v4, %v8670_v41  ;;  %v1767_v23 = vadd.f32 %v1724_v7, %v1493_v11 }
 0x1c8   : > { %v1460_v25 = vpop.f32.mrf.mxu0  ;;  %v1734_v27 = vpop.f32.mrf.mxu1 }
 0x1c9   : > { %v1495_v26 = vadd.f32 %v1460_v25, %v8672_v53  ;;  %v1770_v31 = vadd.f32 %v6607_v17, %v1496_v18 }
 0x1ca   : > { %v6564_v34 = vpop.f32.mrf.mxu0  ;;  %v6610_v35 = vpop.f32.mrf.mxu1 }
 0x1cb   : > { %v1498_v38 = vadd.f32 %v6564_v34, %v8674_v57  ;;  %v1769_v45 = vadd.f32 %v1734_v27, %v1495_v26 }
 0x1cc   : > { %v1470_v14 = vpop.f32.mrf.mxu0  ;;  %v1744_v47 = vpop.f32.mrf.mxu1 }
 0x1cd   : > { %v1497_v46 = vadd.f32 %v1470_v14, %v8676_v0  ;;  %v1772_v19 = vadd.f32 %v6610_v35, %v1498_v38 }
 0x1ce   : > { %v6629_v61 = vpop.f32.mrf.mxu0  ;;  %v8723_v9 = vpop.f32.mrf.mxu1 }
 0x1cf   : > { %v1771_v41 = vadd.f32 %v1744_v47, %v1497_v46  ;;  %v8726_v24 = vadd.f32 %v6629_v61, %v8679_v12 }
 0x1d0   : > { %v1927_v22 = vpop.f32.mrf.mxu0  ;;  %v8728_v53 = vpop.f32.mrf.mxu1 }
 0x1d1   : > { %v8731_v33 = vadd.f32 %v1927_v22, %v8681_v20 }
 0x1d2   : > { %v6632_v57 = vpop.f32.mrf.mxu0  ;;  %v8733_v29 = vpop.f32.mrf.mxu1 }
 0x1d3   : > { %v8736_v43 = vadd.f32 %v6632_v57, %v8683_v30 }
 0x1d4   : > { %v1937_v0 = vpop.f32.mrf.mxu0  ;;  %v8738_v49 = vpop.f32.mrf.mxu1 }
 0x1d5   : > { %v8741_v32 = vadd.f32 %v1937_v0, %v8686_v8 }
 0x1d6   : > { %v6635_v12 = vpop.f32.mrf.mxu0  ;;  %v8743_v15 = vpop.f32.mrf.mxu1 }
 0x1d7   : > { %v8746_v16 = vadd.f32 %v6635_v12, %v8689_v54 }
 0x1d8   : > { %v1947_v20 = vpop.f32.mrf.mxu0  ;;  %v8748_v42 = vpop.f32.mrf.mxu1 }
 0x1d9   : > { %v8751_v37 = vadd.f32 %v1947_v20, %v8692_v10 }
 0x1da   : > { %v6638_v30 = vpop.f32.mrf.mxu0  ;;  %v8753_v48 = vpop.f32.mrf.mxu1 }
 0x1db   : > { %v8756_v51 = vadd.f32 %v6638_v30, %v8695_v40 }
 0x1dc   : > { %v1957_v8 = vpop.f32.mrf.mxu0  ;;  %v8758_v50 = vpop.f32.mrf.mxu1 }
 0x1dd   : > { %v8761_v39 = vadd.f32 %v1957_v8, %v8698_v59 }
 0x1de   : > { %v6641_v54 = vpop.f32.mrf.mxu0  ;;  %v8763_v62 = vpop.f32.mrf.mxu1 }
 0x1df   : > { %v8766_v52 = vadd.f32 %v6641_v54, %v8701_v28 }
 0x1e0   : > { %v1967_v10 = vpop.f32.mrf.mxu0  ;;  %v8768_v55 = vpop.f32.mrf.mxu1 }
 0x1e1   : > { %v8771_v21 = vadd.f32 %v1967_v10, %v8704_v60 }
 0x1e2   : > { %v6644_v40 = vpop.f32.mrf.mxu0  ;;  %v8773_v58 = vpop.f32.mrf.mxu1 }
 0x1e3   : > { %v8776_v63 = vadd.f32 %v6644_v40, %v8707_v3 }
 0x1e4   : > { %v1977_v59 = vpop.f32.mrf.mxu0  ;;  %v8778_v36 = vpop.f32.mrf.mxu1 }
 0x1e5   : > { %v8781_v2 = vadd.f32 %v1977_v59, %v8710_v56 }
 0x1e6   : > { %v6647_v28 = vpop.f32.mrf.mxu0  ;;  %v8783_v5 = vpop.f32.mrf.mxu1 }
 0x1e7   : > { %v8786_v44 = vadd.f32 %v6647_v28, %v8713_v1 }
 0x1e8   : > { %v1987_v60 = vpop.f32.mrf.mxu0  ;;  %v8788_v7 = vpop.f32.mrf.mxu1 }
 0x1e9   : > { %v8791_v11 = vadd.f32 %v1987_v60, %v8716_v6 }
 0x1ea   : > { %v6650_v3 = vpop.f32.mrf.mxu0  ;;  %v8793_v4 = vpop.f32.mrf.mxu1 }
 0x1eb   : > { %v8795_v17 = vadd.f32 %v6650_v3, %v1768_v13 }
 0x1ec   : > { %v1997_v18 = vpop.f32.mrf.mxu0  ;;  %v8797_v56 = vpop.f32.mrf.mxu1 }
 0x1ed   : > { %9984 = vst [vmem:[#allocation23_spill] sm:$0xff] %v8797_v56  ;;  %v8799_v25 = vadd.f32 %v1997_v18, %v1767_v23 }
 0x1ee   : > { %v6653_v27 = vpop.f32.mrf.mxu0  ;;  %v8801_v26 = vpop.f32.mrf.mxu1 }
 0x1ef   : > { %9985 = vst [vmem:[#allocation24_spill] sm:$0xff] %v8799_v25  ;;  %9986 = vst [vmem:[#allocation25_spill] sm:$0xff] %v8801_v26  ;;  %v8803_v1 = vadd.f32 %v6653_v27, %v1770_v31 }
 0x1f0   : > { %v2007_v34 = vpop.f32.mrf.mxu0  ;;  %v8805_v35 = vpop.f32.mrf.mxu1 }
 0x1f1   : > { %9987 = vst [vmem:[#allocation26_spill] sm:$0xff] %v8803_v1  ;;  %9988 = vst [vmem:[#allocation27_spill] sm:$0xff] %v8805_v35  ;;  %v8807_v6 = vadd.f32 %v2007_v34, %v1769_v45 }
 0x1f2   : > { %v6656_v38 = vpop.f32.mrf.mxu0  ;;  %v8809_v14 = vpop.f32.mrf.mxu1 }
 0x1f3   : > { %9989 = vst [vmem:[#allocation28_spill] sm:$0xff] %v8807_v6  ;;  %9990 = vst [vmem:[#allocation29_spill] sm:$0xff] %v8809_v14  ;;  %v8811_v13 = vadd.f32 %v6656_v38, %v1772_v19  ;;  %v2300_v14 = vadd.f32 %v8723_v9, %v8726_v24  ;;  %v2299_v6 = vadd.f32 %v8728_v53, %v8731_v33  ;;  %v8864_v33 = vld [vmem:[%s9998_s28] ss:$0 sm:$0xff] }
 0x1f4   : > { %v2017_v47 = vpop.f32.mrf.mxu0  ;;  %v8813_v46 = vpop.f32.mrf.mxu1  ;;  %v2301_v9 = vadd.f32 %v8738_v49, %v8741_v32 }
 0x1f5   : > { %9991 = vst [vmem:[#allocation30_spill] sm:$0xff] %v8811_v13  ;;  %9992 = vst [vmem:[#allocation31_spill] sm:$0xff] %v8813_v46  ;;  %v8815_v23 = vadd.f32 %v2017_v47, %v1771_v41 }
 0x1f6   : > { %v6721_v61 = vpop.f32.mrf.mxu0  ;;  %v6767_v22 = vpop.f32.mrf.mxu1 }
 0x1f7   : > { %9993 = vst [vmem:[#allocation32_spill] sm:$0xff] %v8815_v23  ;;  %v2573_v26 = vadd.f32 %v6721_v61, %v2300_v14  ;;  %v2303_v14 = vadd.f32 %v8748_v42, %v8751_v37  ;;  %v2305_v42 = vadd.f32 %v8758_v50, %v8761_v39 }
 0x1f8   : > { %v2473_v57 = vpop.f32.mrf.mxu0  ;;  %v2746_v31 = vpop.f32.mrf.mxu1 }
 0x1f9   : > { %v2572_v56 = vadd.f32 %v2473_v57, %v2299_v6  ;;  %v2846_v24 = vadd.f32 %v6767_v22, %v2573_v26 }
 0x1fa   : > { %v6724_v0 = vpop.f32.mrf.mxu0  ;;  %v6770_v20 = vpop.f32.mrf.mxu1 }
 0x1fc   : > { %v2483_v12 = vpop.f32.mrf.mxu0  ;;  %v2756_v45 = vpop.f32.mrf.mxu1 }
 0x1fe   : > { %v6727_v30 = vpop.f32.mrf.mxu0  ;;  %v6773_v10 = vpop.f32.mrf.mxu1 }
 0x200   : > { %v2493_v8 = vpop.f32.mrf.mxu0  ;;  %v2766_v59 = vpop.f32.mrf.mxu1 }
 0x201   : > { %v2576_v22 = vadd.f32 %v2493_v8, %v2303_v14 }
 0x202   : > { %v6730_v54 = vpop.f32.mrf.mxu0  ;;  %v8823_v60 = vpop.f32.mrf.mxu1 }
 0x203   : > { %v2849_v8 = vadd.f32 %v2766_v59, %v2576_v22  ;;  %v2310_v59 = vadd.f32 %v8773_v58, %v8776_v63 }
 0x204   : > { %v2503_v40 = vpop.f32.mrf.mxu0  ;;  %v8829_v27 = vpop.f32.mrf.mxu1 }
 0x206   : > { %v8817_v19 = vpop.f32.mrf.mxu0  ;;  %v8835_v47 = vpop.f32.mrf.mxu1 }
 0x208   : > { %v8819_v28 = vpop.f32.mrf.mxu0  ;;  %v8843_v13 = vpop.f32.mrf.mxu1 }
 0x20a   : > { %v8821_v41 = vpop.f32.mrf.mxu0 }
 0x20b   : > { %v2583_v58 = vadd.f32 %v8821_v41, %v2310_v59 }
 0x20c   : > { %v8825_v3 = vpop.f32.mrf.mxu0 }
 0x20e   : > { %v8827_v18 = vpop.f32.mrf.mxu0 }
 0x210   : > { %v8831_v34 = vpop.f32.mrf.mxu0 }
 0x212   : > { %v8833_v38 = vpop.f32.mrf.mxu0 }
 0x213   : > { %9994 = vst [vmem:[#allocation33_spill] sm:$0xff] %v8833_v38  ;;  %v2302_v38 = vadd.f32 %v8733_v29, %v8736_v43  ;;  %v2845_v29 = vadd.f32 %v2746_v31, %v2572_v56  ;;  %v2574_v43 = vadd.f32 %v2483_v12, %v2301_v9 }
 0x214   : > { %v8837_v46 = vpop.f32.mrf.mxu0 }
 0x215   : > { %9995 = vst [vmem:[#allocation34_spill] sm:$0xff] %v8837_v46  ;;  %v8853_v46 = vpop.f32.mrf.mxu1  ;;  %v2575_v25 = vadd.f32 %v6724_v0, %v2302_v38  ;;  %v2847_v38 = vadd.f32 %v2756_v45, %v2574_v43  ;;  %v2308_v45 = vadd.f32 %v8763_v62, %v8766_v52 }
 0x216   : > { %v8839_v23 = vpop.f32.mrf.mxu0 }
 0x217   : > { %9996 = vst [vmem:[#allocation35_spill] sm:$0xff] %v8839_v23  ;;  %v8868_v57 = vpop.f32.mrf.mxu1  ;;  %v2848_v32 = vadd.f32 %v6770_v20, %v2575_v25 }
 0x218   : > { %v8845_v35 = vpop.f32.mrf.mxu0 }
 0x219   : > { %9997 = vst [vmem:[#allocation36_spill] sm:$0xff] %v8845_v35  ;;  %v2304_v35 = vadd.f32 %v8743_v15, %v8746_v16  ;;  %v2306_v16 = vadd.f32 %v8753_v48, %v8756_v51 }
 0x21a   : > { %v8849_v1 = vpop.f32.mrf.mxu0 }
 0x21b   : > { %v2577_v61 = vadd.f32 %v6727_v30, %v2304_v35  ;;  %v8876_v35 = vpop.f32.mrf.mxu1  ;;  %v2579_v20 = vadd.f32 %v6730_v54, %v2306_v16  ;;  %v2307_v54 = vadd.f32 %v8768_v55, %v8771_v21  ;;  %v2312_v16 = vadd.f32 %v8783_v5, %v8786_v44 }
 0x21c   : > { %v8855_v23 = vpop.f32.mrf.mxu0  ;;  %v2856_v5 = vadd.f32 %v8853_v46, %v2583_v58 }
 0x21d   : > { %v2850_v37 = vadd.f32 %v6773_v10, %v2577_v61  ;;  %v2580_v14 = vadd.f32 %v8819_v28, %v2307_v54 }
 0x21e   : > { %v6813_v53 = vpop.f32.mrf.mxu0 }
 0x21f   : > { %v3119_v6 = vadd.f32 %v6813_v53, %v2846_v24  ;;  %v2578_v24 = vadd.f32 %v2503_v40, %v2305_v42  ;;  %v2581_v53 = vadd.f32 %v8817_v19, %v2308_v45  ;;  %v2853_v22 = vadd.f32 %v8843_v13, %v2580_v14  ;;  %v10007_v14 = vld [vmem:[#allocation35_spill] sm:$0xff] }
 0x220   : > { %v3019_v49 = vpop.f32.mrf.mxu0  ;;  %v2314_v42 = vadd.f32 %v8793_v4, %v8795_v17 }
 0x221   : > { %v3146_v26 = vadd.f32 %v8864_v33, %v3119_v6  ;;  %v3118_v15 = vadd.f32 %v3019_v49, %v2845_v29  ;;  %v2806_v29 = vpop.f32.mrf.mxu1  ;;  %v2852_v6 = vadd.f32 %v8823_v60, %v2579_v20  ;;  %v2851_v55 = vadd.f32 %v8829_v27, %v2578_v24  ;;  %v9999_v20 = vld [vmem:[#allocation24_spill] sm:$0xff]  ;;  %v10002_v24 = vld [vmem:[#allocation26_spill] sm:$0xff] }
 0x222   : > { %v6816_v0 = vpop.f32.mrf.mxu0  ;;  %v2309_v49 = vadd.f32 %v8778_v36, %v8781_v2 }
 0x223   : > { %v3166_v56 = vmax.f32 %v3146_v26, 0.0  ;;  %v3145_v31 = vadd.f32 %v8864_v33, %v3118_v15  ;;  %v3121_v12 = vadd.f32 %v6816_v0, %v2848_v32  ;;  %v2854_v32 = vadd.f32 %v8835_v47, %v2581_v53  ;;  %v6788_v26 = vpop.f32.mrf.mxu1  ;;  %v10004_v53 = vld [vmem:[#allocation34_spill] sm:$0xff] }
 0x224   : > { %v3029_v25 = vpop.f32.mrf.mxu0  ;;  %v2582_v36 = vadd.f32 %v8825_v3, %v2309_v49 }
 0x225   : > { %3186 = vst.msk [vmem:[#allocation2 + $0x30] sm:$0xff] %vm703_vm5, %v3166_v56  ;;  %v3165_v30 = vmax.f32 %v3145_v31, 0.0  ;;  %v3148_v48 = vadd.f32 %v8864_v33, %v3121_v12  ;;  %v3120_v51 = vadd.f32 %v3029_v25, %v2847_v38  ;;  %v2311_v38 = vadd.f32 %v8788_v7, %v8791_v11  ;;  %v2816_v31 = vpop.f32.mrf.mxu1 }
 0x226   : > { %v6819_v9 = vpop.f32.mrf.mxu0  ;;  %v2585_v56 = vadd.f32 %v8827_v18, %v2312_v16  ;;  %v2855_v7 = vadd.f32 %v8868_v57, %v2582_v36 }
 0x227   : > { %3185 = vst.msk [vmem:[#allocation2 + $0x28] sm:$0xff] %vm703_vm5, %v3165_v30  ;;  %v3168_v50 = vmax.f32 %v3148_v48, 0.0  ;;  %v3147_v39 = vadd.f32 %v8864_v33, %v3120_v51  ;;  %v3123_v10 = vadd.f32 %v6819_v9, %v2850_v37  ;;  %v2584_v37 = vadd.f32 %v8831_v34, %v2311_v38  ;;  %v10000_v30 = vld [vmem:[#allocation23_spill] sm:$0xff]  ;;  %v6791_v45 = vpop.f32.mrf.mxu1  ;;  %v10001_v9 = vld [vmem:[#allocation33_spill] sm:$0xff] }
 0x228   : > { %v3039_v43 = vpop.f32.mrf.mxu0  ;;  %v2313_v48 = vadd.f32 %v10000_v30, %v9999_v20  ;;  %v2858_v51 = vadd.f32 %v8876_v35, %v2585_v56  ;;  %v2587_v4 = vadd.f32 %v10001_v9, %v2314_v42 }
 0x229   : > { %3188 = vst.msk [vmem:[#allocation2 + $0x50] sm:$0xff] %vm703_vm5, %v3168_v50  ;;  %v3167_v62 = vmax.f32 %v3147_v39, 0.0  ;;  %v3150_v52 = vadd.f32 %v8864_v33, %v3123_v10  ;;  %v3122_v40 = vadd.f32 %v3039_v43, %v2849_v8  ;;  %v10003_v50 = vld [vmem:[#allocation25_spill] sm:$0xff]  ;;  %v2857_v10 = vadd.f32 %v2806_v29, %v2584_v37 }
 0x22a   : > { %v6822_v61 = vpop.f32.mrf.mxu0  ;;  %v2316_v39 = vadd.f32 %v10003_v50, %v10002_v24  ;;  %v2586_v43 = vadd.f32 %v10004_v53, %v2313_v48 }
 0x22b   : > { %3187 = vst.msk [vmem:[#allocation2 + $0x48] sm:$0xff] %vm703_vm5, %v3167_v62  ;;  %v3170_v21 = vmax.f32 %v3150_v52, 0.0  ;;  %v3149_v19 = vadd.f32 %v8864_v33, %v3122_v40  ;;  %v3125_v60 = vadd.f32 %v6822_v61, %v2852_v6  ;;  %v10005_v52 = vld [vmem:[#allocation28_spill] sm:$0xff]  ;;  %v10006_v40 = vld [vmem:[#allocation27_spill] sm:$0xff] }
 0x22c   : > { %v3049_v15 = vpop.f32.mrf.mxu0  ;;  %v2315_v59 = vadd.f32 %v10006_v40, %v10005_v52  ;;  %v2589_v61 = vadd.f32 %v10007_v14, %v2316_v39  ;;  %v2859_v16 = vadd.f32 %v2816_v31, %v2586_v43 }
 0x22d   : > { %3190 = vst.msk [vmem:[#allocation2 + $0x70] sm:$0xff] %vm703_vm5, %v3170_v21  ;;  %v3169_v63 = vmax.f32 %v3149_v19, 0.0  ;;  %v3152_v28 = vadd.f32 %v8864_v33, %v3125_v60  ;;  %v3124_v27 = vadd.f32 %v3049_v15, %v2851_v55  ;;  %v2826_v55 = vpop.f32.mrf.mxu1  ;;  %v2860_v19 = vadd.f32 %v6788_v26, %v2587_v4  ;;  %v10009_v15 = vld [vmem:[#allocation29_spill] sm:$0xff]  ;;  %v10011_v26 = vld [vmem:[#allocation32_spill] sm:$0xff] }
 0x22e   : > { %v6825_v0 = vpop.f32.mrf.mxu0 }
 0x22f   : > { %3189 = vst.msk [vmem:[#allocation2 + $0x68] sm:$0xff] %vm703_vm5, %v3169_v63  ;;  %v3172_v2 = vmax.f32 %v3152_v28, 0.0  ;;  %v3151_v47 = vadd.f32 %v8864_v33, %v3124_v27  ;;  %v3127_v41 = vadd.f32 %v6825_v0, %v2854_v32  ;;  %v10008_v32 = vld [vmem:[#allocation30_spill] sm:$0xff]  ;;  %v10010_v63 = vld [vmem:[#allocation36_spill] sm:$0xff]  ;;  %v6794_v38 = vpop.f32.mrf.mxu1 }
 0x230   : > { %v3059_v12 = vpop.f32.mrf.mxu0  ;;  %v2318_v58 = vadd.f32 %v10009_v15, %v10008_v32  ;;  %v2588_v28 = vadd.f32 %v10010_v63, %v2315_v59 }
 0x231   : > { %3192 = vst.msk [vmem:[#allocation2 + $0x90] sm:$0xff] %vm703_vm5, %v3172_v2  ;;  %v3171_v44 = vmax.f32 %v3151_v47, 0.0  ;;  %v3154_v13 = vadd.f32 %v8864_v33, %v3127_v41  ;;  %v3126_v3 = vadd.f32 %v3059_v12, %v2853_v22  ;;  %v10012_v2 = vld [vmem:[#allocation31_spill] sm:$0xff]  ;;  %v2862_v41 = vadd.f32 %v6791_v45, %v2589_v61 }
 0x232   : > { %v6828_v25 = vpop.f32.mrf.mxu0  ;;  %v2317_v47 = vadd.f32 %v10012_v2, %v10011_v26  ;;  %v2591_v12 = vadd.f32 %v8849_v1, %v2318_v58 }
 0x233   : > { %3191 = vst.msk [vmem:[#allocation2 + $0x88] sm:$0xff] %vm703_vm5, %v3171_v44  ;;  %v3174_v11 = vmax.f32 %v3154_v13, 0.0  ;;  %v3153_v18 = vadd.f32 %v8864_v33, %v3126_v3  ;;  %v3129_v46 = vadd.f32 %v6828_v25, %v2856_v5  ;;  %v2861_v13 = vadd.f32 %v2826_v55, %v2588_v28 }
 0x234   : > { %v3069_v8 = vpop.f32.mrf.mxu0  ;;  %v2590_v42 = vadd.f32 %v8855_v23, %v2317_v47 }
 0x235   : > { %3194 = vst.msk [vmem:[#allocation2 + $0xb0] sm:$0xff] %vm703_vm5, %v3174_v11  ;;  %v3173_v17 = vmax.f32 %v3153_v18, 0.0  ;;  %v3156_v34 = vadd.f32 %v8864_v33, %v3129_v46  ;;  %v3128_v57 = vadd.f32 %v3069_v8, %v2855_v7  ;;  %v2836_v11 = vpop.f32.mrf.mxu1  ;;  %v2864_v46 = vadd.f32 %v6794_v38, %v2591_v12 }
 0x236   : > { %v6831_v54 = vpop.f32.mrf.mxu0 }
 0x237   : > { %3193 = vst.msk [vmem:[#allocation2 + $0xa8] sm:$0xff] %vm703_vm5, %v3173_v17  ;;  %v3176_v35 = vmax.f32 %v3156_v34, 0.0  ;;  %v3155_v6 = vadd.f32 %v8864_v33, %v3128_v57  ;;  %v3131_v62 = vadd.f32 %v6831_v54, %v2858_v51  ;;  %v2863_v51 = vadd.f32 %v2836_v11, %v2590_v42 }
 0x238   : > { %v3079_v21 = vpop.f32.mrf.mxu0 }
 0x239   : > { %3196 = vst.msk [vmem:[#allocation2 + $0xd0] sm:$0xff] %vm703_vm5, %v3176_v35  ;;  %v3175_v29 = vmax.f32 %v3155_v6, 0.0  ;;  %v3158_v60 = vadd.f32 %v8864_v33, %v3131_v62  ;;  %v3130_v49 = vadd.f32 %v3079_v21, %v2857_v10 }
 0x23a   : > { %v6834_v27 = vpop.f32.mrf.mxu0 }
 0x23b   : > { %3195 = vst.msk [vmem:[#allocation2 + $0xc8] sm:$0xff] %vm703_vm5, %v3175_v29  ;;  %v3178_v22 = vmax.f32 %v3158_v60, 0.0  ;;  %v3157_v0 = vadd.f32 %v8864_v33, %v3130_v49  ;;  %v3133_v36 = vadd.f32 %v6834_v27, %v2860_v19 }
 0x23c   : > { %v3089_v56 = vpop.f32.mrf.mxu0 }
 0x23d   : > { %3198 = vst.msk [vmem:[#allocation2 + $0xf0] sm:$0xff] %vm703_vm5, %v3178_v22  ;;  %v3177_v5 = vmax.f32 %v3157_v0, 0.0  ;;  %v3160_v44 = vadd.f32 %v8864_v33, %v3133_v36  ;;  %v3132_v31 = vadd.f32 %v3089_v56, %v2859_v16 }
 0x23e   : > { %v6837_v3 = vpop.f32.mrf.mxu0 }
 0x23f   : > { %3197 = vst.msk [vmem:[#allocation2 + $0xe8] sm:$0xff] %vm703_vm5, %v3177_v5  ;;  %v3180_v37 = vmax.f32 %v3160_v44, 0.0  ;;  %v3159_v25 = vadd.f32 %v8864_v33, %v3132_v31  ;;  %v3135_v7 = vadd.f32 %v6837_v3, %v2862_v41 }
 0x240   : > { %v3099_v18 = vpop.f32.mrf.mxu0 }
 0x241   : > { %3200 = vst.msk [vmem:[#allocation2 + $0x110] sm:$0xff] %vm703_vm5, %v3180_v37  ;;  %v3179_v1 = vmax.f32 %v3159_v25, 0.0  ;;  %v3162_v20 = vadd.f32 %v8864_v33, %v3135_v7  ;;  %v3134_v30 = vadd.f32 %v3099_v18, %v2861_v13 }
 0x242   : > { %v6840_v48 = vpop.f32.mrf.mxu0 }
 0x243   : > { %3199 = vst.msk [vmem:[#allocation2 + $0x108] sm:$0xff] %vm703_vm5, %v3179_v1  ;;  %v3182_v23 = vmax.f32 %v3162_v20, 0.0  ;;  %v3161_v45 = vadd.f32 %v8864_v33, %v3134_v30  ;;  %v3137_v8 = vadd.f32 %v6840_v48, %v2864_v46 }
 0x244   : > { %v3109_v9 = vpop.f32.mrf.mxu0 }
 0x245   : > { %3202 = vst.msk [vmem:[#allocation2 + $0x130] sm:$0xff] %vm703_vm5, %v3182_v23  ;;  %v3181_v4 = vmax.f32 %v3161_v45, 0.0  ;;  %v3164_v17 = vadd.f32 %v8864_v33, %v3137_v8  ;;  %v3136_v34 = vadd.f32 %v3109_v9, %v2863_v51 }
 0x247   : > { %3201 = vst.msk [vmem:[#allocation2 + $0x128] sm:$0xff] %vm703_vm5, %v3181_v4  ;;  %v3184_v57 = vmax.f32 %v3164_v17, 0.0  ;;  %v3163_v24 = vadd.f32 %v8864_v33, %v3136_v34  ;;  %3207 = sbr.rel (%p5603_p5) target bundleno = 590 (0x24e), region = 84 }
 0x249   : > { %3204 = vst.msk [vmem:[#allocation2 + $0x150] sm:$0xff] %vm703_vm5, %v3184_v57  ;;  %v3183_v50 = vmax.f32 %v3163_v24, 0.0 }
 0x24b   : > { %3203 = vst.msk [vmem:[#allocation2 + $0x148] sm:$0xff] %vm703_vm5, %v3183_v50 }
 0x24c   : > { %v7570_v39 = vmov 0.0  }
 0x24d   : > { %3208 = vst.msk [vmem:[#allocation2 + $0x28] sm:$0xff] %vm703_vm5, %v7570_v39  ;;  %3209 = vst.msk [vmem:[#allocation2 + $0x30] sm:$0xff] %vm703_vm5, %v7570_v39 }
 0x24e PF: > { %3212 = sbr.rel (%p5605_p8) target bundleno = 597 (0x255), region = 88 }
 0x253   : > { %v7571_v10 = vmov 0.0  }
 0x254   : > { %3214 = vst.msk [vmem:[#allocation2 + $0x148] sm:$0xff] %vm703_vm5, %v7571_v10  ;;  %3215 = vst.msk [vmem:[#allocation2 + $0x150] sm:$0xff] %vm703_vm5, %v7571_v10 }
 0x255 PF: > { %s10013_s1 = sld [smem:[#allocation53_spill]]  ;;  %v9010_v60 = vld [vmem:[#allocation2 + $0x48] sm:$0xff]  ;;  %v9021_v15 = vld [vmem:[#allocation2 + $0x50] sm:$0xff]  ;;  %s5958_s30 = sshll.u32 %s7545_s18, 4 }
 0x256   : > { %v3240_v43 = vld [vmem:[#allocation2 + $0x28] sm:$0xff]  ;;  %v3241_v19 = vld [vmem:[#allocation2 + $0x30] sm:$0xff]  ;;  %s10037_s17 = sld [smem:[#allocation54_spill]]  ;;  %s5370_s28 = sshll.u32 %s7910_s21, 4  ;;  %s9831_s28 = int_to_ptr.vmem [resolvable:$true] %s5370_s28 }
 0x257   : > { %6857 = vmatprep.mubr.msk.f32.mxu1 %vm703_vm5, %v3240_v43  ;;  %v9026_v63 = vld [vmem:[#allocation2 + $0x68] sm:$0xff]  ;;  %v9038_v16 = vld [vmem:[#allocation2 + $0x70] sm:$0xff]  ;;  %s10059_s11 = sld [smem:[#allocation15_spill]]  ;;  %s10063_s19 = sand.u32 1, %s7513_s10  }
 0x258   : > { %v9043_v0 = vld [vmem:[#allocation2 + $0x88] sm:$0xff]  ;;  %v9055_v2 = vld [vmem:[#allocation2 + $0x90] sm:$0xff]  ;;  %s10062_s29 = sld [smem:[#allocation55_spill]]  ;;  %s7413_s6 = scalar_lea.vmem %s9831_s28, 2048 }
 0x259   : > { %v9060_v41 = vld [vmem:[#allocation2 + $0xa8] sm:$0xff]  ;;  %v9069_v12 = vld [vmem:[#allocation2 + $0xb0] sm:$0xff]  ;;  %p7414_p13 = scmp.ne.s32.totalorder %s9831_s28, %s7413_s6  ;;  %p10064_p6 = scmp.ne.s32.totalorder %s9963_s7, 0 }
 0x25a   : > { %v3650_v56 = vld [vmem:[#allocation2 + $0x29] sm:$0xff]  ;;  %v3651_v31 = vld [vmem:[#allocation2 + $0x31] sm:$0xff]  ;;  %s7572_s0 = smov [#allocation8]  }
 0x25b   : > { %v3263_v33 = vld [vmem:[%s10013_s1 + $0x78] sm:$0xff]  ;;  %v3262_v54 = vld [vmem:[%s10013_s1 + $0x70] sm:$0xff]  ;;  %v3261_v53 = vld [vmem:[%s10013_s1 + $0x68] sm:$0xff]  ;;  %6937 = vmatprep.mubr.msk.f32.mxu0 %vm703_vm5, %v3650_v56  ;;  %p7415_p0 = pnand %p7414_p13, %p10064_p6  ;;  %s7417_s3 = sshll.u32 %s7572_s0, 4  ;;  %s7418_s3 = int_to_ptr.vmem [resolvable:$false] %s7417_s3 }
 0x25c   : > { %6841 = vmatprep.subr.mxu1 %v3263_v33  ;;  %v3260_v35 = vld [vmem:[%s10013_s1 + $0x60] sm:$0xff]  ;;  %v3259_v6 = vld [vmem:[%s10013_s1 + $0x58] sm:$0xff]  ;;  %v3258_v52 = vld [vmem:[%s10013_s1 + $0x50] sm:$0xff]  ;;  %s7419_s4 = scalar_lea.vmem %s7418_s3, 4096  ;;  %p7420_p10 = scmp.lt.s32.totalorder %s9831_s28, %s7418_s3 }
 0x25d   : > { %6842 = vmatpush3.msra.mxu1 %v3263_v33  ;;  %v3673_v62 = vld [vmem:[%s10013_s1 + $0xb8] sm:$0xff]  ;;  %v3672_v40 = vld [vmem:[%s10013_s1 + $0xb0] sm:$0xff]  ;;  %v3671_v59 = vld [vmem:[%s10013_s1 + $0xa8] sm:$0xff]  ;;  %s5938_s12 = sshll.u32 %s10059_s11, 5  ;;  %p7416_p2 = pneg %p7415_p0 }
 0x25e   : > { %6843 = vmatprep.subr.mxu1 %v3262_v54  ;;  %6921 = vmatprep.subr.mxu0 %v3673_v62  ;;  %v3257_v14 = vld [vmem:[%s10013_s1 + $0x48] sm:$0xff]  ;;  %v3670_v61 = vld [vmem:[%s10013_s1 + $0xa0] sm:$0xff]  ;;  %v3669_v21 = vld [vmem:[%s10013_s1 + $0x98] sm:$0xff]  ;;  %s5367_s27 = sadd.s32 %s5958_s30, %s5938_s12  ;;  %p7421_p1 = scmp.lt.s32.totalorder %s7419_s4, %s7413_s6 }
 0x25f   : > { %6844 = vmatpush3.msra.mxu1 %v3262_v54  ;;  %6922 = vmatpush3.msra.mxu0 %v3673_v62  ;;  %v3256_v55 = vld [vmem:[%s10013_s1 + $0x40] sm:$0xff]  ;;  %v3239_v29 = vld [vmem:[%s10013_s1 + $0x38] sm:$0xff]  ;;  %v3238_v49 = vld [vmem:[%s10013_s1 + $0x30] sm:$0xff]  ;;  %s5939_s18 = sshll.u32 %s5367_s27, 7 }
 0x260   : > { %6845 = vmatprep.subr.mxu1 %v3261_v53  ;;  %6923 = vmatprep.subr.mxu0 %v3672_v40  ;;  %v3668_v32 = vld [vmem:[%s10013_s1 + $0x90] sm:$0xff]  ;;  %v3237_v58 = vld [vmem:[%s10013_s1 + $0x28] sm:$0xff]  ;;  %v3236_v28 = vld [vmem:[%s10013_s1 + $0x20] sm:$0xff]  ;;  %s9829_s23 = scalar_lea.hbm %s10062_s29, %s5939_s18  ;;  %p7422_p4 = por %p7421_p1, %p7420_p10 }
 0x261   : > { %6846 = vmatpush3.msra.mxu1 %v3261_v53  ;;  %6924 = vmatpush3.msra.mxu0 %v3672_v40  ;;  %v3667_v27 = vld [vmem:[%s10013_s1 + $0x88] sm:$0xff]  ;;  %v3235_v22 = vld [vmem:[%s10013_s1 + $0x18] sm:$0xff]  ;;  %v3234_v36 = vld [vmem:[%s10013_s1 + $0x10] sm:$0xff] }
 0x262   : > { %6847 = vmatprep.subr.mxu1 %v3260_v35  ;;  %6925 = vmatprep.subr.mxu0 %v3671_v59  ;;  %v3666_v26 = vld [vmem:[%s10013_s1 + $0x80] sm:$0xff]  ;;  %v3233_v47 = vld [vmem:[%s10013_s1 + $0x8] sm:$0xff]  ;;  %v3906_v5 = vld [vmem:[%s10013_s1 + $0xf8] sm:$0xff]  ;;  %p7423_p11 = pnand %p7422_p4, %p7416_p2 }
 0x263   : > { %6848 = vmatpush3.msra.mxu1 %v3260_v35  ;;  %6926 = vmatpush3.msra.mxu0 %v3671_v59  ;;  %v3232_v38 = vld [vmem:[%s10013_s1] sm:$0xff]  ;;  %v9074_v44 = vld [vmem:[#allocation2 + $0xc8] sm:$0xff]  ;;  %v4139_v3 = vld [vmem:[%s10013_s1 + $0x138] sm:$0xff] }
 0x264   : > { %6849 = vmatprep.subr.mxu1 %v3259_v6  ;;  %6927 = vmatprep.subr.mxu0 %v3670_v61  ;;  %v9077_v13 = vld [vmem:[#allocation2 + $0x49] sm:$0xff]  ;;  %v9096_v7 = vld [vmem:[#allocation2 + $0x51] sm:$0xff]  ;;  %v4136_v48 = vld [vmem:[%s10013_s1 + $0x120] sm:$0xff] }
 0x265   : > { %6850 = vmatpush3.msra.mxu1 %v3259_v6  ;;  %6928 = vmatpush3.msra.mxu0 %v3670_v61  ;;  %v9086_v42 = vld [vmem:[#allocation2 + $0xd0] sm:$0xff]  ;;  %v9092_v25 = vld [vmem:[#allocation2 + $0xe8] sm:$0xff]  ;;  %v4135_v23 = vld [vmem:[%s10013_s1 + $0x118] sm:$0xff] }
 0x266   : > { %6851 = vmatprep.subr.mxu1 %v3258_v52  ;;  %6929 = vmatprep.subr.mxu0 %v3669_v21  ;;  %v4138_v37 = vld [vmem:[%s10013_s1 + $0x130] sm:$0xff]  ;;  %v4137_v18 = vld [vmem:[%s10013_s1 + $0x128] sm:$0xff]  ;;  %v3903_v54 = vld [vmem:[%s10013_s1 + $0xe0] sm:$0xff] }
 0x267   : > { %6852 = vmatpush3.msra.mxu1 %v3258_v52  ;;  %6930 = vmatpush3.msra.mxu0 %v3669_v21  ;;  %v9098_v11 = vld [vmem:[#allocation2 + $0x69] sm:$0xff]  ;;  %v9115_v20 = vld [vmem:[#allocation2 + $0x71] sm:$0xff]  ;;  %v3899_v21 = vld [vmem:[%s10013_s1 + $0xc0] sm:$0xff] }
 0x268   : > { %6853 = vmatprep.subr.mxu1 %v3257_v14  ;;  %6931 = vmatprep.subr.mxu0 %v3668_v32  ;;  %v9107_v46 = vld [vmem:[#allocation2 + $0xf0] sm:$0xff]  ;;  %v9111_v1 = vld [vmem:[#allocation2 + $0x108] sm:$0xff]  ;;  %v3902_v6 = vld [vmem:[%s10013_s1 + $0xd8] sm:$0xff] }
 0x269   : > { %6854 = vmatpush3.msra.mxu1 %v3257_v14  ;;  %6932 = vmatpush3.msra.mxu0 %v3668_v32  ;;  %v9117_v30 = vld [vmem:[#allocation2 + $0x89] sm:$0xff]  ;;  %v9135_v8 = vld [vmem:[#allocation2 + $0x91] sm:$0xff]  ;;  %v4603_v56 = vld [vmem:[%s10013_s1 + $0x1a0] sm:$0xff] }
 0x26a   : > { %6855 = vmatprep.subr.mxu1 %v3256_v55  ;;  %6933 = vmatprep.subr.mxu0 %v3667_v27  ;;  %v9126_v51 = vld [vmem:[#allocation2 + $0x110] sm:$0xff]  ;;  %v3216_v45 = vld [vmem:[#allocation2 + $0x27] sm:$0xff] }
 0x26b   : > { %6856 = vmatpush3.msra.mxu1 %v3256_v55  ;;  %6934 = vmatpush3.msra.mxu0 %v3667_v27  ;;  %v9137_v9 = vld [vmem:[#allocation2 + $0xa9] sm:$0xff]  ;;  %v9154_v24 = vld [vmem:[#allocation2 + $0xb1] sm:$0xff] }
 0x26c   : > { %6858 = vmatmul.mubr.msk.f32.vlgmr.msra.gmra.mxu1 %vm703_vm5, %v3241_v19  ;;  %6881 = vmatprep.subr.mxu1 %v3239_v29  ;;  %v4134_v4 = vld [vmem:[%s10013_s1 + $0x110] sm:$0xff]  ;;  %v9147_v34 = vld [vmem:[#allocation2 + $0x47] sm:$0xff]  ;;  %v4606_v27 = vld [vmem:[%s10013_s1 + $0x1b8] sm:$0xff] }
 0x26d   : > { %6882 = vmatpush3.msra.mxu1 %v3239_v29  ;;  %6860 = vmatprep.mubr.msk.f32.mxu1 %vm703_vm5, %v9010_v60  ;;  %v3217_v17 = vld [vmem:[#allocation2 + $0x2f] sm:$0xff]  ;;  %v9166_v33 = vld [vmem:[#allocation2 + $0x67] sm:$0xff] }
 0x26e   : > { %6883 = vmatprep.subr.mxu1 %v3238_v49  ;;  %6935 = vmatprep.subr.mxu0 %v3666_v26  ;;  %v3905_v57 = vld [vmem:[%s10013_s1 + $0xf0] sm:$0xff]  ;;  %v3904_v10 = vld [vmem:[%s10013_s1 + $0xe8] sm:$0xff] }
 0x26f   : > { %6884 = vmatpush3.msra.mxu1 %v3238_v49  ;;  %6936 = vmatpush3.msra.mxu0 %v3666_v26  ;;  %v9157_v50 = vld [vmem:[#allocation2 + $0xc9] sm:$0xff]  ;;  %v9175_v53 = vld [vmem:[#allocation2 + $0xd1] sm:$0xff] }
 0x270   : > { %6861 = vmatmul.mubr.msk.f32.gmra.mxu1 %vm703_vm5, %v9021_v15  ;;  %6885 = vmatprep.subr.mxu1 %v3237_v58  ;;  %v9161_v39 = vld [vmem:[#allocation2 + $0x4f] sm:$0xff]  ;;  %v9188_v62 = vld [vmem:[#allocation2 + $0x87] sm:$0xff] }
 0x271   : > { %6863 = vmatprep.mubr.msk.f32.mxu1 %vm703_vm5, %v9026_v63  ;;  %6886 = vmatpush3.msra.mxu1 %v3237_v58  ;;  %v9179_v43 = vld [vmem:[#allocation2 + $0xe9] sm:$0xff]  ;;  %v9197_v40 = vld [vmem:[#allocation2 + $0xf1] sm:$0xff]  ;;  %v4132_v58 = vld [vmem:[%s10013_s1 + $0x100] sm:$0xff] }
 0x272   : > { %6887 = vmatprep.subr.mxu1 %v3236_v28  ;;  %6938 = vmatmul.mubr.msk.f32.vlgmr.msra.gmra.mxu0 %vm703_vm5, %v3651_v31  ;;  %v9183_v35 = vld [vmem:[#allocation2 + $0x6f] sm:$0xff]  ;;  %v9210_v55 = vld [vmem:[#allocation2 + $0xa7] sm:$0xff] }
 0x273   : > { %6888 = vmatpush3.msra.mxu1 %v3236_v28  ;;  %6940 = vmatprep.mubr.msk.f32.mxu0 %vm703_vm5, %v9077_v13  ;;  %v3901_v52 = vld [vmem:[%s10013_s1 + $0xd0] sm:$0xff]  ;;  %v3900_v61 = vld [vmem:[%s10013_s1 + $0xc8] sm:$0xff]  ;;  %v4372_v28 = vld [vmem:[%s10013_s1 + $0x178] sm:$0xff] }
 0x274   : > { %6864 = vmatmul.mubr.msk.f32.gmra.mxu1 %vm703_vm5, %v9038_v16  ;;  %6889 = vmatprep.subr.mxu1 %v3235_v22  ;;  %v9201_v59 = vld [vmem:[#allocation2 + $0x109] sm:$0xff]  ;;  %v9219_v19 = vld [vmem:[#allocation2 + $0x111] sm:$0xff] }
 0x275   : > { %6866 = vmatprep.mubr.msk.f32.mxu1 %vm703_vm5, %v9043_v0  ;;  %6890 = vmatpush3.msra.mxu1 %v3235_v22  ;;  %v9205_v14 = vld [vmem:[#allocation2 + $0x8f] sm:$0xff]  ;;  %v9230_v32 = vld [vmem:[#allocation2 + $0xc7] sm:$0xff] }
 0x276   : > { %6891 = vmatprep.subr.mxu1 %v3234_v36  ;;  %7001 = vmatprep.subr.mxu0 %v4139_v3  ;;  %v4133_v29 = vld [vmem:[%s10013_s1 + $0x108] sm:$0xff]  ;;  %v4605_v26 = vld [vmem:[%s10013_s1 + $0x1b0] sm:$0xff] }
 0x277   : > { %6892 = vmatpush3.msra.mxu1 %v3234_v36  ;;  %7002 = vmatpush3.msra.mxu0 %v4139_v3  ;;  %v9228_v49 = vld [vmem:[#allocation2 + $0xaf] sm:$0xff]  ;;  %v9249_v36 = vld [vmem:[#allocation2 + $0xe7] sm:$0xff] }
 0x278   : > { %6867 = vmatmul.mubr.msk.f32.gmra.mxu1 %vm703_vm5, %v9055_v2  ;;  %6893 = vmatprep.subr.mxu1 %v3233_v47  ;;  %v9247_v22 = vld [vmem:[#allocation2 + $0xcf] sm:$0xff]  ;;  %v4369_v3 = vld [vmem:[%s10013_s1 + $0x160] sm:$0xff] }
 0x279   : > { %6869 = vmatprep.mubr.msk.f32.mxu1 %vm703_vm5, %v9060_v41  ;;  %6894 = vmatpush3.msra.mxu1 %v3233_v47  ;;  %v9262_v47 = vld [vmem:[#allocation2 + $0xef] sm:$0xff] }
 0x27a   : > { %6895 = vmatprep.subr.mxu1 %v3232_v38  ;;  %7003 = vmatprep.subr.mxu0 %v4138_v37  ;;  %v4370_v31 = vld [vmem:[%s10013_s1 + $0x168] sm:$0xff] }
 0x27b   : > { %6896 = vmatpush3.msra.mxu1 %v3232_v38  ;;  %6941 = vmatmul.mubr.msk.f32.gmra.mxu0 %vm703_vm5, %v9096_v7  ;;  %v9277_v38 = vld [vmem:[#allocation2 + $0x10f] sm:$0xff] }
 0x27c   : > { %6870 = vmatmul.mubr.msk.f32.gmra.mxu1 %vm703_vm5, %v9069_v12  ;;  %6961 = vmatprep.subr.mxu1 %v3906_v5 }
 0x27d   : > { %6872 = vmatprep.mubr.msk.f32.mxu1 %vm703_vm5, %v9074_v44  ;;  %6943 = vmatprep.mubr.msk.f32.mxu0 %vm703_vm5, %v9098_v11 }
 0x27e   : > { %7004 = vmatpush3.msra.mxu0 %v4138_v37  ;;  %v4368_v37 = vld [vmem:[%s10013_s1 + $0x158] sm:$0xff] }
 0x27f   : > { %7005 = vmatprep.subr.mxu0 %v4137_v18  ;;  %6944 = vmatmul.mubr.msk.f32.gmra.mxu0 %vm703_vm5, %v9115_v20 }
 0x280   : > { %6873 = vmatmul.mubr.msk.f32.gmra.mxu1 %vm703_vm5, %v9086_v42  ;;  %7006 = vmatpush3.msra.mxu0 %v4137_v18  ;;  %v4367_v18 = vld [vmem:[%s10013_s1 + $0x150] sm:$0xff] }
 0x281   : > { %6875 = vmatprep.mubr.msk.f32.mxu1 %vm703_vm5, %v9092_v25  ;;  %6946 = vmatprep.mubr.msk.f32.mxu0 %vm703_vm5, %v9117_v30 }
 0x282   : > { %7007 = vmatprep.subr.mxu0 %v4136_v48 }
 0x283   : > { %7008 = vmatpush3.msra.mxu0 %v4136_v48  ;;  %v4602_v48 = vld [vmem:[%s10013_s1 + $0x198] sm:$0xff] }
 0x284   : > { %6876 = vmatmul.mubr.msk.f32.gmra.mxu1 %vm703_vm5, %v9107_v46  ;;  %7009 = vmatprep.subr.mxu0 %v4135_v23 }
 0x285   : > { %6878 = vmatprep.mubr.msk.f32.mxu1 %vm703_vm5, %v9111_v1  ;;  %6947 = vmatmul.mubr.msk.f32.gmra.mxu0 %vm703_vm5, %v9135_v8 }
 0x286   : > { %6949 = vmatprep.mubr.msk.f32.mxu0 %vm703_vm5, %v9137_v9  ;;  %7010 = vmatpush3.msra.mxu0 %v4135_v23  ;;  %v4366_v23 = vld [vmem:[%s10013_s1 + $0x148] sm:$0xff] }
 0x287   : > { %7011 = vmatprep.subr.mxu0 %v4134_v4 }
 0x288   : > { %6879 = vmatmul.mubr.msk.f32.gmra.mxu1 %vm703_vm5, %v9126_v51  ;;  %7012 = vmatpush3.msra.mxu0 %v4134_v4  ;;  %v4601_v4 = vld [vmem:[%s10013_s1 + $0x190] sm:$0xff] }
 0x289   : > { %6897 = vmatprep.mubr.msk.f32.mxu1 %vm703_vm5, %v3216_v45  ;;  %6950 = vmatmul.mubr.msk.f32.gmra.mxu0 %vm703_vm5, %v9154_v24  ;;  %v4365_v45 = vld [vmem:[%s10013_s1 + $0x140] sm:$0xff] }
 0x28a   : > { %6952 = vmatprep.mubr.msk.f32.mxu0 %vm703_vm5, %v9157_v50  ;;  %7013 = vmatprep.subr.mxu0 %v4133_v29 }
 0x28b   : > { %7014 = vmatpush3.msra.mxu0 %v4133_v29  ;;  %v5068_v29 = vld [vmem:[%s10013_s1 + $0x218] sm:$0xff] }
 0x28c   : > { %6898 = vmatmul.mubr.msk.f32.vlgmr.msra.gmra.mxu1 %vm703_vm5, %v3217_v17  ;;  %7015 = vmatprep.subr.mxu0 %v4132_v58  ;;  %v9347_v17 = vld [vmem:[#allocation2 + $0x128] sm:$0xff] }
 0x28d   : > { %6962 = vmatpush3.msra.mxu1 %v3906_v5  ;;  %6900 = vmatprep.mubr.msk.f32.mxu1 %vm703_vm5, %v9147_v34  ;;  %v4371_v5 = vld [vmem:[%s10013_s1 + $0x170] sm:$0xff] }
 0x28e   : > { %6963 = vmatprep.subr.mxu1 %v3905_v57  ;;  %6953 = vmatmul.mubr.msk.f32.gmra.mxu0 %vm703_vm5, %v9175_v53 }
 0x28f   : > { %6964 = vmatpush3.msra.mxu1 %v3905_v57  ;;  %6955 = vmatprep.mubr.msk.f32.mxu0 %vm703_vm5, %v9179_v43  ;;  %v4600_v57 = vld [vmem:[%s10013_s1 + $0x188] sm:$0xff] }
 0x290   : > { %6901 = vmatmul.mubr.msk.f32.gmra.mxu1 %vm703_vm5, %v9161_v39  ;;  %6965 = vmatprep.subr.mxu1 %v3904_v10 }
 0x291   : > { %6903 = vmatprep.mubr.msk.f32.mxu1 %vm703_vm5, %v9166_v33  ;;  %6966 = vmatpush3.msra.mxu1 %v3904_v10  ;;  %v4839_v10 = vld [vmem:[%s10013_s1 + $0x1f8] sm:$0xff] }
 0x292   : > { %6967 = vmatprep.subr.mxu1 %v3903_v54  ;;  %6956 = vmatmul.mubr.msk.f32.gmra.mxu0 %vm703_vm5, %v9197_v40 }
 0x293   : > { %6968 = vmatpush3.msra.mxu1 %v3903_v54  ;;  %6958 = vmatprep.mubr.msk.f32.mxu0 %vm703_vm5, %v9201_v59  ;;  %v9375_v54 = vld [vmem:[%s10013_s1 + $0x238] sm:$0xff] }
 0x294   : > { %6904 = vmatmul.mubr.msk.f32.gmra.mxu1 %vm703_vm5, %v9183_v35  ;;  %6969 = vmatprep.subr.mxu1 %v3902_v6 }
 0x295   : > { %6906 = vmatprep.mubr.msk.f32.mxu1 %vm703_vm5, %v9188_v62  ;;  %6970 = vmatpush3.msra.mxu1 %v3902_v6  ;;  %v3897_v6 = vld [vmem:[#allocation2 + $0x127] sm:$0xff] }
 0x296   : > { %6971 = vmatprep.subr.mxu1 %v3901_v52  ;;  %6959 = vmatmul.mubr.msk.f32.gmra.mxu0 %vm703_vm5, %v9219_v19 }
 0x297   : > { %6972 = vmatpush3.msra.mxu1 %v3901_v52  ;;  %7016 = vmatpush3.msra.mxu0 %v4132_v58  ;;  %v9389_v52 = vld [vmem:[%s10013_s1 + $0x230] sm:$0xff]  ;;  %v4597_v58 = vld [vmem:[#allocation2 + $0x147] sm:$0xff] }
 0x298   : > { %6907 = vmatmul.mubr.msk.f32.gmra.mxu1 %vm703_vm5, %v9205_v14  ;;  %6973 = vmatprep.subr.mxu1 %v3900_v61 }
 0x299   : > { %6909 = vmatprep.mubr.msk.f32.mxu1 %vm703_vm5, %v9210_v55  ;;  %6974 = vmatpush3.msra.mxu1 %v3900_v61  ;;  %v3898_v61 = vld [vmem:[#allocation2 + $0x12f] sm:$0xff] }
 0x29a   : > { %6975 = vmatprep.subr.mxu1 %v3899_v21  ;;  %7017 = vmatprep.mubr.msk.f32.mxu0 %vm703_vm5, %v9010_v60  ;;  %v9266_v60 = vld [vmem:[#allocation2 + $0x107] sm:$0xff] }
 0x29b   : > { %6976 = vmatpush3.msra.mxu1 %v3899_v21  ;;  %7081 = vmatprep.subr.mxu0 %v4606_v27  ;;  %v4833_v21 = vld [vmem:[%s10013_s1 + $0x1c8] sm:$0xff] }
 0x29c   : > { %6910 = vmatmul.mubr.msk.f32.gmra.mxu1 %vm703_vm5, %v9228_v49  ;;  %7041 = vmatprep.subr.mxu1 %v4372_v28 }
 0x29d   : > { %6912 = vmatprep.mubr.msk.f32.mxu1 %vm703_vm5, %v9230_v32  ;;  %7018 = vmatmul.mubr.msk.f32.vlgmr.msra.gmra.mxu0 %vm703_vm5, %v9021_v15  ;;  %v4604_v15 = vld [vmem:[%s10013_s1 + $0x1a8] sm:$0xff] }
 0x29e   : > { %7020 = vmatprep.mubr.msk.f32.mxu0 %vm703_vm5, %v9026_v63  ;;  %7082 = vmatpush3.msra.mxu0 %v4606_v27  ;;  %v5066_v27 = vld [vmem:[%s10013_s1 + $0x208] sm:$0xff] }
 0x29f   : > { %7083 = vmatprep.subr.mxu0 %v4605_v26 }
 0x2a0   : > { %6913 = vmatmul.mubr.msk.f32.gmra.mxu1 %vm703_vm5, %v9247_v22  ;;  %7084 = vmatpush3.msra.mxu0 %v4605_v26  ;;  %v4364_v26 = vld [vmem:[#allocation2 + $0x131] sm:$0xff] }
 0x2a1   : > { %6915 = vmatprep.mubr.msk.f32.mxu1 %vm703_vm5, %v9249_v36  ;;  %7021 = vmatmul.mubr.msk.f32.gmra.mxu0 %vm703_vm5, %v9038_v16 }
 0x2a2   : > { %7023 = vmatprep.mubr.msk.f32.mxu0 %vm703_vm5, %v9043_v0  ;;  %7085 = vmatprep.subr.mxu0 %v4604_v15 }
 0x2a3   : > { %7086 = vmatpush3.msra.mxu0 %v4604_v15 }
 0x2a4   : > { %6916 = vmatmul.mubr.msk.f32.gmra.mxu1 %vm703_vm5, %v9262_v47  ;;  %7087 = vmatprep.subr.mxu0 %v4603_v56 }
 0x2a5   : > { %6918 = vmatprep.mubr.msk.f32.mxu1 %vm703_vm5, %v9266_v60  ;;  %7024 = vmatmul.mubr.msk.f32.gmra.mxu0 %vm703_vm5, %v9055_v2 }
 0x2a6   : > { %7026 = vmatprep.mubr.msk.f32.mxu0 %vm703_vm5, %v9060_v41  ;;  %7088 = vmatpush3.msra.mxu0 %v4603_v56 }
 0x2a7   : > { %7089 = vmatprep.subr.mxu0 %v4602_v48 }
 0x2a8   : > { %6919 = vmatmul.mubr.msk.f32.gmra.mxu1 %vm703_vm5, %v9277_v38  ;;  %7090 = vmatpush3.msra.mxu0 %v4602_v48 }
 0x2a9   : > { %6977 = vmatprep.mubr.msk.f32.mxu1 %vm703_vm5, %v9147_v34  ;;  %7027 = vmatmul.mubr.msk.f32.gmra.mxu0 %vm703_vm5, %v9069_v12  ;;  %v9353_v34 = vld [vmem:[#allocation2 + $0x130] sm:$0xff] }
 0x2aa   : > { %7029 = vmatprep.mubr.msk.f32.mxu0 %vm703_vm5, %v9074_v44  ;;  %7091 = vmatprep.subr.mxu0 %v4601_v4 }
 0x2ab   : > { %7092 = vmatpush3.msra.mxu0 %v4601_v4 }
 0x2ac   : > { %6978 = vmatmul.mubr.msk.f32.vlgmr.msra.gmra.mxu1 %vm703_vm5, %v9161_v39  ;;  %v4599_v39 = vld [vmem:[%s10013_s1 + $0x180] sm:$0xff]  ;;  %7093 = vmatprep.subr.mxu0 %v4600_v57 }
 0x2ad   : > { %7042 = vmatpush3.msra.mxu1 %v4372_v28  ;;  %6980 = vmatprep.mubr.msk.f32.mxu1 %vm703_vm5, %v9166_v33  ;;  %v4598_v28 = vld [vmem:[#allocation2 + $0x14f] sm:$0xff] }
 0x2ae   : > { %7043 = vmatprep.subr.mxu1 %v4371_v5  ;;  %7030 = vmatmul.mubr.msk.f32.gmra.mxu0 %vm703_vm5, %v9086_v42 }
 0x2af   : > { %7044 = vmatpush3.msra.mxu1 %v4371_v5  ;;  %7032 = vmatprep.mubr.msk.f32.mxu0 %vm703_vm5, %v9092_v25 }
 0x2b0   : > { %6981 = vmatmul.mubr.msk.f32.gmra.mxu1 %vm703_vm5, %v9183_v35  ;;  %7045 = vmatprep.subr.mxu1 %v4370_v31 }
 0x2b1   : > { %6983 = vmatprep.mubr.msk.f32.mxu1 %vm703_vm5, %v9188_v62  ;;  %7046 = vmatpush3.msra.mxu1 %v4370_v31 }
 0x2b2   : > { %7047 = vmatprep.subr.mxu1 %v4369_v3  ;;  %7033 = vmatmul.mubr.msk.f32.gmra.mxu0 %vm703_vm5, %v9107_v46 }
 0x2b3   : > { %7048 = vmatpush3.msra.mxu1 %v4369_v3  ;;  %7035 = vmatprep.mubr.msk.f32.mxu0 %vm703_vm5, %v9111_v1 }
 0x2b4   : > { %6984 = vmatmul.mubr.msk.f32.gmra.mxu1 %vm703_vm5, %v9205_v14  ;;  %7049 = vmatprep.subr.mxu1 %v4368_v37 }
 0x2b5   : > { %6986 = vmatprep.mubr.msk.f32.mxu1 %vm703_vm5, %v9210_v55  ;;  %7050 = vmatpush3.msra.mxu1 %v4368_v37 }
 0x2b6   : > { %7051 = vmatprep.subr.mxu1 %v4367_v18  ;;  %7036 = vmatmul.mubr.msk.f32.gmra.mxu0 %vm703_vm5, %v9126_v51 }
 0x2b7   : > { %7052 = vmatpush3.msra.mxu1 %v4367_v18  ;;  %7038 = vmatprep.mubr.msk.f32.mxu0 %vm703_vm5, %v9347_v17 }
 0x2b8   : > { %6987 = vmatmul.mubr.msk.f32.gmra.mxu1 %vm703_vm5, %v9228_v49  ;;  %7053 = vmatprep.subr.mxu1 %v4366_v23 }
 0x2b9   : > { %6989 = vmatprep.mubr.msk.f32.mxu1 %vm703_vm5, %v9230_v32  ;;  %7054 = vmatpush3.msra.mxu1 %v4366_v23 }
 0x2ba   : > { %7055 = vmatprep.subr.mxu1 %v4365_v45  ;;  %7039 = vmatmul.mubr.msk.f32.gmra.mxu0 %vm703_vm5, %v9353_v34 }
 0x2bb   : > { %7056 = vmatpush3.msra.mxu1 %v4365_v45  ;;  %7094 = vmatpush3.msra.mxu0 %v4600_v57 }
 0x2bc   : > { %6990 = vmatmul.mubr.msk.f32.gmra.mxu1 %vm703_vm5, %v9247_v22  ;;  %7095 = vmatprep.subr.mxu0 %v4599_v39 }
 0x2bd   : > { %6992 = vmatprep.mubr.msk.f32.mxu1 %vm703_vm5, %v9249_v36  ;;  %7121 = vmatprep.subr.mxu1 %v4839_v10 }
 0x2be   : > { %7096 = vmatpush3.msra.mxu0 %v4599_v39  ;;  %7097 = vmatprep.mubr.msk.f32.mxu0 %vm703_vm5, %v9166_v33  ;;  %v9402_v33 = vld [vmem:[%s10013_s1 + $0x228] sm:$0xff] }
 0x2bf   : > { %7161 = vmatprep.subr.mxu0 %v9375_v54  ;;  %7098 = vmatmul.mubr.msk.f32.vlgmr.msra.gmra.mxu0 %vm703_vm5, %v9183_v35  ;;  %v4838_v35 = vld [vmem:[%s10013_s1 + $0x1f0] sm:$0xff] }
 0x2c0   : > { %6993 = vmatmul.mubr.msk.f32.gmra.mxu1 %vm703_vm5, %v9262_v47  ;;  %7100 = vmatprep.mubr.msk.f32.mxu0 %vm703_vm5, %v9188_v62  ;;  %v4835_v62 = vld [vmem:[%s10013_s1 + $0x1d8] sm:$0xff] }
 0x2c1   : > { %6995 = vmatprep.mubr.msk.f32.mxu1 %vm703_vm5, %v9266_v60  ;;  %7162 = vmatpush3.msra.mxu0 %v9375_v54 }
 0x2c2   : > { %7163 = vmatprep.subr.mxu0 %v9389_v52 }
 0x2c3   : > { %7101 = vmatmul.mubr.msk.f32.gmra.mxu0 %vm703_vm5, %v9205_v14  ;;  %v4834_v14 = vld [vmem:[%s10013_s1 + $0x1d0] sm:$0xff] }
 0x2c4   : > { %6996 = vmatmul.mubr.msk.f32.gmra.mxu1 %vm703_vm5, %v9277_v38  ;;  %7103 = vmatprep.mubr.msk.f32.mxu0 %vm703_vm5, %v9210_v55  ;;  %v9447_v55 = vld [vmem:[%s10013_s1 + $0x220] sm:$0xff] }
 0x2c5   : > { %6998 = vmatprep.mubr.msk.f32.mxu1 %vm703_vm5, %v3897_v6  ;;  %7164 = vmatpush3.msra.mxu0 %v9389_v52 }
 0x2c6   : > { %7165 = vmatprep.subr.mxu0 %v9402_v33 }
 0x2c7   : > { %7104 = vmatmul.mubr.msk.f32.gmra.mxu0 %vm703_vm5, %v9228_v49  ;;  %v4832_v49 = vld [vmem:[%s10013_s1 + $0x1c0] sm:$0xff] }
 0x2c8   : > { %6999 = vmatmul.mubr.msk.f32.gmra.mxu1 %vm703_vm5, %v3898_v61  ;;  %7106 = vmatprep.mubr.msk.f32.mxu0 %vm703_vm5, %v9230_v32  ;;  %v5067_v32 = vld [vmem:[%s10013_s1 + $0x210] sm:$0xff] }
 0x2c9   : > { %7057 = vmatprep.mubr.msk.f32.mxu1 %vm703_vm5, %v9077_v13  ;;  %v4837_v13 = vld [vmem:[%s10013_s1 + $0x1e8] sm:$0xff]  ;;  %7166 = vmatpush3.msra.mxu0 %v9402_v33 }
 0x2ca   : > { %7167 = vmatprep.subr.mxu0 %v9447_v55 }
 0x2cb   : > { %7107 = vmatmul.mubr.msk.f32.gmra.mxu0 %vm703_vm5, %v9247_v22  ;;  %v5065_v22 = vld [vmem:[%s10013_s1 + $0x200] sm:$0xff] }
 0x2cc   : > { %7058 = vmatmul.mubr.msk.f32.vlgmr.msra.gmra.mxu1 %vm703_vm5, %v9096_v7  ;;  %v4836_v7 = vld [vmem:[%s10013_s1 + $0x1e0] sm:$0xff]  ;;  %7109 = vmatprep.mubr.msk.f32.mxu0 %vm703_vm5, %v9249_v36  ;;  %v4363_v36 = vld [vmem:[#allocation2 + $0x129] sm:$0xff] }
 0x2cd   : > { %7122 = vmatpush3.msra.mxu1 %v4839_v10  ;;  %7060 = vmatprep.mubr.msk.f32.mxu1 %vm703_vm5, %v9098_v11 }
 0x2ce   : > { %7123 = vmatprep.subr.mxu1 %v4838_v35  ;;  %7168 = vmatpush3.msra.mxu0 %v9447_v55 }
 0x2cf   : > { %7124 = vmatpush3.msra.mxu1 %v4838_v35  ;;  %7110 = vmatmul.mubr.msk.f32.gmra.mxu0 %vm703_vm5, %v9262_v47 }
 0x2d0   : > { %7061 = vmatmul.mubr.msk.f32.gmra.mxu1 %vm703_vm5, %v9115_v20  ;;  %7125 = vmatprep.subr.mxu1 %v4837_v13 }
 0x2d1   : > { %7063 = vmatprep.mubr.msk.f32.mxu1 %vm703_vm5, %v9117_v30  ;;  %7126 = vmatpush3.msra.mxu1 %v4837_v13 }
 0x2d2   : > { %7127 = vmatprep.subr.mxu1 %v4836_v7  ;;  %7112 = vmatprep.mubr.msk.f32.mxu0 %vm703_vm5, %v9266_v60 }
 0x2d3   : > { %7128 = vmatpush3.msra.mxu1 %v4836_v7  ;;  %7113 = vmatmul.mubr.msk.f32.gmra.mxu0 %vm703_vm5, %v9277_v38 }
 0x2d4   : > { %7064 = vmatmul.mubr.msk.f32.gmra.mxu1 %vm703_vm5, %v9135_v8  ;;  %7129 = vmatprep.subr.mxu1 %v4835_v62 }
 0x2d5   : > { %7066 = vmatprep.mubr.msk.f32.mxu1 %vm703_vm5, %v9137_v9  ;;  %7130 = vmatpush3.msra.mxu1 %v4835_v62 }
 0x2d6   : > { %7131 = vmatprep.subr.mxu1 %v4834_v14  ;;  %7169 = vmatprep.subr.mxu0 %v5068_v29 }
 0x2d7   : > { %7132 = vmatpush3.msra.mxu1 %v4834_v14  ;;  %7115 = vmatprep.mubr.msk.f32.mxu0 %vm703_vm5, %v3897_v6 }
 0x2d8   : > { %7067 = vmatmul.mubr.msk.f32.gmra.mxu1 %vm703_vm5, %v9154_v24  ;;  %7133 = vmatprep.subr.mxu1 %v4833_v21 }
 0x2d9   : > { %7069 = vmatprep.mubr.msk.f32.mxu1 %vm703_vm5, %v9157_v50  ;;  %7170 = vmatpush3.msra.mxu0 %v5068_v29 }
 0x2da   : > { %7134 = vmatpush3.msra.mxu1 %v4833_v21  ;;  %7116 = vmatmul.mubr.msk.f32.gmra.mxu0 %vm703_vm5, %v3898_v61 }
 0x2db   : > { %7135 = vmatprep.subr.mxu1 %v4832_v49  ;;  %7171 = vmatprep.subr.mxu0 %v5067_v32 }
 0x2dc   : > { %7070 = vmatmul.mubr.msk.f32.gmra.mxu1 %vm703_vm5, %v9175_v53  ;;  %7118 = vmatprep.mubr.msk.f32.mxu0 %vm703_vm5, %v4597_v58 }
 0x2dd   : > { %7072 = vmatprep.mubr.msk.f32.mxu1 %vm703_vm5, %v9179_v43  ;;  %7172 = vmatpush3.msra.mxu0 %v5067_v32 }
 0x2de   : > { %7136 = vmatpush3.msra.mxu1 %v4832_v49  ;;  %7119 = vmatmul.mubr.msk.f32.gmra.mxu0 %vm703_vm5, %v4598_v28 }
 0x2df   : > { %7173 = vmatprep.subr.mxu0 %v5066_v27  ;;  %7201 = vmatprep.subr.mxu1 %v9375_v54 }
 0x2e0   : > { %7073 = vmatmul.mubr.msk.f32.gmra.mxu1 %vm703_vm5, %v9197_v40  ;;  %7174 = vmatpush3.msra.mxu0 %v5066_v27 }
 0x2e1   : > { %7075 = vmatprep.mubr.msk.f32.mxu1 %vm703_vm5, %v9201_v59  ;;  %7175 = vmatprep.subr.mxu0 %v5065_v22 }
 0x2e2   : > { %7176 = vmatpush3.msra.mxu0 %v5065_v22  ;;  %7177 = vmatprep.mubr.msk.f32.mxu0 %vm703_vm5, %v9098_v11 }
 0x2e3   : > { %7178 = vmatmul.mubr.msk.f32.vlgmr.msra.gmra.mxu0 %vm703_vm5, %v9115_v20 }
 0x2e4   : > { %7076 = vmatmul.mubr.msk.f32.gmra.mxu1 %vm703_vm5, %v9219_v19  ;;  %7180 = vmatprep.mubr.msk.f32.mxu0 %vm703_vm5, %v9117_v30 }
 0x2e5   : > { %7078 = vmatprep.mubr.msk.f32.mxu1 %vm703_vm5, %v4363_v36 }
 0x2e7   : > { %7181 = vmatmul.mubr.msk.f32.gmra.mxu0 %vm703_vm5, %v9135_v8 }
 0x2e8   : > { %7079 = vmatmul.mubr.msk.f32.gmra.mxu1 %vm703_vm5, %v4364_v26  ;;  %7183 = vmatprep.mubr.msk.f32.mxu0 %vm703_vm5, %v9137_v9 }
 0x2e9   : > { %7137 = vmatprep.mubr.msk.f32.mxu1 %vm703_vm5, %v9026_v63  ;;  %v4830_v63 = vld [vmem:[#allocation2 + $0x148] sm:$0xff] }
 0x2eb   : > { %7184 = vmatmul.mubr.msk.f32.gmra.mxu0 %vm703_vm5, %v9154_v24 }
 0x2ec   : > { %7138 = vmatmul.mubr.msk.f32.vlgmr.msra.gmra.mxu1 %vm703_vm5, %v9038_v16  ;;  %7186 = vmatprep.mubr.msk.f32.mxu0 %vm703_vm5, %v9157_v50  ;;  %v4831_v16 = vld [vmem:[#allocation2 + $0x150] sm:$0xff] }
 0x2ed   : > { %7209 = vmatpush3.msra.mxu1 %v9375_v54  ;;  %7140 = vmatprep.mubr.msk.f32.mxu1 %vm703_vm5, %v9043_v0  ;;  %v5063_v0 = vld [vmem:[#allocation2 + $0x149] sm:$0xff] }
 0x2ee   : > { %7202 = vmatprep.subr.mxu1 %v9389_v52 }
 0x2ef   : > { %7210 = vmatpush3.msra.mxu1 %v9389_v52  ;;  %7187 = vmatmul.mubr.msk.f32.gmra.mxu0 %vm703_vm5, %v9175_v53 }
 0x2f0   : > { %7141 = vmatmul.mubr.msk.f32.gmra.mxu1 %vm703_vm5, %v9055_v2  ;;  %7203 = vmatprep.subr.mxu1 %v9402_v33  ;;  %v5064_v2 = vld [vmem:[#allocation2 + $0x151] sm:$0xff] }
 0x2f1   : > { %7143 = vmatprep.mubr.msk.f32.mxu1 %vm703_vm5, %v9060_v41  ;;  %7211 = vmatpush3.msra.mxu1 %v9402_v33 }
 0x2f2   : > { %7204 = vmatprep.subr.mxu1 %v9447_v55  ;;  %7189 = vmatprep.mubr.msk.f32.mxu0 %vm703_vm5, %v9179_v43 }
 0x2f3   : > { %7212 = vmatpush3.msra.mxu1 %v9447_v55  ;;  %7190 = vmatmul.mubr.msk.f32.gmra.mxu0 %vm703_vm5, %v9197_v40 }
 0x2f4   : > { %7144 = vmatmul.mubr.msk.f32.gmra.mxu1 %vm703_vm5, %v9069_v12  ;;  %7205 = vmatprep.subr.mxu1 %v5068_v29 }
 0x2f5   : > { %7146 = vmatprep.mubr.msk.f32.mxu1 %vm703_vm5, %v9074_v44  ;;  %7213 = vmatpush3.msra.mxu1 %v5068_v29 }
 0x2f6   : > { %7206 = vmatprep.subr.mxu1 %v5067_v32  ;;  %7192 = vmatprep.mubr.msk.f32.mxu0 %vm703_vm5, %v9201_v59 }
 0x2f7   : > { %7214 = vmatpush3.msra.mxu1 %v5067_v32  ;;  %7193 = vmatmul.mubr.msk.f32.gmra.mxu0 %vm703_vm5, %v9219_v19 }
 0x2f8   : > { %7147 = vmatmul.mubr.msk.f32.gmra.mxu1 %vm703_vm5, %v9086_v42  ;;  %7207 = vmatprep.subr.mxu1 %v5066_v27 }
 0x2f9   : > { %7149 = vmatprep.mubr.msk.f32.mxu1 %vm703_vm5, %v9092_v25  ;;  %7215 = vmatpush3.msra.mxu1 %v5066_v27 }
 0x2fa   : > { %7208 = vmatprep.subr.mxu1 %v5065_v22  ;;  %7195 = vmatprep.mubr.msk.f32.mxu0 %vm703_vm5, %v4363_v36 }
 0x2fb   : > { %7216 = vmatpush3.msra.mxu1 %v5065_v22  ;;  %7196 = vmatmul.mubr.msk.f32.gmra.mxu0 %vm703_vm5, %v4364_v26 }
 0x2fc   : > { %7150 = vmatmul.mubr.msk.f32.gmra.mxu1 %vm703_vm5, %v9107_v46 }
 0x2fd   : > { %7152 = vmatprep.mubr.msk.f32.mxu1 %vm703_vm5, %v9111_v1 }
 0x300   : > { %7153 = vmatmul.mubr.msk.f32.gmra.mxu1 %vm703_vm5, %v9126_v51 }
 0x301   : > { %7155 = vmatprep.mubr.msk.f32.mxu1 %vm703_vm5, %v9347_v17 }
 0x304   : > { %7156 = vmatmul.mubr.msk.f32.gmra.mxu1 %vm703_vm5, %v9353_v34 }
 0x305   : > { %7158 = vmatprep.mubr.msk.f32.mxu1 %vm703_vm5, %v4830_v63 }
 0x308   : > { %7159 = vmatmul.mubr.msk.f32.gmra.mxu1 %vm703_vm5, %v4831_v16 }
 0x309   : > { %7198 = vmatprep.mubr.msk.f32.mxu1 %vm703_vm5, %v5063_v0 }
 0x30c   : > { %7199 = vmatmul.mubr.msk.f32.vlgmr.msra.gmra.mxu1 %vm703_vm5, %v5064_v2 }
 0x32c   : > { %v6859_v41 = vpop.f32.mrf.mxu1 }
 0x32e   : > { %v3378_v12 = vpop.f32.mrf.mxu1 }
 0x330   : > { %v6862_v44 = vpop.f32.mrf.mxu1 }
 0x332   : > { %v3388_v42 = vpop.f32.mrf.mxu1  ;;  %v6939_v30 = vpop.f32.mrf.mxu0 }
 0x334   : > { %v6865_v25 = vpop.f32.mrf.mxu1  ;;  %v3788_v8 = vpop.f32.mrf.mxu0 }
 0x336   : > { %v3398_v11 = vpop.f32.mrf.mxu1 }
 0x338   : > { %v6868_v46 = vpop.f32.mrf.mxu1 }
 0x33a   : > { %v3408_v1 = vpop.f32.mrf.mxu1 }
 0x33b   : > { %v6942_v24 = vpop.f32.mrf.mxu0 }
 0x33c   : > { %v6871_v20 = vpop.f32.mrf.mxu1 }
 0x33d   : > { %v3798_v53 = vpop.f32.mrf.mxu0 }
 0x33e   : > { %v3418_v51 = vpop.f32.mrf.mxu1 }
 0x33f   : > { %v6945_v40 = vpop.f32.mrf.mxu0 }
 0x340   : > { %v6874_v9 = vpop.f32.mrf.mxu1 }
 0x341   : > { %v3808_v19 = vpop.f32.mrf.mxu0 }
 0x342   : > { %v3428_v50 = vpop.f32.mrf.mxu1 }
 0x344   : > { %v6877_v43 = vpop.f32.mrf.mxu1 }
 0x345   : > { %v6948_v60 = vpop.f32.mrf.mxu0 }
 0x346   : > { %v3438_v59 = vpop.f32.mrf.mxu1 }
 0x347   : > { %v3818_v38 = vpop.f32.mrf.mxu0 }
 0x348   : > { %v6880_v47 = vpop.f32.mrf.mxu1 }
 0x349   : > { %v6951_v3 = vpop.f32.mrf.mxu0 }
 0x34a   : > { %v3448_v15 = vpop.f32.mrf.mxu1 }
 0x34b   : > { %v3828_v23 = vpop.f32.mrf.mxu0 }
 0x34c   : > { %v6899_v56 = vpop.f32.mrf.mxu1 }
 0x34d   : > { %v3577_v5 = vadd.f32 %v6899_v56, %v6859_v41 }
 0x34e   : > { %v3571_v31 = vpop.f32.mrf.mxu1  ;;  %v6954_v34 = vpop.f32.mrf.mxu0 }
 0x34f   : > { %v3572_v37 = vadd.f32 %v3571_v31, %v3378_v12  ;;  %v9563_v18 = vadd.f32 %v6939_v30, %v3577_v5 }
 0x350   : > { %v6902_v48 = vpop.f32.mrf.mxu1  ;;  %v3838_v54 = vpop.f32.mrf.mxu0 }
 0x351   : > { %v3587_v45 = vadd.f32 %v6902_v48, %v6862_v44  ;;  %v9565_v4 = vadd.f32 %v3788_v8, %v3572_v37 }
 0x352   : > { %v3581_v17 = vpop.f32.mrf.mxu1  ;;  %v6957_v33 = vpop.f32.mrf.mxu0 }
 0x353   : > { %v3582_v57 = vadd.f32 %v3581_v17, %v3388_v42  ;;  %v9567_v39 = vadd.f32 %v6942_v24, %v3587_v45 }
 0x354   : > { %v6905_v10 = vpop.f32.mrf.mxu1  ;;  %v3848_v62 = vpop.f32.mrf.mxu0 }
 0x355   : > { %v3597_v6 = vadd.f32 %v6905_v10, %v6865_v25  ;;  %v9569_v52 = vadd.f32 %v3798_v53, %v3582_v57 }
 0x356   : > { %v3591_v61 = vpop.f32.mrf.mxu1  ;;  %v6960_v29 = vpop.f32.mrf.mxu0 }
 0x357   : > { %v3592_v35 = vadd.f32 %v3591_v61, %v3398_v11  ;;  %v9571_v13 = vadd.f32 %v6945_v40, %v3597_v6 }
 0x358   : > { %v6908_v7 = vpop.f32.mrf.mxu1  ;;  %v3858_v28 = vpop.f32.mrf.mxu0 }
 0x359   : > { %v3607_v14 = vadd.f32 %v6908_v7, %v6868_v46  ;;  %v9573_v55 = vadd.f32 %v3808_v19, %v3592_v35 }
 0x35a   : > { %v3601_v21 = vpop.f32.mrf.mxu1 }
 0x35b   : > { %v3602_v49 = vadd.f32 %v3601_v21, %v3408_v1  ;;  %v9575_v32 = vadd.f32 %v6948_v60, %v3607_v14 }
 0x35c   : > { %v6911_v58 = vpop.f32.mrf.mxu1 }
 0x35d   : > { %v3617_v27 = vadd.f32 %v6911_v58, %v6871_v20  ;;  %v9577_v22 = vadd.f32 %v3818_v38, %v3602_v49  ;;  %v9581_v0 = vpop.f32.mrf.mxu0 }
 0x35e   : > { %v3611_v36 = vpop.f32.mrf.mxu1 }
 0x35f   : > { %v3612_v26 = vadd.f32 %v3611_v36, %v3418_v51  ;;  %v9579_v63 = vadd.f32 %v6951_v3, %v3617_v27  ;;  %v9585_v44 = vpop.f32.mrf.mxu0 }
 0x360   : > { %v6914_v16 = vpop.f32.mrf.mxu1 }
 0x361   : > { %v3627_v2 = vadd.f32 %v6914_v16, %v6874_v9  ;;  %v9583_v41 = vadd.f32 %v3828_v23, %v3612_v26  ;;  %v9589_v46 = vpop.f32.mrf.mxu0 }
 0x362   : > { %v3621_v12 = vpop.f32.mrf.mxu1 }
 0x363   : > { %v3622_v42 = vadd.f32 %v3621_v12, %v3428_v50  ;;  %v9587_v25 = vadd.f32 %v6954_v34, %v3627_v2  ;;  %v9593_v51 = vpop.f32.mrf.mxu0 }
 0x364   : > { %v6917_v11 = vpop.f32.mrf.mxu1 }
 0x365   : > { %v3637_v1 = vadd.f32 %v6917_v11, %v6877_v43  ;;  %v9591_v20 = vadd.f32 %v3838_v54, %v3622_v42  ;;  %v9597_v53 = vpop.f32.mrf.mxu0 }
 0x366   : > { %v3631_v30 = vpop.f32.mrf.mxu1 }
 0x367   : > { %v3632_v8 = vadd.f32 %v3631_v30, %v3438_v59  ;;  %v9595_v24 = vadd.f32 %v6957_v33, %v3637_v1  ;;  %v9601_v60 = vpop.f32.mrf.mxu0 }
 0x368   : > { %v6920_v9 = vpop.f32.mrf.mxu1 }
 0x369   : > { %v3647_v40 = vadd.f32 %v6920_v9, %v6880_v47  ;;  %v9599_v19 = vadd.f32 %v3848_v62, %v3632_v8  ;;  %v9605_v5 = vpop.f32.mrf.mxu0 }
 0x36a   : > { %v3641_v50 = vpop.f32.mrf.mxu1 }
 0x36b   : > { %10014 = vst [vmem:[#allocation24_spill] sm:$0xff] %v9599_v19  ;;  %v3642_v38 = vadd.f32 %v3641_v50, %v3448_v15  ;;  %v9603_v56 = vadd.f32 %v6960_v29, %v3647_v40  ;;  %v9609_v3 = vpop.f32.mrf.mxu0 }
 0x36c   : > { %v6979_v43 = vpop.f32.mrf.mxu1 }
 0x36d   : > { %10015 = vst [vmem:[#allocation23_spill] sm:$0xff] %v9603_v56  ;;  %v9607_v31 = vadd.f32 %v3858_v28, %v3642_v38 }
 0x36e   : > { %v4021_v59 = vpop.f32.mrf.mxu1  ;;  %v9611_v23 = vpop.f32.mrf.mxu0 }
 0x36f   : > { %10016 = vst [vmem:[#allocation33_spill] sm:$0xff] %v9607_v31 }
 0x370   : > { %v6982_v37 = vpop.f32.mrf.mxu1  ;;  %v9613_v45 = vpop.f32.mrf.mxu0 }
 0x372   : > { %v4031_v48 = vpop.f32.mrf.mxu1  ;;  %v9615_v34 = vpop.f32.mrf.mxu0 }
 0x374   : > { %v6985_v47 = vpop.f32.mrf.mxu1  ;;  %v9619_v57 = vpop.f32.mrf.mxu0 }
 0x375   : > { %10017 = vst [vmem:[#allocation26_spill] sm:$0xff] %v9619_v57 }
 0x376   : > { %v4041_v17 = vpop.f32.mrf.mxu1  ;;  %v9623_v54 = vpop.f32.mrf.mxu0 }
 0x377   : > { %10018 = vst [vmem:[#allocation25_spill] sm:$0xff] %v9623_v54 }
 0x378   : > { %v9617_v15 = vpop.f32.mrf.mxu1  ;;  %v9627_v61 = vpop.f32.mrf.mxu0 }
 0x379   : > { %10019 = vst [vmem:[#allocation34_spill] sm:$0xff] %v9627_v61 }
 0x37a   : > { %v9621_v10 = vpop.f32.mrf.mxu1  ;;  %v9631_v35 = vpop.f32.mrf.mxu0 }
 0x37b   : > { %10020 = vst [vmem:[#allocation28_spill] sm:$0xff] %v9631_v35 }
 0x37c   : > { %v9625_v6 = vpop.f32.mrf.mxu1  ;;  %v9635_v62 = vpop.f32.mrf.mxu0 }
 0x37d   : > { %10021 = vst [vmem:[#allocation27_spill] sm:$0xff] %v9635_v62 }
 0x37e   : > { %v9629_v33 = vpop.f32.mrf.mxu1 }
 0x37f   : > { %v7099_v29 = vpop.f32.mrf.mxu0 }
 0x380   : > { %v9633_v7 = vpop.f32.mrf.mxu1 }
 0x381   : > { %v4721_v58 = vpop.f32.mrf.mxu0 }
 0x382   : > { %v9637_v14 = vpop.f32.mrf.mxu1 }
 0x383   : > { %v7102_v27 = vpop.f32.mrf.mxu0 }
 0x384   : > { %v9639_v21 = vpop.f32.mrf.mxu1 }
 0x385   : > { %v9647_v26 = vpop.f32.mrf.mxu0 }
 0x386   : > { %v9641_v49 = vpop.f32.mrf.mxu1 }
 0x387   : > { %10022 = vst [vmem:[#allocation35_spill] sm:$0xff] %v9641_v49  ;;  %v9649_v2 = vpop.f32.mrf.mxu0 }
 0x388   : > { %v9643_v28 = vpop.f32.mrf.mxu1 }
 0x389   : > { %10023 = vst [vmem:[#allocation30_spill] sm:$0xff] %v9643_v28  ;;  %v9651_v42 = vpop.f32.mrf.mxu0 }
 0x38a   : > { %v9645_v36 = vpop.f32.mrf.mxu1 }
 0x38b   : > { %10024 = vst [vmem:[#allocation29_spill] sm:$0xff] %v9645_v36  ;;  %v9653_v30 = vpop.f32.mrf.mxu0 }
 0x38c   : > { %v7059_v16 = vpop.f32.mrf.mxu1 }
 0x38d   : > { %v9655_v9 = vpop.f32.mrf.mxu0 }
 0x38e   : > { %v4487_v12 = vpop.f32.mrf.mxu1  ;;  %10025 = vst [vmem:[#allocation36_spill] sm:$0xff] %v9655_v9 }
 0x38f   : > { %v9657_v50 = vpop.f32.mrf.mxu0 }
 0x390   : > { %v7062_v11 = vpop.f32.mrf.mxu1  ;;  %10026 = vst [vmem:[#allocation32_spill] sm:$0xff] %v9657_v50  ;;  %v4101_v50 = vadd.f32 %v6979_v43, %v9563_v18  ;;  %v4102_v18 = vadd.f32 %v4031_v48, %v9569_v52 }
 0x391   : > { %v9661_v62 = vpop.f32.mrf.mxu0 }
 0x392   : > { %v4497_v1 = vpop.f32.mrf.mxu1  ;;  %10027 = vst [vmem:[#allocation31_spill] sm:$0xff] %v9661_v62 }
 0x393   : > { %v9665_v36 = vpop.f32.mrf.mxu0 }
 0x394   : > { %v7065_v8 = vpop.f32.mrf.mxu1  ;;  %10028 = vst [vmem:[#allocation37_spill] sm:$0xff] %v9665_v36  ;;  %v4100_v36 = vadd.f32 %v4021_v59, %v9565_v4 }
 0x395   : > { %v9669_v61 = vpop.f32.mrf.mxu0 }
 0x396   : > { %v4507_v40 = vpop.f32.mrf.mxu1  ;;  %10029 = vst [vmem:[#allocation38_spill] sm:$0xff] %v9669_v61  ;;  %v4334_v61 = vadd.f32 %v9581_v0, %v4101_v50  ;;  %v4104_v0 = vadd.f32 %v4041_v17, %v9573_v55  ;;  %v4106_v17 = vadd.f32 %v9621_v10, %v9577_v22 }
 0x398   : > { %v9659_v38 = vpop.f32.mrf.mxu1  ;;  %v4567_v43 = vadd.f32 %v7059_v16, %v4334_v61  ;;  %v4337_v55 = vadd.f32 %v9601_v60, %v4104_v0  ;;  %v4109_v60 = vadd.f32 %v9625_v6, %v9579_v63  ;;  %v5305_v6 = vld [vmem:[%s7901_s8] sm:$0xff] }
 0x39a   : > { %v9663_v35 = vpop.f32.mrf.mxu1  ;;  %v9673_v56 = vpop.f32.mrf.mxu0  ;;  %v4570_v16 = vadd.f32 %v4507_v40, %v4337_v55  ;;  %v4342_v0 = vadd.f32 %v9611_v23, %v4109_v60  ;;  %v10041_v60 = vld [vmem:[#allocation24_spill] sm:$0xff] }
 0x39b   : > { %10031 = vst [vmem:[#allocation40_spill] sm:$0xff] %v9673_v56  ;;  %v4103_v56 = vadd.f32 %v6982_v37, %v9567_v39  ;;  %v4335_v39 = vadd.f32 %v9593_v51, %v4102_v18  ;;  %v4801_v37 = vadd.f32 %v7099_v29, %v4567_v43 }
 0x39c   : > { %v9667_v31 = vpop.f32.mrf.mxu1  ;;  %v9677_v49 = vpop.f32.mrf.mxu0 }
 0x39d   : > { %10033 = vst [vmem:[#allocation42_spill] sm:$0xff] %v9677_v49  ;;  %v4333_v49 = vadd.f32 %v9585_v44, %v4100_v36  ;;  %v4336_v4 = vadd.f32 %v9589_v46, %v4103_v56  ;;  %v4568_v46 = vadd.f32 %v4497_v1, %v4335_v39 }
 0x39e   : > { %v9671_v28 = vpop.f32.mrf.mxu1  ;;  %v9682_v62 = vpop.f32.mrf.mxu0 }
 0x39f   : > { %10030 = vst [vmem:[#allocation39_spill] sm:$0xff] %v9671_v28  ;;  %10035 = vst [vmem:[#allocation44_spill] sm:$0xff] %v9682_v62  ;;  %v4105_v62 = vadd.f32 %v6985_v47, %v9571_v13  ;;  %v4566_v59 = vadd.f32 %v4487_v12, %v4333_v49  ;;  %v4569_v44 = vadd.f32 %v7062_v11, %v4336_v4  ;;  %v5306_v12 = vld [vmem:[%s7901_s8 + $0x8] sm:$0xff] }
 0x3a0   : > { %v9675_v54 = vpop.f32.mrf.mxu1  ;;  %v9687_v9 = vpop.f32.mrf.mxu0  ;;  %v4107_v13 = vadd.f32 %v9617_v15, %v9575_v32  ;;  %v4802_v10 = vadd.f32 %v9647_v26, %v4568_v46 }
 0x3a1   : > { %10032 = vst [vmem:[#allocation41_spill] sm:$0xff] %v9675_v54  ;;  %10036 = vst [vmem:[#allocation45_spill] sm:$0xff] %v9687_v9  ;;  %v4338_v52 = vadd.f32 %v9597_v53, %v4105_v62  ;;  %v4800_v47 = vadd.f32 %v4721_v58, %v4566_v59  ;;  %v9712_v53 = vld [vmem:[%s10037_s17] ss:$0 sm:$0xff]  ;;  %v4803_v62 = vadd.f32 %v7102_v27, %v4569_v44 }
 0x3a2   : > { %v9680_v19 = vpop.f32.mrf.mxu1  ;;  %v4340_v58 = vadd.f32 %v9605_v5, %v4107_v13  ;;  %v4108_v27 = vadd.f32 %v9629_v33, %v9583_v41  ;;  %v4804_v41 = vadd.f32 %v9651_v42, %v4570_v16  ;;  %v5307_v42 = vld [vmem:[%s7901_s8 + $0x10] sm:$0xff]  ;;  %v10043_v16 = vld [vmem:[#allocation32_spill] sm:$0xff] }
 0x3a3   : > { %10034 = vst [vmem:[#allocation43_spill] sm:$0xff] %v9680_v19  ;;  %v7179_v19 = vpop.f32.mrf.mxu0  ;;  %v4571_v51 = vadd.f32 %v7065_v8, %v4338_v52 }
 0x3a4   : > { %v9685_v57 = vpop.f32.mrf.mxu1  ;;  %v4573_v63 = vadd.f32 %v9659_v38, %v4340_v58  ;;  %v4341_v23 = vadd.f32 %v9613_v45, %v4108_v27 }
 0x3a5   : > { %v5187_v9 = vpop.f32.mrf.mxu0  ;;  %v4805_v5 = vadd.f32 %v9649_v2, %v4571_v51  ;;  %v5308_v2 = vld [vmem:[%s7901_s8 + $0x18] sm:$0xff] }
 0x3a6   : > { %v9691_v28 = vpop.f32.mrf.mxu1  ;;  %v10039_v55 = vld [vmem:[#allocation39_spill] sm:$0xff] }
 0x3a7   : > { %v7182_v36 = vpop.f32.mrf.mxu0 }
 0x3a8   : > { %v9696_v54 = vpop.f32.mrf.mxu1 }
 0x3a9   : > { %v5197_v61 = vpop.f32.mrf.mxu0 }
 0x3aa   : > { %v9700_v50 = vpop.f32.mrf.mxu1 }
 0x3ab   : > { %v7185_v49 = vpop.f32.mrf.mxu0 }
 0x3ac   : > { %v7139_v48 = vpop.f32.mrf.mxu1 }
 0x3ad   : > { %v5034_v56 = vadd.f32 %v7139_v48, %v4801_v37  ;;  %v5207_v18 = vpop.f32.mrf.mxu0 }
 0x3ae   : > { %v4954_v29 = vpop.f32.mrf.mxu1 }
 0x3af   : > { %v5033_v32 = vadd.f32 %v4954_v29, %v4800_v47  ;;  %v5267_v15 = vadd.f32 %v7179_v19, %v5034_v56  ;;  %v4339_v19 = vadd.f32 %v9609_v3, %v4106_v17  ;;  %v4111_v3 = vadd.f32 %v9633_v7, %v9587_v25  ;;  %v5310_v17 = vld [vmem:[%s7901_s8 + $0x28] sm:$0xff] }
 0x3b0   : > { %v7142_v22 = vpop.f32.mrf.mxu1  ;;  %v4110_v25 = vadd.f32 %v9637_v14, %v9591_v20  ;;  %v4807_v7 = vadd.f32 %v9653_v30, %v4573_v63  ;;  %v4113_v20 = vadd.f32 %v9639_v21, %v9595_v24  ;;  %v10038_v14 = vld [vmem:[#allocation36_spill] sm:$0xff]  ;;  %v10042_v24 = vld [vmem:[#allocation35_spill] sm:$0xff]  ;;  %v10045_v63 = vld [vmem:[#allocation25_spill] sm:$0xff] }
 0x3b1   : > { %v5290_v11 = vadd.f32 %v9712_v53, %v5267_v15  ;;  %v5036_v1 = vadd.f32 %v7142_v22, %v4803_v62  ;;  %v5266_v8 = vadd.f32 %v5187_v9, %v5033_v32  ;;  %v7188_v9 = vpop.f32.mrf.mxu0  ;;  %v4572_v33 = vadd.f32 %v9663_v35, %v4339_v19  ;;  %v10044_v22 = vld [vmem:[#allocation41_spill] sm:$0xff] }
 0x3b2   : > { %v4964_v40 = vpop.f32.mrf.mxu1  ;;  %v4575_v35 = vadd.f32 %v9667_v31, %v4342_v0  ;;  %v4344_v45 = vadd.f32 %v9615_v34, %v4111_v3  ;;  %v4574_v31 = vadd.f32 %v10039_v55, %v4341_v23  ;;  %v10040_v34 = vld [vmem:[#allocation26_spill] sm:$0xff]  ;;  %v4112_v21 = vadd.f32 %v10042_v24, %v10041_v60 }
 0x3b3   : > { %v5322_v43 = vadd.f32 %v5306_v12, %v5290_v11  ;;  %v5289_v26 = vadd.f32 %v9712_v53, %v5266_v8  ;;  %v5035_v4 = vadd.f32 %v4964_v40, %v4802_v10  ;;  %v5269_v59 = vadd.f32 %v7182_v36, %v5036_v1  ;;  %v5217_v52 = vpop.f32.mrf.mxu0  ;;  %v5309_v11 = vld [vmem:[%s7901_s8 + $0x20] sm:$0xff] }
 0x3b4   : > { %v7145_v38 = vpop.f32.mrf.mxu1  ;;  %v4806_v30 = vadd.f32 %v10038_v14, %v4572_v33  ;;  %v4343_v58 = vadd.f32 %v10040_v34, %v4110_v25  ;;  %v4809_v12 = vadd.f32 %v10043_v16, %v4575_v35  ;;  %v4577_v10 = vadd.f32 %v10044_v22, %v4344_v45  ;;  %v10046_v40 = vld [vmem:[#allocation31_spill] sm:$0xff] }
 0x3b5   : > { %5338 = vst.msk [vmem:[%s7910_s21 + $0x8] sm:$0xff] %vm703_vm5, %v5322_v43  ;;  %v5321_v39 = vadd.f32 %v5305_v6, %v5289_v26  ;;  %v5292_v37 = vadd.f32 %v9712_v53, %v5269_v59  ;;  %v5038_v44 = vadd.f32 %v7145_v38, %v4805_v5  ;;  %v5268_v36 = vadd.f32 %v5197_v61, %v5035_v4  ;;  %v7191_v61 = vpop.f32.mrf.mxu0  ;;  %v10047_v26 = vld [vmem:[#allocation43_spill] sm:$0xff]  ;;  %v5312_v59 = vld [vmem:[%s7901_s8 + $0x38] sm:$0xff] }
 0x3b6   : > { %v4974_v13 = vpop.f32.mrf.mxu1  ;;  %v4346_v6 = vadd.f32 %v10045_v63, %v4113_v20  ;;  %v4808_v43 = vadd.f32 %v10046_v40, %v4574_v31  ;;  %v4576_v4 = vadd.f32 %v10047_v26, %v4343_v58  ;;  %v10048_v38 = vld [vmem:[#allocation23_spill] sm:$0xff]  ;;  %v10054_v20 = vld [vmem:[#allocation38_spill] sm:$0xff] }
 0x3b7   : > { %5337 = vst.msk [vmem:[%s7910_s21] sm:$0xff] %vm703_vm5, %v5321_v39  ;;  %v5324_v48 = vadd.f32 %v5308_v2, %v5292_v37  ;;  %v5291_v47 = vadd.f32 %v9712_v53, %v5268_v36  ;;  %v5037_v46 = vadd.f32 %v4974_v13, %v4804_v41  ;;  %v5271_v56 = vadd.f32 %v7185_v49, %v5038_v44  ;;  %v5227_v49 = vpop.f32.mrf.mxu0  ;;  %v10050_v37 = vld [vmem:[#allocation34_spill] sm:$0xff]  ;;  %v10051_v36 = vld [vmem:[#allocation37_spill] sm:$0xff]  ;;  %v5313_v34 = vld [vmem:[%s7901_s8 + $0x40] sm:$0xff] }
 0x3b8   : > { %v7148_v51 = vpop.f32.mrf.mxu1  ;;  %v4345_v44 = vadd.f32 %v10050_v37, %v4112_v21  ;;  %v4811_v23 = vadd.f32 %v10051_v36, %v4577_v10  ;;  %v4579_v25 = vadd.f32 %v9685_v57, %v4346_v6  ;;  %v4810_v14 = vadd.f32 %v10054_v20, %v4576_v4  ;;  %v5314_v57 = vld [vmem:[%s7901_s8 + $0x48] sm:$0xff]  ;;  %v10058_v10 = vld [vmem:[#allocation42_spill] sm:$0xff]  ;;  %v10061_v37 = vld [vmem:[#allocation45_spill] sm:$0xff] }
 0x3b9   : > { %5340 = vst.msk [vmem:[%s7910_s21 + $0x18] sm:$0xff] %vm703_vm5, %v5324_v48  ;;  %v5323_v29 = vadd.f32 %v5307_v42, %v5291_v47  ;;  %v5294_v62 = vadd.f32 %v9712_v53, %v5271_v56  ;;  %v5040_v32 = vadd.f32 %v7148_v51, %v4807_v7  ;;  %v5270_v15 = vadd.f32 %v5207_v18, %v5037_v46  ;;  %v7194_v5 = vpop.f32.mrf.mxu0  ;;  %v5311_v7 = vld [vmem:[%s7901_s8 + $0x30] sm:$0xff] }
 0x3ba   : > { %v4984_v1 = vpop.f32.mrf.mxu1  ;;  %v10052_v46 = vld [vmem:[#allocation33_spill] sm:$0xff] }
 0x3bb   : > { %5339 = vst.msk [vmem:[%s7910_s21 + $0x10] sm:$0xff] %vm703_vm5, %v5323_v29  ;;  %v5326_v8 = vadd.f32 %v5310_v17, %v5294_v62  ;;  %v5293_v19 = vadd.f32 %v9712_v53, %v5270_v15  ;;  %v5039_v18 = vadd.f32 %v4984_v1, %v4806_v30  ;;  %v5273_v27 = vadd.f32 %v7188_v9, %v5040_v32  ;;  %v10049_v9 = vld [vmem:[#allocation30_spill] sm:$0xff]  ;;  %v5237_v42 = vpop.f32.mrf.mxu0  ;;  %v10053_v56 = vld [vmem:[#allocation29_spill] sm:$0xff]  ;;  %v10055_v62 = vld [vmem:[#allocation28_spill] sm:$0xff] }
 0x3bc   : > { %v7151_v0 = vpop.f32.mrf.mxu1  ;;  %v4115_v39 = vadd.f32 %v10049_v9, %v10048_v38  ;;  %v4114_v45 = vadd.f32 %v10053_v56, %v10052_v46  ;;  %v4578_v30 = vadd.f32 %v9691_v28, %v4345_v44  ;;  %v10056_v32 = vld [vmem:[#allocation40_spill] sm:$0xff]  ;;  %v5316_v1 = vld [vmem:[%s7901_s8 + $0x58] sm:$0xff]  ;;  %v5317_v9 = vld [vmem:[%s7901_s8 + $0x60] sm:$0xff] }
 0x3bd   : > { %5342 = vst.msk [vmem:[%s7910_s21 + $0x28] sm:$0xff] %vm703_vm5, %v5326_v8  ;;  %v5325_v3 = vadd.f32 %v5309_v11, %v5293_v19  ;;  %v5296_v41 = vadd.f32 %v9712_v53, %v5273_v27  ;;  %v5042_v33 = vadd.f32 %v7151_v0, %v4809_v12  ;;  %v5272_v2 = vadd.f32 %v5217_v52, %v5039_v18  ;;  %v7197_v60 = vpop.f32.mrf.mxu0  ;;  %v10057_v12 = vld [vmem:[#allocation27_spill] sm:$0xff]  ;;  %v5318_v0 = vld [vmem:[%s7901_s8 + $0x68] sm:$0xff]  ;;  %v5319_v56 = vld [vmem:[%s7901_s8 + $0x70] sm:$0xff] }
 0x3be   : > { %v4994_v35 = vpop.f32.mrf.mxu1  ;;  %v4813_v15 = vadd.f32 %v10056_v32, %v4579_v25  ;;  %v4347_v22 = vadd.f32 %v10057_v12, %v4114_v45  ;;  %v4812_v11 = vadd.f32 %v10058_v10, %v4578_v30 }
 0x3bf   : > { %5341 = vst.msk [vmem:[%s7910_s21 + $0x20] sm:$0xff] %vm703_vm5, %v5325_v3  ;;  %v5328_v13 = vadd.f32 %v5312_v59, %v5296_v41  ;;  %v5295_v52 = vadd.f32 %v9712_v53, %v5272_v2  ;;  %v5041_v48 = vadd.f32 %v4994_v35, %v4808_v43  ;;  %v5275_v47 = vadd.f32 %v7191_v61, %v5042_v33  ;;  %v10060_v41 = vld [vmem:[#allocation44_spill] sm:$0xff] }
 0x3c0   : > { %v7154_v55 = vpop.f32.mrf.mxu1  ;;  %v4348_v61 = vadd.f32 %v10055_v62, %v4115_v39  ;;  %v4580_v6 = vadd.f32 %v9700_v50, %v4347_v22 }
 0x3c1   : > { %5344 = vst.msk [vmem:[%s7910_s21 + $0x38] sm:$0xff] %vm703_vm5, %v5328_v13  ;;  %v5327_v31 = vadd.f32 %v5311_v7, %v5295_v52  ;;  %v5298_v17 = vadd.f32 %v9712_v53, %v5275_v47  ;;  %v5044_v51 = vadd.f32 %v7154_v55, %v4811_v23  ;;  %v5274_v29 = vadd.f32 %v5227_v49, %v5041_v48  ;;  %v5320_v52 = vld [vmem:[%s7901_s8 + $0x78] sm:$0xff] }
 0x3c2   : > { %v5004_v58 = vpop.f32.mrf.mxu1  ;;  %v4581_v49 = vadd.f32 %v9696_v54, %v4348_v61  ;;  %v5247_v54 = vpop.f32.mrf.mxu0  ;;  %v4814_v44 = vadd.f32 %v10061_v37, %v4580_v6 }
 0x3c3   : > { %5343 = vst.msk [vmem:[%s7910_s21 + $0x30] sm:$0xff] %vm703_vm5, %v5327_v31  ;;  %v5330_v28 = vadd.f32 %v5314_v57, %v5298_v17  ;;  %v5297_v24 = vadd.f32 %v9712_v53, %v5274_v29  ;;  %v5043_v21 = vadd.f32 %v5004_v58, %v4810_v14  ;;  %v5277_v16 = vadd.f32 %v7194_v5, %v5044_v51  ;;  %v5315_v5 = vld [vmem:[%s7901_s8 + $0x50] sm:$0xff]  ;;  %s9839_s8 = scalar_lea.sflag [#allocation5], %s10063_s19 }
 0x3c4   : > { %v7157_v8 = vpop.f32.mrf.mxu1  ;;  %v4815_v33 = vadd.f32 %v10060_v41, %v4581_v49 }
 0x3c5   : > { %5346 = vst.msk [vmem:[%s7910_s21 + $0x48] sm:$0xff] %vm703_vm5, %v5330_v28  ;;  %v5329_v19 = vadd.f32 %v5313_v34, %v5297_v24  ;;  %v5300_v18 = vadd.f32 %v9712_v53, %v5277_v16  ;;  %v5046_v27 = vadd.f32 %v7157_v8, %v4813_v15  ;;  %v5276_v63 = vadd.f32 %v5237_v42, %v5043_v21 }
 0x3c6   : > { %v5014_v40 = vpop.f32.mrf.mxu1 }
 0x3c7   : > { %5345 = vst.msk [vmem:[%s7910_s21 + $0x40] sm:$0xff] %vm703_vm5, %v5329_v19  ;;  %v5332_v43 = vadd.f32 %v5316_v1, %v5300_v18  ;;  %v5299_v26 = vadd.f32 %v9712_v53, %v5276_v63  ;;  %v5045_v4 = vadd.f32 %v5014_v40, %v4812_v11  ;;  %v5279_v59 = vadd.f32 %v7197_v60, %v5046_v27 }
 0x3c8   : > { %v7160_v3 = vpop.f32.mrf.mxu1 }
 0x3c9   : > { %5348 = vst.msk [vmem:[%s7910_s21 + $0x58] sm:$0xff] %vm703_vm5, %v5332_v43  ;;  %v5331_v50 = vadd.f32 %v5315_v5, %v5299_v26  ;;  %v5302_v2 = vadd.f32 %v9712_v53, %v5279_v59  ;;  %v5278_v38 = vadd.f32 %v5247_v54, %v5045_v4  ;;  %v5048_v23 = vadd.f32 %v7160_v3, %v4815_v33 }
 0x3ca   : > { %v5024_v39 = vpop.f32.mrf.mxu1 }
 0x3cb   : > { %5347 = vst.msk [vmem:[%s7910_s21 + $0x50] sm:$0xff] %vm703_vm5, %v5331_v50  ;;  %v5334_v36 = vadd.f32 %v5318_v0, %v5302_v2  ;;  %v5301_v25 = vadd.f32 %v9712_v53, %v5278_v38  ;;  %v5047_v42 = vadd.f32 %v5024_v39, %v4814_v44 }
 0x3cc   : > { %v7200_v7 = vpop.f32.mrf.mxu1 }
 0x3cd   : > { %5350 = vst.msk [vmem:[%s7910_s21 + $0x68] sm:$0xff] %vm703_vm5, %v5334_v36  ;;  %v5333_v35 = vadd.f32 %v5317_v9, %v5301_v25  ;;  %v5281_v13 = vadd.f32 %v7200_v7, %v5048_v23 }
 0x3ce   : > { %v5257_v48 = vpop.f32.mrf.mxu1 }
 0x3cf   : > { %5349 = vst.msk [vmem:[%s7910_s21 + $0x60] sm:$0xff] %vm703_vm5, %v5333_v35  ;;  %v5304_v47 = vadd.f32 %v9712_v53, %v5281_v13  ;;  %v5280_v46 = vadd.f32 %v5257_v48, %v5047_v42 }
 0x3d1   : > { %v5336_v45 = vadd.f32 %v5320_v52, %v5304_v47  ;;  %v5303_v20 = vadd.f32 %v9712_v53, %v5280_v46 }
 0x3d3   : > { %5352 = vst.msk [vmem:[%s7910_s21 + $0x78] sm:$0xff] %vm703_vm5, %v5336_v45  ;;  %v5335_v14 = vadd.f32 %v5319_v56, %v5303_v20 }
 0x3d5   : > { %5351 = vst.msk [vmem:[%s7910_s21 + $0x70] sm:$0xff] %vm703_vm5, %v5335_v14 }
 0x3d6   : > { %7426 = shalt.err (!%p7423_p11)
}
 0x3d7   : > { %s7427_s21 = scalar_lea.hbm %s9829_s23, 2048  ;;  %s7431_s24 = scalar_lea.hbm %s10062_s29, 8192 }
 0x3d8   : > { %p7428_p7 = scmp.ne.s32.totalorder %s9829_s23, %s7427_s21  ;;  %p7432_p9 = scmp.lt.s32.totalorder %s9829_s23, %s10062_s29 }
 0x3d9   : > { %p7433_p8 = scmp.lt.s32.totalorder %s7431_s24, %s7427_s21 }
 0x3da   : > { %p7429_p3 = pnand %p7428_p7, %p10064_p6 }
 0x3db   : > { %p7434_p12 = por %p7433_p8, %p7432_p9 }
 0x3dc   : > { %p7430_p5 = pneg %p7429_p3 }
 0x3de   : > { %p7435_p13 = pnand %p7434_p12, %p7430_p5 }
 0x3e0   : > { %7438 = shalt.err (!%p7435_p13)
}
 0x3e1   : > { %s7573_s11 = smov 128   ;;  %s7574_s30 = smov 8  }
 0x3e2   : > { %7221 = dma.vmem_to_hbm [thread:$0]  (%p10064_p6), %s9831_s28, 2048, %s9829_s23, %s9839_s8, %s7573_s11, %s7573_s11, %s7574_s30  }
 0x3e3 PF: > { %s10065_s12 = sld [smem:[#allocation12_spill]]  ;;  %p7235_p0 = scmp.ge.s32.totalorder %s7561_s22, 2 }
 0x3e4   : > { %s10066_s27 = sld [smem:[#allocation22_spill]] }
 0x3e9   : > { %s5385_s18 = sand.u32 1, %s10065_s12  }
 0x3ea   : > { %p10067_p2 = scmp.ne.s32.totalorder %s10066_s27, 0  ;;  %s5386_s2 = scalar_lea.sflag [#allocation5], %s5385_s18 }
 0x3ec   : > { %p7231_p10 = pnand %p7235_p0, %p10067_p2 }
 0x3ee   : > { %p7232_p1 = pneg %p7231_p10 }
 0x3f0   : > { %7504 = dma.done.wait (%p7232_p1), %s5386_s2, 2048  }
 0x3f1   : > { %7506 = vsyncadd (%p7232_p1), %s5386_s2, 4294965248  ;;  %s28_s22 = sadd.s32 1, %s7561_s22   ;;  %s10069_s7 = sld [smem:[#allocation13_spill]] }
 0x3f2   : > { %p9867_p4 = scmp.ge.s32.totalorder %s28_s22, 6   ;;  %s10070_s11 = sld [smem:[#allocation21_spill]] }
 0x3f3   : > { %s10071_s28 = sld [smem:[#allocation14_spill]]  ;;  %s10078_s30 = smov %s7513_s10 }
 0x3f4   : > { %s10072_s17 = sld [smem:[#allocation20_spill]]  ;;  %s10080_s12 = smov %s7525_s13 }
 0x3f5   : > { %s10073_s18 = sld [smem:[#allocation16_spill]]  ;;  %s10081_s13 = smov %s7529_s14 }
 0x3f6   : > { %s10074_s19 = sld [smem:[#allocation17_spill]]  ;;  %s10082_s14 = smov %s7820_s25 }
 0x3f7   : > { %s10075_s20 = sld [smem:[#allocation18_spill]]  ;;  %s10079_s10 = smov %s10069_s7 }
 0x3f8   : > { %s10076_s21 = sld [smem:[#allocation19_spill]]  ;;  %s10083_s15 = smov %s7537_s16 }
 0x3f9   : > { %s10084_s16 = smov %s10071_s28  ;;  %27 = sbr.rel (!%p9867_p4) target bundleno = 23 (0x17), region = 155 }
 0x3fe   :  { %5391 = vsyncpa [#allocation4], 1 }
 0x3ff   :  { %5393 = vsyncpa [#allocation4 + $0x1], 1 }
 0x400   :  { %5394 = vsyncpa [#allocation7], 1 }
 0x401   :  { %5396 = vsyncpa [#allocation7 + $0x1], 1 }
 0x402   :  { %5397 = vsyncpa [#allocation5], 1 }
 0x403   :  { %5399 = vsyncpa [#allocation5 + $0x1], 1 }

</bundles_post_ra>
